<compile_context>
chip_gen: v7x
topology: tpu7x:2x2x1
jax: 0.10.0
libtpu: 0.0.40
codegen_flags: <defaults>
</compile_context>

<pallas_src>
import functools

import jax
import jax.numpy as jnp
import numpy as np
from jax.experimental import pallas as pl
from jax.experimental.pallas import tpu as pltpu

# ---------------------------------------------------------------------------
# Geometry (fixed by the PyTorch module: 32x32x3 input, fc1 = 16*5*5).
# ---------------------------------------------------------------------------
H = W = 32
CIN = 3
KH = KW = 5
C1, C2 = 6, 16
OH1 = OW1 = H - KH + 1          # 28
PH1 = PW1 = OH1 // 2            # 14
OH2 = OW2 = PH1 - KH + 1        # 10
PH2 = PW2 = OH2 // 2            # 5
FC1, FC2, FC3 = 120, 84, 5

# Padded, lane-dense layouts.
C1P = 8                          # conv1 channels padded per pixel
C2P = 16                         # conv2 channels per pixel
OW1P = 32                        # conv1 out-width slots -> 32*8  = 256 lanes
OW2P = 16                        # conv2 out-width slots -> 16*16 = 256 lanes
K1 = 128                         # conv1 contraction  (W*CIN   = 96  -> 128)
K2 = 128                         # conv2 contraction  (PW1*C1P = 112 -> 128)
A1_COLS = OW1P * C1P             # 256
A2_COLS = OW2P * C2P             # 256
P1_COLS = 128                    # PW1*C1P = 112 -> 128
P2_COLS = 128                    # PW2*C2P = 80  -> 128
FC_COLS = 128


# ---------------------------------------------------------------------------
# Fused Pallas kernel
# ---------------------------------------------------------------------------
def _lenet_fused_kernel(
    x_ref, t1_ref, b1_ref, r1e_ref, r1o_ref, s1e_ref, s1o_ref,
    t2_ref, b2_ref, r2e_ref, r2o_ref, s2e_ref, s2o_ref,
    w1_ref, bf1_ref, w2_ref, bf2_ref, w3_ref, bf3_ref,
    o_ref,
    p1_s, p2_s, h1_s,
    *, batch):

  def mm(a, b):
    return jnp.dot(a, b, preferred_element_type=jnp.float32)

  def pool(a, re_ref, ro_ref, se_ref, so_ref):
    # 2x2/stride-2 max pool of `a` via constant row/column selection matmuls.
    ae = mm(re_ref[...], a)                       # even rows
    ao = mm(ro_ref[...], a)                       # odd rows
    return jnp.maximum(
        jnp.maximum(mm(ae, se_ref[...]), mm(ae, so_ref[...])),
        jnp.maximum(mm(ao, se_ref[...]), mm(ao, so_ref[...])))

  for n in range(batch):                          # batch is small & static
    # ----- conv1 (5x5 valid) as 5 row-shifted block-Toeplitz matmuls --------
    base = n * H
    acc1 = mm(x_ref[base:base + OH1, :], t1_ref[0:K1, :])
    for i in range(1, KH):
      acc1 += mm(x_ref[base + i:base + i + OH1, :],
                 t1_ref[i * K1:(i + 1) * K1, :])
    a1 = jnp.maximum(acc1 + b1_ref[...], 0.0)                     # (28, 256)

    # ----- pool1 ------------------------------------------------------------
    p1_s[...] = pool(a1, r1e_ref, r1o_ref, s1e_ref, s1o_ref)      # (14, 128)

    # ----- conv2 ------------------------------------------------------------
    acc2 = mm(p1_s[0:OH2, :], t2_ref[0:K2, :])
    for i in range(1, KH):
      acc2 += mm(p1_s[i:i + OH2, :], t2_ref[i * K2:(i + 1) * K2, :])
    a2 = jnp.maximum(acc2 + b2_ref[...], 0.0)                     # (10, 256)

    # ----- pool2 ------------------------------------------------------------
    p2_s[...] = pool(a2, r2e_ref, r2o_ref, s2e_ref, s2o_ref)      # (5, 128)

    # ----- fc1: contract the 5 pooled rows (no flatten needed) --------------
    f1 = mm(p2_s[0:1, :], w1_ref[0:P2_COLS, :])
    for y in range(1, PH2):
      f1 += mm(p2_s[y:y + 1, :], w1_ref[y * P2_COLS:(y + 1) * P2_COLS, :])
    h1_s[n:n + 1, :] = jnp.maximum(f1 + bf1_ref[...], 0.0)        # (1, 128)

  # ----- fc2 + fc3 for the whole batch --------------------------------------
  h2 = jnp.maximum(mm(h1_s[...], w2_ref[...]) + bf2_ref[...], 0.0)
  o_ref[...] = mm(h2, w3_ref[...]) + bf3_ref[...]                 # (batch, 128)


# ---------------------------------------------------------------------------
# Glue: build padded, lane-dense operands once per call (all tiny).
# ---------------------------------------------------------------------------
def _conv_toeplitz(w, b, *, in_w, in_c, in_cp, out_w, out_wp, out_c, out_cp,
                   k_pad):
  """Row-Toeplitz operand for a valid 5x5 conv.

  T[k*k_pad + w*in_cp + ci, x*out_cp + co] = w[co, ci, k, w - x]  (else 0)
  bias_row[0, x*out_cp + co] = b[co] for valid x/co (else 0).
  """
  sel = np.zeros((KW, in_w, out_w), np.float32)
  for dj in range(KW):
    for xo in range(out_w):
      sel[dj, xo + dj, xo] = 1.0
  t = jnp.einsum("oikj,jwx->kwixo", w, jnp.asarray(sel))
  t = jnp.pad(t, ((0, 0), (0, 0), (0, in_cp - in_c),
                  (0, out_wp - out_w), (0, out_cp - out_c)))
  t = t.reshape(KH, in_w * in_cp, out_wp * out_cp)
  t = jnp.pad(t, ((0, 0), (0, k_pad - in_w * in_cp), (0, 0)))
  t = t.reshape(KH * k_pad, out_wp * out_cp)

  mask = np.zeros((out_wp, out_cp), np.float32)
  mask[:out_w, :out_c] = 1.0
  bias_row = (jnp.pad(b, (0, out_cp - out_c))[None, :] * jnp.asarray(mask))
  return t, bias_row.reshape(1, out_wp * out_cp)


def _pool_selectors(out_h, out_w, out_wp, cp, c_valid, col_pad):
  ph, pw = out_h // 2, out_w // 2
  re = np.zeros((ph, out_h), np.float32)
  ro = np.zeros((ph, out_h), np.float32)
  re[np.arange(ph), 2 * np.arange(ph)] = 1.0
  ro[np.arange(ph), 2 * np.arange(ph) + 1] = 1.0
  se = np.zeros((out_wp * cp, col_pad), np.float32)
  so = np.zeros((out_wp * cp, col_pad), np.float32)
  for x2 in range(pw):
    for ch in range(c_valid):
      se[(2 * x2) * cp + ch, x2 * cp + ch] = 1.0
      so[(2 * x2 + 1) * cp + ch, x2 * cp + ch] = 1.0
  return (jnp.asarray(re), jnp.asarray(ro), jnp.asarray(se), jnp.asarray(so))


def _fc_mats(params):
  # fc1 input features follow PyTorch's NCHW flatten (c, y, x); permute so the
  # kernel can contract row-blocks of the (y, x*16+c) pooled layout directly.
  w1 = params["fc1_w"].reshape(FC1, C2, PH2, PW2)       # (120, 16, 5, 5) f,c,y,x
  w1 = w1.transpose(2, 3, 1, 0)                         # (5, 5, 16, 120) y,x,c,f
  w1 = w1.reshape(PH2, PW2 * C2P, FC1)                  # (5, 80, 120)
  w1 = jnp.pad(w1, ((0, 0), (0, P2_COLS - PW2 * C2P), (0, FC_COLS - FC1)))
  w1 = w1.reshape(PH2 * P2_COLS, FC_COLS)               # (640, 128)
  bf1 = jnp.pad(params["fc1_b"], (0, FC_COLS - FC1)).reshape(1, FC_COLS)
  w2 = jnp.pad(params["fc2_w"].T, ((0, FC_COLS - FC1), (0, FC_COLS - FC2)))
  bf2 = jnp.pad(params["fc2_b"], (0, FC_COLS - FC2)).reshape(1, FC_COLS)
  w3 = jnp.pad(params["fc3_w"].T, ((0, FC_COLS - FC2), (0, FC_COLS - FC3)))
  bf3 = jnp.pad(params["fc3_b"], (0, FC_COLS - FC3)).reshape(1, FC_COLS)
  return w1, bf1, w2, bf2, w3, bf3


def _prepare_inputs(params, x):
  batch = x.shape[0]
  # Image -> (batch*H, 128), column = w*CIN + ci (lane-dense, zero padded).
  x_rows = x.transpose(0, 2, 3, 1).reshape(batch * H, W * CIN)
  x_rows = jnp.pad(x_rows, ((0, 0), (0, K1 - W * CIN)))

  t1, b1 = _conv_toeplitz(params["conv1_w"], params["conv1_b"],
                          in_w=W, in_c=CIN, in_cp=CIN, out_w=OW1, out_wp=OW1P,
                          out_c=C1, out_cp=C1P, k_pad=K1)
  t2, b2 = _conv_toeplitz(params["conv2_w"], params["conv2_b"],
                          in_w=PW1, in_c=C1, in_cp=C1P, out_w=OW2, out_wp=OW2P,
                          out_c=C2, out_cp=C2P, k_pad=K2)
  r1e, r1o, s1e, s1o = _pool_selectors(OH1, OW1, OW1P, C1P, C1, P1_COLS)
  r2e, r2o, s2e, s2o = _pool_selectors(OH2, OW2, OW2P, C2P, C2, P2_COLS)
  w1, bf1, w2, bf2, w3, bf3 = _fc_mats(params)

  return [x_rows, t1, b1, r1e, r1o, s1e, s1o,
          t2, b2, r2e, r2o, s2e, s2o,
          w1, bf1, w2, bf2, w3, bf3]


@jax.jit
def net_forward(params, x):
  batch = x.shape[0]
  assert x.shape[1:] == (CIN, H, W), x.shape
  inputs = _prepare_inputs(params, x)

  flops = 2 * batch * (OH1 * OW1 * (CIN * KH * KW) * C1
                       + OH2 * OW2 * (C1 * KH * KW) * C2
                       + C2 * PH2 * PW2 * FC1 + FC1 * FC2 + FC2 * FC3)
  bytes_accessed = sum(int(np.prod(a.shape)) * 4 for a in inputs) \
      + batch * FC_COLS * 4

  out = pl.pallas_call(
      functools.partial(_lenet_fused_kernel, batch=batch),
      out_shape=jax.ShapeDtypeStruct((batch, FC_COLS), jnp.float32),
      in_specs=[pl.BlockSpec(a.shape, lambda: (0, 0)) for a in inputs],
      out_specs=pl.BlockSpec((batch, FC_COLS), lambda: (0, 0)),
      scratch_shapes=[
          pltpu.VMEM((PH1, P1_COLS), jnp.float32),   # pool1 output (per image)
          pltpu.VMEM((PH2, P2_COLS), jnp.float32),   # pool2 output (per image)
          pltpu.VMEM((batch, FC_COLS), jnp.float32), # fc1 activations (batch)
      ],
      cost_estimate=pl.CostEstimate(flops=flops, transcendentals=0,
                                    bytes_accessed=bytes_accessed),
  )(*inputs)
  return out[:, :FC3]          # lane-dense store in kernel; slice valid logits


# ---------------------------------------------------------------------------
# Parameters (deterministic, PyTorch-default-style uniform init)
# ---------------------------------------------------------------------------
def init_params(key):
  def uniform(key, shape, fan_in):
    bound = 1.0 / np.sqrt(fan_in)
    return jax.random.uniform(key, shape, jnp.float32, -bound, bound)

  ks = jax.random.split(key, 12)
  return {
      "conv1_w": uniform(ks[0], (6, 3, 5, 5), 3 * 5 * 5),
      "conv1_b": uniform(ks[1], (6,), 3 * 5 * 5),
      "conv2_w": uniform(ks[2], (16, 6, 5, 5), 6 * 5 * 5),
      "conv2_b": uniform(ks[3], (16,), 6 * 5 * 5),
      "fc1_w": uniform(ks[4], (120, 400), 400),
      "fc1_b": uniform(ks[5], (120,), 400),
      "fc2_w": uniform(ks[6], (84, 120), 120),
      "fc2_b": uniform(ks[7], (84,), 120),
      "fc3_w": uniform(ks[8], (5, 84), 84),
      "fc3_b": uniform(ks[9], (5,), 84),
  }


# Pure-JAX reference for the correctness check.
def net_forward_ref(params, x):
  def conv(x, w, b):
    y = jax.lax.conv_general_dilated(
        x, w, window_strides=(1, 1), padding="VALID",
        dimension_numbers=("NCHW", "OIHW", "NCHW"))
    return jax.nn.relu(y + b[None, :, None, None])

  def pool(x):
    n, c, h, w = x.shape
    return x.reshape(n, c, h // 2, 2, w // 2, 2).max(axis=(3, 5))

  x = pool(conv(x, params["conv1_w"], params["conv1_b"]))
  x = pool(conv(x, params["conv2_w"], params["conv2_b"]))
  x = x.reshape(x.shape[0], -1)
  x = jax.nn.relu(x @ params["fc1_w"].T + params["fc1_b"])
  x = jax.nn.relu(x @ params["fc2_w"].T + params["fc2_b"])
  return x @ params["fc3_w"].T + params["fc3_b"]


if __name__ == "__main__":
  key = jax.random.PRNGKey(0)
  k_param, k_x = jax.random.split(key)
  params = init_params(k_param)
  # Input shape forced by fc1 (16*5*5): 32x32 RGB images, batch=2.
  x = jax.random.normal(k_x, (2, 3, 32, 32), jnp.float32)

  out = jax.block_until_ready(net_forward(params, x))
  ref = jax.block_until_ready(net_forward_ref(params, x))

  assert out.shape == (2, 5), out.shape
  np.testing.assert_allclose(np.asarray(out), np.asarray(ref),
                             rtol=1e-3, atol=1e-3)
  print("KERNEL_OK")
</pallas_src>

<mosaic_0001>
module attributes {stable_mosaic.version = 11 : i64} {
  func.func @_lenet_fused_kernel(%arg0: memref<64x128xf32, #tpu.memory_space<vmem>>, %arg1: memref<640x256xf32, #tpu.memory_space<vmem>>, %arg2: memref<1x256xf32, #tpu.memory_space<vmem>>, %arg3: memref<14x28xf32, #tpu.memory_space<vmem>>, %arg4: memref<14x28xf32, #tpu.memory_space<vmem>>, %arg5: memref<256x128xf32, #tpu.memory_space<vmem>>, %arg6: memref<256x128xf32, #tpu.memory_space<vmem>>, %arg7: memref<640x256xf32, #tpu.memory_space<vmem>>, %arg8: memref<1x256xf32, #tpu.memory_space<vmem>>, %arg9: memref<5x10xf32, #tpu.memory_space<vmem>>, %arg10: memref<5x10xf32, #tpu.memory_space<vmem>>, %arg11: memref<256x128xf32, #tpu.memory_space<vmem>>, %arg12: memref<256x128xf32, #tpu.memory_space<vmem>>, %arg13: memref<640x128xf32, #tpu.memory_space<vmem>>, %arg14: memref<1x128xf32, #tpu.memory_space<vmem>>, %arg15: memref<128x128xf32, #tpu.memory_space<vmem>>, %arg16: memref<1x128xf32, #tpu.memory_space<vmem>>, %arg17: memref<128x128xf32, #tpu.memory_space<vmem>>, %arg18: memref<1x128xf32, #tpu.memory_space<vmem>>, %arg19: memref<2x128xf32, #tpu.memory_space<vmem>>, %arg20: memref<14x128xf32, #tpu.memory_space<vmem>>, %arg21: memref<5x128xf32, #tpu.memory_space<vmem>>, %arg22: memref<2x128xf32, #tpu.memory_space<vmem>>) attributes {dimension_semantics = [], scalar_prefetch = 0 : i64, scratch_operands = 3 : i64, tpu.core_type = #tpu.core_type<tc>} {
    %c0 = arith.constant 0 : index
    %c0_0 = arith.constant 0 : index
    %0 = vector.load %arg0[%c0, %c0_0] : memref<64x128xf32, #tpu.memory_space<vmem>>, vector<28x128xf32>
    %c0_1 = arith.constant 0 : index
    %c0_2 = arith.constant 0 : index
    %1 = vector.load %arg1[%c0_1, %c0_2] : memref<640x256xf32, #tpu.memory_space<vmem>>, vector<128x256xf32>
    %cst = arith.constant dense<0.000000e+00> : vector<28x256xf32>
    %2 = tpu.matmul %0, %1, %cst {dimension_numbers = #tpu.dot_dimension_numbers<[1], [0], [0], [1], [0, 0, 1, 1], [], []>} : vector<28x128xf32>, vector<128x256xf32>, vector<28x256xf32> -> vector<28x256xf32>
    %c1 = arith.constant 1 : index
    %c0_3 = arith.constant 0 : index
    %3 = vector.load %arg0[%c1, %c0_3] : memref<64x128xf32, #tpu.memory_space<vmem>>, vector<28x128xf32>
    %c128 = arith.constant 128 : index
    %c0_4 = arith.constant 0 : index
    %4 = vector.load %arg1[%c128, %c0_4] : memref<640x256xf32, #tpu.memory_space<vmem>>, vector<128x256xf32>
    %cst_5 = arith.constant dense<0.000000e+00> : vector<28x256xf32>
    %5 = tpu.matmul %3, %4, %cst_5 {dimension_numbers = #tpu.dot_dimension_numbers<[1], [0], [0], [1], [0, 0, 1, 1], [], []>} : vector<28x128xf32>, vector<128x256xf32>, vector<28x256xf32> -> vector<28x256xf32>
    %6 = arith.addf %2, %5 : vector<28x256xf32>
    %c2 = arith.constant 2 : index
    %c0_6 = arith.constant 0 : index
    %7 = vector.load %arg0[%c2, %c0_6] : memref<64x128xf32, #tpu.memory_space<vmem>>, vector<28x128xf32>
    %c256 = arith.constant 256 : index
    %c0_7 = arith.constant 0 : index
    %8 = vector.load %arg1[%c256, %c0_7] : memref<640x256xf32, #tpu.memory_space<vmem>>, vector<128x256xf32>
    %cst_8 = arith.constant dense<0.000000e+00> : vector<28x256xf32>
    %9 = tpu.matmul %7, %8, %cst_8 {dimension_numbers = #tpu.dot_dimension_numbers<[1], [0], [0], [1], [0, 0, 1, 1], [], []>} : vector<28x128xf32>, vector<128x256xf32>, vector<28x256xf32> -> vector<28x256xf32>
    %10 = arith.addf %6, %9 : vector<28x256xf32>
    %c3 = arith.constant 3 : index
    %c0_9 = arith.constant 0 : index
    %11 = vector.load %arg0[%c3, %c0_9] : memref<64x128xf32, #tpu.memory_space<vmem>>, vector<28x128xf32>
    %c384 = arith.constant 384 : index
    %c0_10 = arith.constant 0 : index
    %12 = vector.load %arg1[%c384, %c0_10] : memref<640x256xf32, #tpu.memory_space<vmem>>, vector<128x256xf32>
    %cst_11 = arith.constant dense<0.000000e+00> : vector<28x256xf32>
    %13 = tpu.matmul %11, %12, %cst_11 {dimension_numbers = #tpu.dot_dimension_numbers<[1], [0], [0], [1], [0, 0, 1, 1], [], []>} : vector<28x128xf32>, vector<128x256xf32>, vector<28x256xf32> -> vector<28x256xf32>
    %14 = arith.addf %10, %13 : vector<28x256xf32>
    %c4 = arith.constant 4 : index
    %c0_12 = arith.constant 0 : index
    %15 = vector.load %arg0[%c4, %c0_12] : memref<64x128xf32, #tpu.memory_space<vmem>>, vector<28x128xf32>
    %c512 = arith.constant 512 : index
    %c0_13 = arith.constant 0 : index
    %16 = vector.load %arg1[%c512, %c0_13] : memref<640x256xf32, #tpu.memory_space<vmem>>, vector<128x256xf32>
    %cst_14 = arith.constant dense<0.000000e+00> : vector<28x256xf32>
    %17 = tpu.matmul %15, %16, %cst_14 {dimension_numbers = #tpu.dot_dimension_numbers<[1], [0], [0], [1], [0, 0, 1, 1], [], []>} : vector<28x128xf32>, vector<128x256xf32>, vector<28x256xf32> -> vector<28x256xf32>
    %18 = arith.addf %14, %17 : vector<28x256xf32>
    %c0_15 = arith.constant 0 : index
    %c0_16 = arith.constant 0 : index
    %19 = vector.load %arg2[%c0_15, %c0_16] : memref<1x256xf32, #tpu.memory_space<vmem>>, vector<1x256xf32>
    %20 = vector.broadcast %19 : vector<1x256xf32> to vector<28x256xf32>
    %21 = arith.addf %18, %20 : vector<28x256xf32>
    %cst_17 = arith.constant 0.000000e+00 : f32
    %22 = vector.broadcast %cst_17 : f32 to vector<28x256xf32>
    %23 = arith.maximumf %21, %22 : vector<28x256xf32>
    %c0_18 = arith.constant 0 : index
    %c0_19 = arith.constant 0 : index
    %24 = vector.load %arg3[%c0_18, %c0_19] : memref<14x28xf32, #tpu.memory_space<vmem>>, vector<14x28xf32>
    %cst_20 = arith.constant dense<0.000000e+00> : vector<14x256xf32>
    %25 = tpu.matmul %24, %23, %cst_20 {dimension_numbers = #tpu.dot_dimension_numbers<[1], [0], [0], [1], [0, 0, 1, 1], [], []>} : vector<14x28xf32>, vector<28x256xf32>, vector<14x256xf32> -> vector<14x256xf32>
    %c0_21 = arith.constant 0 : index
    %c0_22 = arith.constant 0 : index
    %26 = vector.load %arg4[%c0_21, %c0_22] : memref<14x28xf32, #tpu.memory_space<vmem>>, vector<14x28xf32>
    %cst_23 = arith.constant dense<0.000000e+00> : vector<14x256xf32>
    %27 = tpu.matmul %26, %23, %cst_23 {dimension_numbers = #tpu.dot_dimension_numbers<[1], [0], [0], [1], [0, 0, 1, 1], [], []>} : vector<14x28xf32>, vector<28x256xf32>, vector<14x256xf32> -> vector<14x256xf32>
    %c0_24 = arith.constant 0 : index
    %c0_25 = arith.constant 0 : index
    %28 = vector.load %arg5[%c0_24, %c0_25] : memref<256x128xf32, #tpu.memory_space<vmem>>, vector<256x128xf32>
    %cst_26 = arith.constant dense<0.000000e+00> : vector<14x128xf32>
    %29 = tpu.matmul %25, %28, %cst_26 {dimension_numbers = #tpu.dot_dimension_numbers<[1], [0], [0], [1], [0, 0, 1, 1], [], []>} : vector<14x256xf32>, vector<256x128xf32>, vector<14x128xf32> -> vector<14x128xf32>
    %c0_27 = arith.constant 0 : index
    %c0_28 = arith.constant 0 : index
    %30 = vector.load %arg6[%c0_27, %c0_28] : memref<256x128xf32, #tpu.memory_space<vmem>>, vector<256x128xf32>
    %cst_29 = arith.constant dense<0.000000e+00> : vector<14x128xf32>
    %31 = tpu.matmul %25, %30, %cst_29 {dimension_numbers = #tpu.dot_dimension_numbers<[1], [0], [0], [1], [0, 0, 1, 1], [], []>} : vector<14x256xf32>, vector<256x128xf32>, vector<14x128xf32> -> vector<14x128xf32>
    %32 = arith.maximumf %29, %31 : vector<14x128xf32>
    %c0_30 = arith.constant 0 : index
    %c0_31 = arith.constant 0 : index
    %33 = vector.load %arg5[%c0_30, %c0_31] : memref<256x128xf32, #tpu.memory_space<vmem>>, vector<256x128xf32>
    %cst_32 = arith.constant dense<0.000000e+00> : vector<14x128xf32>
    %34 = tpu.matmul %27, %33, %cst_32 {dimension_numbers = #tpu.dot_dimension_numbers<[1], [0], [0], [1], [0, 0, 1, 1], [], []>} : vector<14x256xf32>, vector<256x128xf32>, vector<14x128xf32> -> vector<14x128xf32>
    %c0_33 = arith.constant 0 : index
    %c0_34 = arith.constant 0 : index
    %35 = vector.load %arg6[%c0_33, %c0_34] : memref<256x128xf32, #tpu.memory_space<vmem>>, vector<256x128xf32>
    %cst_35 = arith.constant dense<0.000000e+00> : vector<14x128xf32>
    %36 = tpu.matmul %27, %35, %cst_35 {dimension_numbers = #tpu.dot_dimension_numbers<[1], [0], [0], [1], [0, 0, 1, 1], [], []>} : vector<14x256xf32>, vector<256x128xf32>, vector<14x128xf32> -> vector<14x128xf32>
    %37 = arith.maximumf %34, %36 : vector<14x128xf32>
    %38 = arith.maximumf %32, %37 : vector<14x128xf32>
    %c0_36 = arith.constant 0 : index
    %c0_37 = arith.constant 0 : index
    %39 = vector.load %arg20[%c0_36, %c0_37] : memref<14x128xf32, #tpu.memory_space<vmem>>, vector<14x128xf32>
    tpu.vector_store %arg20[%c0_36, %c0_37], %38 {strides = array<i32>} : memref<14x128xf32, #tpu.memory_space<vmem>>, vector<14x128xf32>,
    %c0_38 = arith.constant 0 : index
    %c0_39 = arith.constant 0 : index
    %40 = vector.load %arg20[%c0_38, %c0_39] : memref<14x128xf32, #tpu.memory_space<vmem>>, vector<10x128xf32>
    %c0_40 = arith.constant 0 : index
    %c0_41 = arith.constant 0 : index
    %41 = vector.load %arg7[%c0_40, %c0_41] : memref<640x256xf32, #tpu.memory_space<vmem>>, vector<128x256xf32>
    %cst_42 = arith.constant dense<0.000000e+00> : vector<10x256xf32>
    %42 = tpu.matmul %40, %41, %cst_42 {dimension_numbers = #tpu.dot_dimension_numbers<[1], [0], [0], [1], [0, 0, 1, 1], [], []>} : vector<10x128xf32>, vector<128x256xf32>, vector<10x256xf32> -> vector<10x256xf32>
    %c1_43 = arith.constant 1 : index
    %c0_44 = arith.constant 0 : index
    %43 = vector.load %arg20[%c1_43, %c0_44] : memref<14x128xf32, #tpu.memory_space<vmem>>, vector<10x128xf32>
    %c128_45 = arith.constant 128 : index
    %c0_46 = arith.constant 0 : index
    %44 = vector.load %arg7[%c128_45, %c0_46] : memref<640x256xf32, #tpu.memory_space<vmem>>, vector<128x256xf32>
    %cst_47 = arith.constant dense<0.000000e+00> : vector<10x256xf32>
    %45 = tpu.matmul %43, %44, %cst_47 {dimension_numbers = #tpu.dot_dimension_numbers<[1], [0], [0], [1], [0, 0, 1, 1], [], []>} : vector<10x128xf32>, vector<128x256xf32>, vector<10x256xf32> -> vector<10x256xf32>
    %46 = arith.addf %42, %45 : vector<10x256xf32>
    %c2_48 = arith.constant 2 : index
    %c0_49 = arith.constant 0 : index
    %47 = vector.load %arg20[%c2_48, %c0_49] : memref<14x128xf32, #tpu.memory_space<vmem>>, vector<10x128xf32>
    %c256_50 = arith.constant 256 : index
    %c0_51 = arith.constant 0 : index
    %48 = vector.load %arg7[%c256_50, %c0_51] : memref<640x256xf32, #tpu.memory_space<vmem>>, vector<128x256xf32>
    %cst_52 = arith.constant dense<0.000000e+00> : vector<10x256xf32>
    %49 = tpu.matmul %47, %48, %cst_52 {dimension_numbers = #tpu.dot_dimension_numbers<[1], [0], [0], [1], [0, 0, 1, 1], [], []>} : vector<10x128xf32>, vector<128x256xf32>, vector<10x256xf32> -> vector<10x256xf32>
    %50 = arith.addf %46, %49 : vector<10x256xf32>
    %c3_53 = arith.constant 3 : index
    %c0_54 = arith.constant 0 : index
    %51 = vector.load %arg20[%c3_53, %c0_54] : memref<14x128xf32, #tpu.memory_space<vmem>>, vector<10x128xf32>
    %c384_55 = arith.constant 384 : index
    %c0_56 = arith.constant 0 : index
    %52 = vector.load %arg7[%c384_55, %c0_56] : memref<640x256xf32, #tpu.memory_space<vmem>>, vector<128x256xf32>
    %cst_57 = arith.constant dense<0.000000e+00> : vector<10x256xf32>
    %53 = tpu.matmul %51, %52, %cst_57 {dimension_numbers = #tpu.dot_dimension_numbers<[1], [0], [0], [1], [0, 0, 1, 1], [], []>} : vector<10x128xf32>, vector<128x256xf32>, vector<10x256xf32> -> vector<10x256xf32>
    %54 = arith.addf %50, %53 : vector<10x256xf32>
    %c4_58 = arith.constant 4 : index
    %c0_59 = arith.constant 0 : index
    %55 = vector.load %arg20[%c4_58, %c0_59] : memref<14x128xf32, #tpu.memory_space<vmem>>, vector<10x128xf32>
    %c512_60 = arith.constant 512 : index
    %c0_61 = arith.constant 0 : index
    %56 = vector.load %arg7[%c512_60, %c0_61] : memref<640x256xf32, #tpu.memory_space<vmem>>, vector<128x256xf32>
    %cst_62 = arith.constant dense<0.000000e+00> : vector<10x256xf32>
    %57 = tpu.matmul %55, %56, %cst_62 {dimension_numbers = #tpu.dot_dimension_numbers<[1], [0], [0], [1], [0, 0, 1, 1], [], []>} : vector<10x128xf32>, vector<128x256xf32>, vector<10x256xf32> -> vector<10x256xf32>
    %58 = arith.addf %54, %57 : vector<10x256xf32>
    %c0_63 = arith.constant 0 : index
    %c0_64 = arith.constant 0 : index
    %59 = vector.load %arg8[%c0_63, %c0_64] : memref<1x256xf32, #tpu.memory_space<vmem>>, vector<1x256xf32>
    %60 = vector.broadcast %59 : vector<1x256xf32> to vector<10x256xf32>
    %61 = arith.addf %58, %60 : vector<10x256xf32>
    %cst_65 = arith.constant 0.000000e+00 : f32
    %62 = vector.broadcast %cst_65 : f32 to vector<10x256xf32>
    %63 = arith.maximumf %61, %62 : vector<10x256xf32>
    %c0_66 = arith.constant 0 : index
    %c0_67 = arith.constant 0 : index
    %64 = vector.load %arg9[%c0_66, %c0_67] : memref<5x10xf32, #tpu.memory_space<vmem>>, vector<5x10xf32>
    %cst_68 = arith.constant dense<0.000000e+00> : vector<5x256xf32>
    %65 = tpu.matmul %64, %63, %cst_68 {dimension_numbers = #tpu.dot_dimension_numbers<[1], [0], [0], [1], [0, 0, 1, 1], [], []>} : vector<5x10xf32>, vector<10x256xf32>, vector<5x256xf32> -> vector<5x256xf32>
    %c0_69 = arith.constant 0 : index
    %c0_70 = arith.constant 0 : index
    %66 = vector.load %arg10[%c0_69, %c0_70] : memref<5x10xf32, #tpu.memory_space<vmem>>, vector<5x10xf32>
    %cst_71 = arith.constant dense<0.000000e+00> : vector<5x256xf32>
    %67 = tpu.matmul %66, %63, %cst_71 {dimension_numbers = #tpu.dot_dimension_numbers<[1], [0], [0], [1], [0, 0, 1, 1], [], []>} : vector<5x10xf32>, vector<10x256xf32>, vector<5x256xf32> -> vector<5x256xf32>
    %c0_72 = arith.constant 0 : index
    %c0_73 = arith.constant 0 : index
    %68 = vector.load %arg11[%c0_72, %c0_73] : memref<256x128xf32, #tpu.memory_space<vmem>>, vector<256x128xf32>
    %cst_74 = arith.constant dense<0.000000e+00> : vector<5x128xf32>
    %69 = tpu.matmul %65, %68, %cst_74 {dimension_numbers = #tpu.dot_dimension_numbers<[1], [0], [0], [1], [0, 0, 1, 1], [], []>} : vector<5x256xf32>, vector<256x128xf32>, vector<5x128xf32> -> vector<5x128xf32>
    %c0_75 = arith.constant 0 : index
    %c0_76 = arith.constant 0 : index
    %70 = vector.load %arg12[%c0_75, %c0_76] : memref<256x128xf32, #tpu.memory_space<vmem>>, vector<256x128xf32>
    %cst_77 = arith.constant dense<0.000000e+00> : vector<5x128xf32>
    %71 = tpu.matmul %65, %70, %cst_77 {dimension_numbers = #tpu.dot_dimension_numbers<[1], [0], [0], [1], [0, 0, 1, 1], [], []>} : vector<5x256xf32>, vector<256x128xf32>, vector<5x128xf32> -> vector<5x128xf32>
    %72 = arith.maximumf %69, %71 : vector<5x128xf32>
    %c0_78 = arith.constant 0 : index
    %c0_79 = arith.constant 0 : index
    %73 = vector.load %arg11[%c0_78, %c0_79] : memref<256x128xf32, #tpu.memory_space<vmem>>, vector<256x128xf32>
    %cst_80 = arith.constant dense<0.000000e+00> : vector<5x128xf32>
    %74 = tpu.matmul %67, %73, %cst_80 {dimension_numbers = #tpu.dot_dimension_numbers<[1], [0], [0], [1], [0, 0, 1, 1], [], []>} : vector<5x256xf32>, vector<256x128xf32>, vector<5x128xf32> -> vector<5x128xf32>
    %c0_81 = arith.constant 0 : index
    %c0_82 = arith.constant 0 : index
    %75 = vector.load %arg12[%c0_81, %c0_82] : memref<256x128xf32, #tpu.memory_space<vmem>>, vector<256x128xf32>
    %cst_83 = arith.constant dense<0.000000e+00> : vector<5x128xf32>
    %76 = tpu.matmul %67, %75, %cst_83 {dimension_numbers = #tpu.dot_dimension_numbers<[1], [0], [0], [1], [0, 0, 1, 1], [], []>} : vector<5x256xf32>, vector<256x128xf32>, vector<5x128xf32> -> vector<5x128xf32>
    %77 = arith.maximumf %74, %76 : vector<5x128xf32>
    %78 = arith.maximumf %72, %77 : vector<5x128xf32>
    %c0_84 = arith.constant 0 : index
    %c0_85 = arith.constant 0 : index
    %79 = vector.load %arg21[%c0_84, %c0_85] : memref<5x128xf32, #tpu.memory_space<vmem>>, vector<5x128xf32>
    tpu.vector_store %arg21[%c0_84, %c0_85], %78 {strides = array<i32>} : memref<5x128xf32, #tpu.memory_space<vmem>>, vector<5x128xf32>,
    %c0_86 = arith.constant 0 : index
    %c0_87 = arith.constant 0 : index
    %80 = vector.load %arg21[%c0_86, %c0_87] : memref<5x128xf32, #tpu.memory_space<vmem>>, vector<1x128xf32>
    %c0_88 = arith.constant 0 : index
    %c0_89 = arith.constant 0 : index
    %81 = vector.load %arg13[%c0_88, %c0_89] : memref<640x128xf32, #tpu.memory_space<vmem>>, vector<128x128xf32>
    %cst_90 = arith.constant dense<0.000000e+00> : vector<1x128xf32>
    %82 = tpu.matmul %80, %81, %cst_90 {dimension_numbers = #tpu.dot_dimension_numbers<[1], [0], [0], [1], [0, 0, 1, 1], [], []>} : vector<1x128xf32>, vector<128x128xf32>, vector<1x128xf32> -> vector<1x128xf32>
    %c1_91 = arith.constant 1 : index
    %c0_92 = arith.constant 0 : index
    %83 = vector.load %arg21[%c1_91, %c0_92] : memref<5x128xf32, #tpu.memory_space<vmem>>, vector<1x128xf32>
    %c128_93 = arith.constant 128 : index
    %c0_94 = arith.constant 0 : index
    %84 = vector.load %arg13[%c128_93, %c0_94] : memref<640x128xf32, #tpu.memory_space<vmem>>, vector<128x128xf32>
    %cst_95 = arith.constant dense<0.000000e+00> : vector<1x128xf32>
    %85 = tpu.matmul %83, %84, %cst_95 {dimension_numbers = #tpu.dot_dimension_numbers<[1], [0], [0], [1], [0, 0, 1, 1], [], []>} : vector<1x128xf32>, vector<128x128xf32>, vector<1x128xf32> -> vector<1x128xf32>
    %86 = arith.addf %82, %85 : vector<1x128xf32>
    %c2_96 = arith.constant 2 : index
    %c0_97 = arith.constant 0 : index
    %87 = vector.load %arg21[%c2_96, %c0_97] : memref<5x128xf32, #tpu.memory_space<vmem>>, vector<1x128xf32>
    %c256_98 = arith.constant 256 : index
    %c0_99 = arith.constant 0 : index
    %88 = vector.load %arg13[%c256_98, %c0_99] : memref<640x128xf32, #tpu.memory_space<vmem>>, vector<128x128xf32>
    %cst_100 = arith.constant dense<0.000000e+00> : vector<1x128xf32>
    %89 = tpu.matmul %87, %88, %cst_100 {dimension_numbers = #tpu.dot_dimension_numbers<[1], [0], [0], [1], [0, 0, 1, 1], [], []>} : vector<1x128xf32>, vector<128x128xf32>, vector<1x128xf32> -> vector<1x128xf32>
    %90 = arith.addf %86, %89 : vector<1x128xf32>
    %c3_101 = arith.constant 3 : index
    %c0_102 = arith.constant 0 : index
    %91 = vector.load %arg21[%c3_101, %c0_102] : memref<5x128xf32, #tpu.memory_space<vmem>>, vector<1x128xf32>
    %c384_103 = arith.constant 384 : index
    %c0_104 = arith.constant 0 : index
    %92 = vector.load %arg13[%c384_103, %c0_104] : memref<640x128xf32, #tpu.memory_space<vmem>>, vector<128x128xf32>
    %cst_105 = arith.constant dense<0.000000e+00> : vector<1x128xf32>
    %93 = tpu.matmul %91, %92, %cst_105 {dimension_numbers = #tpu.dot_dimension_numbers<[1], [0], [0], [1], [0, 0, 1, 1], [], []>} : vector<1x128xf32>, vector<128x128xf32>, vector<1x128xf32> -> vector<1x128xf32>
    %94 = arith.addf %90, %93 : vector<1x128xf32>
    %c4_106 = arith.constant 4 : index
    %c0_107 = arith.constant 0 : index
    %95 = vector.load %arg21[%c4_106, %c0_107] : memref<5x128xf32, #tpu.memory_space<vmem>>, vector<1x128xf32>
    %c512_108 = arith.constant 512 : index
    %c0_109 = arith.constant 0 : index
    %96 = vector.load %arg13[%c512_108, %c0_109] : memref<640x128xf32, #tpu.memory_space<vmem>>, vector<128x128xf32>
    %cst_110 = arith.constant dense<0.000000e+00> : vector<1x128xf32>
    %97 = tpu.matmul %95, %96, %cst_110 {dimension_numbers = #tpu.dot_dimension_numbers<[1], [0], [0], [1], [0, 0, 1, 1], [], []>} : vector<1x128xf32>, vector<128x128xf32>, vector<1x128xf32> -> vector<1x128xf32>
    %98 = arith.addf %94, %97 : vector<1x128xf32>
    %c0_111 = arith.constant 0 : index
    %c0_112 = arith.constant 0 : index
    %99 = vector.load %arg14[%c0_111, %c0_112] : memref<1x128xf32, #tpu.memory_space<vmem>>, vector<1x128xf32>
    %100 = arith.addf %98, %99 : vector<1x128xf32>
    %cst_113 = arith.constant 0.000000e+00 : f32
    %101 = vector.broadcast %cst_113 : f32 to vector<1x128xf32>
    %102 = arith.maximumf %100, %101 : vector<1x128xf32>
    %c0_114 = arith.constant 0 : index
    %c0_115 = arith.constant 0 : index
    %103 = vector.load %arg22[%c0_114, %c0_115] : memref<2x128xf32, #tpu.memory_space<vmem>>, vector<1x128xf32>
    tpu.vector_store %arg22[%c0_114, %c0_115], %102 {strides = array<i32>} : memref<2x128xf32, #tpu.memory_space<vmem>>, vector<1x128xf32>,
    %c32 = arith.constant 32 : index
    %c0_116 = arith.constant 0 : index
    %104 = vector.load %arg0[%c32, %c0_116] : memref<64x128xf32, #tpu.memory_space<vmem>>, vector<28x128xf32>
    %c0_117 = arith.constant 0 : index
    %c0_118 = arith.constant 0 : index
    %105 = vector.load %arg1[%c0_117, %c0_118] : memref<640x256xf32, #tpu.memory_space<vmem>>, vector<128x256xf32>
    %cst_119 = arith.constant dense<0.000000e+00> : vector<28x256xf32>
    %106 = tpu.matmul %104, %105, %cst_119 {dimension_numbers = #tpu.dot_dimension_numbers<[1], [0], [0], [1], [0, 0, 1, 1], [], []>} : vector<28x128xf32>, vector<128x256xf32>, vector<28x256xf32> -> vector<28x256xf32>
    %c33 = arith.constant 33 : index
    %c0_120 = arith.constant 0 : index
    %107 = vector.load %arg0[%c33, %c0_120] : memref<64x128xf32, #tpu.memory_space<vmem>>, vector<28x128xf32>
    %c128_121 = arith.constant 128 : index
    %c0_122 = arith.constant 0 : index
    %108 = vector.load %arg1[%c128_121, %c0_122] : memref<640x256xf32, #tpu.memory_space<vmem>>, vector<128x256xf32>
    %cst_123 = arith.constant dense<0.000000e+00> : vector<28x256xf32>
    %109 = tpu.matmul %107, %108, %cst_123 {dimension_numbers = #tpu.dot_dimension_numbers<[1], [0], [0], [1], [0, 0, 1, 1], [], []>} : vector<28x128xf32>, vector<128x256xf32>, vector<28x256xf32> -> vector<28x256xf32>
    %110 = arith.addf %106, %109 : vector<28x256xf32>
    %c34 = arith.constant 34 : index
    %c0_124 = arith.constant 0 : index
    %111 = vector.load %arg0[%c34, %c0_124] : memref<64x128xf32, #tpu.memory_space<vmem>>, vector<28x128xf32>
    %c256_125 = arith.constant 256 : index
    %c0_126 = arith.constant 0 : index
    %112 = vector.load %arg1[%c256_125, %c0_126] : memref<640x256xf32, #tpu.memory_space<vmem>>, vector<128x256xf32>
    %cst_127 = arith.constant dense<0.000000e+00> : vector<28x256xf32>
    %113 = tpu.matmul %111, %112, %cst_127 {dimension_numbers = #tpu.dot_dimension_numbers<[1], [0], [0], [1], [0, 0, 1, 1], [], []>} : vector<28x128xf32>, vector<128x256xf32>, vector<28x256xf32> -> vector<28x256xf32>
    %114 = arith.addf %110, %113 : vector<28x256xf32>
    %c35 = arith.constant 35 : index
    %c0_128 = arith.constant 0 : index
    %115 = vector.load %arg0[%c35, %c0_128] : memref<64x128xf32, #tpu.memory_space<vmem>>, vector<28x128xf32>
    %c384_129 = arith.constant 384 : index
    %c0_130 = arith.constant 0 : index
    %116 = vector.load %arg1[%c384_129, %c0_130] : memref<640x256xf32, #tpu.memory_space<vmem>>, vector<128x256xf32>
    %cst_131 = arith.constant dense<0.000000e+00> : vector<28x256xf32>
    %117 = tpu.matmul %115, %116, %cst_131 {dimension_numbers = #tpu.dot_dimension_numbers<[1], [0], [0], [1], [0, 0, 1, 1], [], []>} : vector<28x128xf32>, vector<128x256xf32>, vector<28x256xf32> -> vector<28x256xf32>
    %118 = arith.addf %114, %117 : vector<28x256xf32>
    %c36 = arith.constant 36 : index
    %c0_132 = arith.constant 0 : index
    %119 = vector.load %arg0[%c36, %c0_132] : memref<64x128xf32, #tpu.memory_space<vmem>>, vector<28x128xf32>
    %c512_133 = arith.constant 512 : index
    %c0_134 = arith.constant 0 : index
    %120 = vector.load %arg1[%c512_133, %c0_134] : memref<640x256xf32, #tpu.memory_space<vmem>>, vector<128x256xf32>
    %cst_135 = arith.constant dense<0.000000e+00> : vector<28x256xf32>
    %121 = tpu.matmul %119, %120, %cst_135 {dimension_numbers = #tpu.dot_dimension_numbers<[1], [0], [0], [1], [0, 0, 1, 1], [], []>} : vector<28x128xf32>, vector<128x256xf32>, vector<28x256xf32> -> vector<28x256xf32>
    %122 = arith.addf %118, %121 : vector<28x256xf32>
    %c0_136 = arith.constant 0 : index
    %c0_137 = arith.constant 0 : index
    %123 = vector.load %arg2[%c0_136, %c0_137] : memref<1x256xf32, #tpu.memory_space<vmem>>, vector<1x256xf32>
    %124 = vector.broadcast %123 : vector<1x256xf32> to vector<28x256xf32>
    %125 = arith.addf %122, %124 : vector<28x256xf32>
    %cst_138 = arith.constant 0.000000e+00 : f32
    %126 = vector.broadcast %cst_138 : f32 to vector<28x256xf32>
    %127 = arith.maximumf %125, %126 : vector<28x256xf32>
    %c0_139 = arith.constant 0 : index
    %c0_140 = arith.constant 0 : index
    %128 = vector.load %arg3[%c0_139, %c0_140] : memref<14x28xf32, #tpu.memory_space<vmem>>, vector<14x28xf32>
    %cst_141 = arith.constant dense<0.000000e+00> : vector<14x256xf32>
    %129 = tpu.matmul %128, %127, %cst_141 {dimension_numbers = #tpu.dot_dimension_numbers<[1], [0], [0], [1], [0, 0, 1, 1], [], []>} : vector<14x28xf32>, vector<28x256xf32>, vector<14x256xf32> -> vector<14x256xf32>
    %c0_142 = arith.constant 0 : index
    %c0_143 = arith.constant 0 : index
    %130 = vector.load %arg4[%c0_142, %c0_143] : memref<14x28xf32, #tpu.memory_space<vmem>>, vector<14x28xf32>
    %cst_144 = arith.constant dense<0.000000e+00> : vector<14x256xf32>
    %131 = tpu.matmul %130, %127, %cst_144 {dimension_numbers = #tpu.dot_dimension_numbers<[1], [0], [0], [1], [0, 0, 1, 1], [], []>} : vector<14x28xf32>, vector<28x256xf32>, vector<14x256xf32> -> vector<14x256xf32>
    %c0_145 = arith.constant 0 : index
    %c0_146 = arith.constant 0 : index
    %132 = vector.load %arg5[%c0_145, %c0_146] : memref<256x128xf32, #tpu.memory_space<vmem>>, vector<256x128xf32>
    %cst_147 = arith.constant dense<0.000000e+00> : vector<14x128xf32>
    %133 = tpu.matmul %129, %132, %cst_147 {dimension_numbers = #tpu.dot_dimension_numbers<[1], [0], [0], [1], [0, 0, 1, 1], [], []>} : vector<14x256xf32>, vector<256x128xf32>, vector<14x128xf32> -> vector<14x128xf32>
    %c0_148 = arith.constant 0 : index
    %c0_149 = arith.constant 0 : index
    %134 = vector.load %arg6[%c0_148, %c0_149] : memref<256x128xf32, #tpu.memory_space<vmem>>, vector<256x128xf32>
    %cst_150 = arith.constant dense<0.000000e+00> : vector<14x128xf32>
    %135 = tpu.matmul %129, %134, %cst_150 {dimension_numbers = #tpu.dot_dimension_numbers<[1], [0], [0], [1], [0, 0, 1, 1], [], []>} : vector<14x256xf32>, vector<256x128xf32>, vector<14x128xf32> -> vector<14x128xf32>
    %136 = arith.maximumf %133, %135 : vector<14x128xf32>
    %c0_151 = arith.constant 0 : index
    %c0_152 = arith.constant 0 : index
    %137 = vector.load %arg5[%c0_151, %c0_152] : memref<256x128xf32, #tpu.memory_space<vmem>>, vector<256x128xf32>
    %cst_153 = arith.constant dense<0.000000e+00> : vector<14x128xf32>
    %138 = tpu.matmul %131, %137, %cst_153 {dimension_numbers = #tpu.dot_dimension_numbers<[1], [0], [0], [1], [0, 0, 1, 1], [], []>} : vector<14x256xf32>, vector<256x128xf32>, vector<14x128xf32> -> vector<14x128xf32>
    %c0_154 = arith.constant 0 : index
    %c0_155 = arith.constant 0 : index
    %139 = vector.load %arg6[%c0_154, %c0_155] : memref<256x128xf32, #tpu.memory_space<vmem>>, vector<256x128xf32>
    %cst_156 = arith.constant dense<0.000000e+00> : vector<14x128xf32>
    %140 = tpu.matmul %131, %139, %cst_156 {dimension_numbers = #tpu.dot_dimension_numbers<[1], [0], [0], [1], [0, 0, 1, 1], [], []>} : vector<14x256xf32>, vector<256x128xf32>, vector<14x128xf32> -> vector<14x128xf32>
    %141 = arith.maximumf %138, %140 : vector<14x128xf32>
    %142 = arith.maximumf %136, %141 : vector<14x128xf32>
    %c0_157 = arith.constant 0 : index
    %c0_158 = arith.constant 0 : index
    %143 = vector.load %arg20[%c0_157, %c0_158] : memref<14x128xf32, #tpu.memory_space<vmem>>, vector<14x128xf32>
    tpu.vector_store %arg20[%c0_157, %c0_158], %142 {strides = array<i32>} : memref<14x128xf32, #tpu.memory_space<vmem>>, vector<14x128xf32>,
    %c0_159 = arith.constant 0 : index
    %c0_160 = arith.constant 0 : index
    %144 = vector.load %arg20[%c0_159, %c0_160] : memref<14x128xf32, #tpu.memory_space<vmem>>, vector<10x128xf32>
    %c0_161 = arith.constant 0 : index
    %c0_162 = arith.constant 0 : index
    %145 = vector.load %arg7[%c0_161, %c0_162] : memref<640x256xf32, #tpu.memory_space<vmem>>, vector<128x256xf32>
    %cst_163 = arith.constant dense<0.000000e+00> : vector<10x256xf32>
    %146 = tpu.matmul %144, %145, %cst_163 {dimension_numbers = #tpu.dot_dimension_numbers<[1], [0], [0], [1], [0, 0, 1, 1], [], []>} : vector<10x128xf32>, vector<128x256xf32>, vector<10x256xf32> -> vector<10x256xf32>
    %c1_164 = arith.constant 1 : index
    %c0_165 = arith.constant 0 : index
    %147 = vector.load %arg20[%c1_164, %c0_165] : memref<14x128xf32, #tpu.memory_space<vmem>>, vector<10x128xf32>
    %c128_166 = arith.constant 128 : index
    %c0_167 = arith.constant 0 : index
    %148 = vector.load %arg7[%c128_166, %c0_167] : memref<640x256xf32, #tpu.memory_space<vmem>>, vector<128x256xf32>
    %cst_168 = arith.constant dense<0.000000e+00> : vector<10x256xf32>
    %149 = tpu.matmul %147, %148, %cst_168 {dimension_numbers = #tpu.dot_dimension_numbers<[1], [0], [0], [1], [0, 0, 1, 1], [], []>} : vector<10x128xf32>, vector<128x256xf32>, vector<10x256xf32> -> vector<10x256xf32>
    %150 = arith.addf %146, %149 : vector<10x256xf32>
    %c2_169 = arith.constant 2 : index
    %c0_170 = arith.constant 0 : index
    %151 = vector.load %arg20[%c2_169, %c0_170] : memref<14x128xf32, #tpu.memory_space<vmem>>, vector<10x128xf32>
    %c256_171 = arith.constant 256 : index
    %c0_172 = arith.constant 0 : index
    %152 = vector.load %arg7[%c256_171, %c0_172] : memref<640x256xf32, #tpu.memory_space<vmem>>, vector<128x256xf32>
    %cst_173 = arith.constant dense<0.000000e+00> : vector<10x256xf32>
    %153 = tpu.matmul %151, %152, %cst_173 {dimension_numbers = #tpu.dot_dimension_numbers<[1], [0], [0], [1], [0, 0, 1, 1], [], []>} : vector<10x128xf32>, vector<128x256xf32>, vector<10x256xf32> -> vector<10x256xf32>
    %154 = arith.addf %150, %153 : vector<10x256xf32>
    %c3_174 = arith.constant 3 : index
    %c0_175 = arith.constant 0 : index
    %155 = vector.load %arg20[%c3_174, %c0_175] : memref<14x128xf32, #tpu.memory_space<vmem>>, vector<10x128xf32>
    %c384_176 = arith.constant 384 : index
    %c0_177 = arith.constant 0 : index
    %156 = vector.load %arg7[%c384_176, %c0_177] : memref<640x256xf32, #tpu.memory_space<vmem>>, vector<128x256xf32>
    %cst_178 = arith.constant dense<0.000000e+00> : vector<10x256xf32>
    %157 = tpu.matmul %155, %156, %cst_178 {dimension_numbers = #tpu.dot_dimension_numbers<[1], [0], [0], [1], [0, 0, 1, 1], [], []>} : vector<10x128xf32>, vector<128x256xf32>, vector<10x256xf32> -> vector<10x256xf32>
    %158 = arith.addf %154, %157 : vector<10x256xf32>
    %c4_179 = arith.constant 4 : index
    %c0_180 = arith.constant 0 : index
    %159 = vector.load %arg20[%c4_179, %c0_180] : memref<14x128xf32, #tpu.memory_space<vmem>>, vector<10x128xf32>
    %c512_181 = arith.constant 512 : index
    %c0_182 = arith.constant 0 : index
    %160 = vector.load %arg7[%c512_181, %c0_182] : memref<640x256xf32, #tpu.memory_space<vmem>>, vector<128x256xf32>
    %cst_183 = arith.constant dense<0.000000e+00> : vector<10x256xf32>
    %161 = tpu.matmul %159, %160, %cst_183 {dimension_numbers = #tpu.dot_dimension_numbers<[1], [0], [0], [1], [0, 0, 1, 1], [], []>} : vector<10x128xf32>, vector<128x256xf32>, vector<10x256xf32> -> vector<10x256xf32>
    %162 = arith.addf %158, %161 : vector<10x256xf32>
    %c0_184 = arith.constant 0 : index
    %c0_185 = arith.constant 0 : index
    %163 = vector.load %arg8[%c0_184, %c0_185] : memref<1x256xf32, #tpu.memory_space<vmem>>, vector<1x256xf32>
    %164 = vector.broadcast %163 : vector<1x256xf32> to vector<10x256xf32>
    %165 = arith.addf %162, %164 : vector<10x256xf32>
    %cst_186 = arith.constant 0.000000e+00 : f32
    %166 = vector.broadcast %cst_186 : f32 to vector<10x256xf32>
    %167 = arith.maximumf %165, %166 : vector<10x256xf32>
    %c0_187 = arith.constant 0 : index
    %c0_188 = arith.constant 0 : index
    %168 = vector.load %arg9[%c0_187, %c0_188] : memref<5x10xf32, #tpu.memory_space<vmem>>, vector<5x10xf32>
    %cst_189 = arith.constant dense<0.000000e+00> : vector<5x256xf32>
    %169 = tpu.matmul %168, %167, %cst_189 {dimension_numbers = #tpu.dot_dimension_numbers<[1], [0], [0], [1], [0, 0, 1, 1], [], []>} : vector<5x10xf32>, vector<10x256xf32>, vector<5x256xf32> -> vector<5x256xf32>
    %c0_190 = arith.constant 0 : index
    %c0_191 = arith.constant 0 : index
    %170 = vector.load %arg10[%c0_190, %c0_191] : memref<5x10xf32, #tpu.memory_space<vmem>>, vector<5x10xf32>
    %cst_192 = arith.constant dense<0.000000e+00> : vector<5x256xf32>
    %171 = tpu.matmul %170, %167, %cst_192 {dimension_numbers = #tpu.dot_dimension_numbers<[1], [0], [0], [1], [0, 0, 1, 1], [], []>} : vector<5x10xf32>, vector<10x256xf32>, vector<5x256xf32> -> vector<5x256xf32>
    %c0_193 = arith.constant 0 : index
    %c0_194 = arith.constant 0 : index
    %172 = vector.load %arg11[%c0_193, %c0_194] : memref<256x128xf32, #tpu.memory_space<vmem>>, vector<256x128xf32>
    %cst_195 = arith.constant dense<0.000000e+00> : vector<5x128xf32>
    %173 = tpu.matmul %169, %172, %cst_195 {dimension_numbers = #tpu.dot_dimension_numbers<[1], [0], [0], [1], [0, 0, 1, 1], [], []>} : vector<5x256xf32>, vector<256x128xf32>, vector<5x128xf32> -> vector<5x128xf32>
    %c0_196 = arith.constant 0 : index
    %c0_197 = arith.constant 0 : index
    %174 = vector.load %arg12[%c0_196, %c0_197] : memref<256x128xf32, #tpu.memory_space<vmem>>, vector<256x128xf32>
    %cst_198 = arith.constant dense<0.000000e+00> : vector<5x128xf32>
    %175 = tpu.matmul %169, %174, %cst_198 {dimension_numbers = #tpu.dot_dimension_numbers<[1], [0], [0], [1], [0, 0, 1, 1], [], []>} : vector<5x256xf32>, vector<256x128xf32>, vector<5x128xf32> -> vector<5x128xf32>
    %176 = arith.maximumf %173, %175 : vector<5x128xf32>
    %c0_199 = arith.constant 0 : index
    %c0_200 = arith.constant 0 : index
    %177 = vector.load %arg11[%c0_199, %c0_200] : memref<256x128xf32, #tpu.memory_space<vmem>>, vector<256x128xf32>
    %cst_201 = arith.constant dense<0.000000e+00> : vector<5x128xf32>
    %178 = tpu.matmul %171, %177, %cst_201 {dimension_numbers = #tpu.dot_dimension_numbers<[1], [0], [0], [1], [0, 0, 1, 1], [], []>} : vector<5x256xf32>, vector<256x128xf32>, vector<5x128xf32> -> vector<5x128xf32>
    %c0_202 = arith.constant 0 : index
    %c0_203 = arith.constant 0 : index
    %179 = vector.load %arg12[%c0_202, %c0_203] : memref<256x128xf32, #tpu.memory_space<vmem>>, vector<256x128xf32>
    %cst_204 = arith.constant dense<0.000000e+00> : vector<5x128xf32>
    %180 = tpu.matmul %171, %179, %cst_204 {dimension_numbers = #tpu.dot_dimension_numbers<[1], [0], [0], [1], [0, 0, 1, 1], [], []>} : vector<5x256xf32>, vector<256x128xf32>, vector<5x128xf32> -> vector<5x128xf32>
    %181 = arith.maximumf %178, %180 : vector<5x128xf32>
    %182 = arith.maximumf %176, %181 : vector<5x128xf32>
    %c0_205 = arith.constant 0 : index
    %c0_206 = arith.constant 0 : index
    %183 = vector.load %arg21[%c0_205, %c0_206] : memref<5x128xf32, #tpu.memory_space<vmem>>, vector<5x128xf32>
    tpu.vector_store %arg21[%c0_205, %c0_206], %182 {strides = array<i32>} : memref<5x128xf32, #tpu.memory_space<vmem>>, vector<5x128xf32>,
    %c0_207 = arith.constant 0 : index
    %c0_208 = arith.constant 0 : index
    %184 = vector.load %arg21[%c0_207, %c0_208] : memref<5x128xf32, #tpu.memory_space<vmem>>, vector<1x128xf32>
    %c0_209 = arith.constant 0 : index
    %c0_210 = arith.constant 0 : index
    %185 = vector.load %arg13[%c0_209, %c0_210] : memref<640x128xf32, #tpu.memory_space<vmem>>, vector<128x128xf32>
    %cst_211 = arith.constant dense<0.000000e+00> : vector<1x128xf32>
    %186 = tpu.matmul %184, %185, %cst_211 {dimension_numbers = #tpu.dot_dimension_numbers<[1], [0], [0], [1], [0, 0, 1, 1], [], []>} : vector<1x128xf32>, vector<128x128xf32>, vector<1x128xf32> -> vector<1x128xf32>
    %c1_212 = arith.constant 1 : index
    %c0_213 = arith.constant 0 : index
    %187 = vector.load %arg21[%c1_212, %c0_213] : memref<5x128xf32, #tpu.memory_space<vmem>>, vector<1x128xf32>
    %c128_214 = arith.constant 128 : index
    %c0_215 = arith.constant 0 : index
    %188 = vector.load %arg13[%c128_214, %c0_215] : memref<640x128xf32, #tpu.memory_space<vmem>>, vector<128x128xf32>
    %cst_216 = arith.constant dense<0.000000e+00> : vector<1x128xf32>
    %189 = tpu.matmul %187, %188, %cst_216 {dimension_numbers = #tpu.dot_dimension_numbers<[1], [0], [0], [1], [0, 0, 1, 1], [], []>} : vector<1x128xf32>, vector<128x128xf32>, vector<1x128xf32> -> vector<1x128xf32>
    %190 = arith.addf %186, %189 : vector<1x128xf32>
    %c2_217 = arith.constant 2 : index
    %c0_218 = arith.constant 0 : index
    %191 = vector.load %arg21[%c2_217, %c0_218] : memref<5x128xf32, #tpu.memory_space<vmem>>, vector<1x128xf32>
    %c256_219 = arith.constant 256 : index
    %c0_220 = arith.constant 0 : index
    %192 = vector.load %arg13[%c256_219, %c0_220] : memref<640x128xf32, #tpu.memory_space<vmem>>, vector<128x128xf32>
    %cst_221 = arith.constant dense<0.000000e+00> : vector<1x128xf32>
    %193 = tpu.matmul %191, %192, %cst_221 {dimension_numbers = #tpu.dot_dimension_numbers<[1], [0], [0], [1], [0, 0, 1, 1], [], []>} : vector<1x128xf32>, vector<128x128xf32>, vector<1x128xf32> -> vector<1x128xf32>
    %194 = arith.addf %190, %193 : vector<1x128xf32>
    %c3_222 = arith.constant 3 : index
    %c0_223 = arith.constant 0 : index
    %195 = vector.load %arg21[%c3_222, %c0_223] : memref<5x128xf32, #tpu.memory_space<vmem>>, vector<1x128xf32>
    %c384_224 = arith.constant 384 : index
    %c0_225 = arith.constant 0 : index
    %196 = vector.load %arg13[%c384_224, %c0_225] : memref<640x128xf32, #tpu.memory_space<vmem>>, vector<128x128xf32>
    %cst_226 = arith.constant dense<0.000000e+00> : vector<1x128xf32>
    %197 = tpu.matmul %195, %196, %cst_226 {dimension_numbers = #tpu.dot_dimension_numbers<[1], [0], [0], [1], [0, 0, 1, 1], [], []>} : vector<1x128xf32>, vector<128x128xf32>, vector<1x128xf32> -> vector<1x128xf32>
    %198 = arith.addf %194, %197 : vector<1x128xf32>
    %c4_227 = arith.constant 4 : index
    %c0_228 = arith.constant 0 : index
    %199 = vector.load %arg21[%c4_227, %c0_228] : memref<5x128xf32, #tpu.memory_space<vmem>>, vector<1x128xf32>
    %c512_229 = arith.constant 512 : index
    %c0_230 = arith.constant 0 : index
    %200 = vector.load %arg13[%c512_229, %c0_230] : memref<640x128xf32, #tpu.memory_space<vmem>>, vector<128x128xf32>
    %cst_231 = arith.constant dense<0.000000e+00> : vector<1x128xf32>
    %201 = tpu.matmul %199, %200, %cst_231 {dimension_numbers = #tpu.dot_dimension_numbers<[1], [0], [0], [1], [0, 0, 1, 1], [], []>} : vector<1x128xf32>, vector<128x128xf32>, vector<1x128xf32> -> vector<1x128xf32>
    %202 = arith.addf %198, %201 : vector<1x128xf32>
    %c0_232 = arith.constant 0 : index
    %c0_233 = arith.constant 0 : index
    %203 = vector.load %arg14[%c0_232, %c0_233] : memref<1x128xf32, #tpu.memory_space<vmem>>, vector<1x128xf32>
    %204 = arith.addf %202, %203 : vector<1x128xf32>
    %cst_234 = arith.constant 0.000000e+00 : f32
    %205 = vector.broadcast %cst_234 : f32 to vector<1x128xf32>
    %206 = arith.maximumf %204, %205 : vector<1x128xf32>
    %c1_235 = arith.constant 1 : index
    %c0_236 = arith.constant 0 : index
    %207 = vector.load %arg22[%c1_235, %c0_236] : memref<2x128xf32, #tpu.memory_space<vmem>>, vector<1x128xf32>
    tpu.vector_store %arg22[%c1_235, %c0_236], %206 {strides = array<i32>} : memref<2x128xf32, #tpu.memory_space<vmem>>, vector<1x128xf32>,
    %c0_237 = arith.constant 0 : index
    %c0_238 = arith.constant 0 : index
    %208 = vector.load %arg22[%c0_237, %c0_238] : memref<2x128xf32, #tpu.memory_space<vmem>>, vector<2x128xf32>
    %c0_239 = arith.constant 0 : index
    %c0_240 = arith.constant 0 : index
    %209 = vector.load %arg15[%c0_239, %c0_240] : memref<128x128xf32, #tpu.memory_space<vmem>>, vector<128x128xf32>
    %cst_241 = arith.constant dense<0.000000e+00> : vector<2x128xf32>
    %210 = tpu.matmul %208, %209, %cst_241 {dimension_numbers = #tpu.dot_dimension_numbers<[1], [0], [0], [1], [0, 0, 1, 1], [], []>} : vector<2x128xf32>, vector<128x128xf32>, vector<2x128xf32> -> vector<2x128xf32>
    %c0_242 = arith.constant 0 : index
    %c0_243 = arith.constant 0 : index
    %211 = vector.load %arg16[%c0_242, %c0_243] : memref<1x128xf32, #tpu.memory_space<vmem>>, vector<1x128xf32>
    %212 = vector.broadcast %211 : vector<1x128xf32> to vector<2x128xf32>
    %213 = arith.addf %210, %212 : vector<2x128xf32>
    %cst_244 = arith.constant 0.000000e+00 : f32
    %214 = vector.broadcast %cst_244 : f32 to vector<2x128xf32>
    %215 = arith.maximumf %213, %214 : vector<2x128xf32>
    %c0_245 = arith.constant 0 : index
    %c0_246 = arith.constant 0 : index
    %216 = vector.load %arg17[%c0_245, %c0_246] : memref<128x128xf32, #tpu.memory_space<vmem>>, vector<128x128xf32>
    %cst_247 = arith.constant dense<0.000000e+00> : vector<2x128xf32>
    %217 = tpu.matmul %215, %216, %cst_247 {dimension_numbers = #tpu.dot_dimension_numbers<[1], [0], [0], [1], [0, 0, 1, 1], [], []>} : vector<2x128xf32>, vector<128x128xf32>, vector<2x128xf32> -> vector<2x128xf32>
    %c0_248 = arith.constant 0 : index
    %c0_249 = arith.constant 0 : index
    %218 = vector.load %arg18[%c0_248, %c0_249] : memref<1x128xf32, #tpu.memory_space<vmem>>, vector<1x128xf32>
    %219 = vector.broadcast %218 : vector<1x128xf32> to vector<2x128xf32>
    %220 = arith.addf %217, %219 : vector<2x128xf32>
    %c0_250 = arith.constant 0 : index
    %c0_251 = arith.constant 0 : index
    %221 = vector.load %arg19[%c0_250, %c0_251] : memref<2x128xf32, #tpu.memory_space<vmem>>, vector<2x128xf32>
    tpu.vector_store %arg19[%c0_250, %c0_251], %220 {strides = array<i32>} : memref<2x128xf32, #tpu.memory_space<vmem>>, vector<2x128xf32>,
    return
  }
}

</mosaic_0001>

<bundles_post_ra>
// kernel: net_forward.1
= control target key start
LH: loop header
LB: loop body
LE: loop exit
PB: predicated region body
PF: predicated region fallthrough
CT: control target
= control target key end

     0   :  { %s12924_s0 = inlined_call_operand.vmem [shape: f32[64,128], index: 0, kind: input, shape index: {}]   ;;  %s12925_s1 = inlined_call_operand.vmem [shape: f32[640,256], index: 1, kind: input, shape index: {}]   ;;  %s12926_s2 = inlined_call_operand.vmem [shape: f32[1,256], index: 2, kind: input, shape index: {}]   ;;  %s12927_s3 = inlined_call_operand.vmem [shape: f32[14,28], index: 3, kind: input, shape index: {}]   ;;  %s12928_s4 = inlined_call_operand.vmem [shape: f32[14,28], index: 4, kind: input, shape index: {}]   ;;  %s12929_s5 = inlined_call_operand.vmem [shape: f32[256,128], index: 5, kind: input, shape index: {}]   ;;  %s12930_s6 = inlined_call_operand.vmem [shape: f32[256,128], index: 6, kind: input, shape index: {}]   ;;  %s12931_s7 = inlined_call_operand.vmem [shape: f32[640,256], index: 7, kind: input, shape index: {}]   ;;  %s12932_s8 = inlined_call_operand.vmem [shape: f32[1,256], index: 8, kind: input, shape index: {}]   ;;  %s12933_s9 = inlined_call_operand.vmem [shape: f32[5,10], index: 9, kind: input, shape index: {}]   ;;  %s12934_s10 = inlined_call_operand.vmem [shape: f32[5,10], index: 10, kind: input, shape index: {}]   ;;  %s12935_s11 = inlined_call_operand.vmem [shape: f32[256,128], index: 11, kind: input, shape index: {}]   ;;  %s12936_s12 = inlined_call_operand.vmem [shape: f32[256,128], index: 12, kind: input, shape index: {}]   ;;  %s12937_s13 = inlined_call_operand.vmem [shape: f32[640,128], index: 13, kind: input, shape index: {}]   ;;  %s12938_s14 = inlined_call_operand.vmem [shape: f32[1,128], index: 14, kind: input, shape index: {}]   ;;  %s12939_s15 = inlined_call_operand.vmem [shape: f32[128,128], index: 15, kind: input, shape index: {}]   ;;  %s12940_s16 = inlined_call_operand.vmem [shape: f32[1,128], index: 16, kind: input, shape index: {}]   ;;  %s12941_s17 = inlined_call_operand.vmem [shape: f32[128,128], index: 17, kind: input, shape index: {}]   ;;  %s12942_s18 = inlined_call_operand.vmem [shape: f32[1,128], index: 18, kind: input, shape index: {}]   ;;  %s12943_s19 = inlined_call_operand.hbm [shape: f32[2,128], index: 19, kind: output, shape index: {}]  }
   0x1   :  { %12948 = sst [smem:[#allocation8_spill]] %s12924_s0 }
   0x2   :  { %12949 = sst [smem:[#allocation9_spill]] %s12925_s1 }
   0x3   :  { %12950 = sst [smem:[#allocation10_spill]] %s12926_s2 }
   0x4   :  { %12951 = sst [smem:[#allocation11_spill]] %s12927_s3 }
   0x5   :  { %s12952_s20 = sld [smem:[#allocation9_spill]]  ;;  %v8653_v7 = vmov 0.0   ;;  %s12953_s25 = sld [smem:[#allocation8_spill]] }
   0x6   :  { %199 = vmatprep.mubr.f32.mxu0 %v8653_v7  ;;  %905 = vmatprep.mubr.f32.mxu1 %v8653_v7 }
   0xb   :  { %v104_v0 = vld [vmem:[%s12952_s20 + $0x108] sm:$0xff]  ;;  %v106_v1 = vld [vmem:[%s12952_s20 + $0x118] sm:$0xff]  ;;  %v103_v2 = vld [vmem:[%s12952_s20 + $0x100] sm:$0xff] }
   0xc   :  { %v7024_v3 = vpack.c.bf16 %v106_v1, %v104_v0  ;;  %v105_v4 = vld [vmem:[%s12952_s20 + $0x110] sm:$0xff]  ;;  %v108_v5 = vld [vmem:[%s12952_s20 + $0x128] sm:$0xff]  ;;  %v110_v6 = vld [vmem:[%s12952_s20 + $0x138] sm:$0xff] }
   0xd   :  { %v7026_v8 = vpack.c.bf16 %v105_v4, %v103_v2  ;;  %v7028_v9 = vpack.c.bf16 %v110_v6, %v108_v5  ;;  %v107_v10 = vld [vmem:[%s12952_s20 + $0x120] sm:$0xff]  ;;  %v109_v11 = vld [vmem:[%s12952_s20 + $0x130] sm:$0xff]  ;;  %v112_v12 = vld [vmem:[%s12952_s20 + $0x148] sm:$0xff] }
   0xe   :  { %7025 = vmatprep.subr.bf16.mxu0 %v7024_v3  ;;  %v114_v13 = vld [vmem:[%s12952_s20 + $0x158] sm:$0xff]  ;;  %v7030_v14 = vpack.c.bf16 %v109_v11, %v107_v10  ;;  %v111_v16 = vld [vmem:[%s12952_s20 + $0x140] sm:$0xff]  ;;  %v113_v17 = vld [vmem:[%s12952_s20 + $0x150] sm:$0xff] }
   0xf   :  { %7027 = vmatpush1.bf16.msra.mxu0 %v7026_v8  ;;  %v7032_v15 = vpack.c.bf16 %v114_v13, %v112_v12  ;;  %v116_v18 = vld [vmem:[%s12952_s20 + $0x168] sm:$0xff]  ;;  %v118_v19 = vld [vmem:[%s12952_s20 + $0x178] sm:$0xff]  ;;  %v7034_v20 = vpack.c.bf16 %v113_v17, %v111_v16  ;;  %v115_v22 = vld [vmem:[%s12952_s20 + $0x160] sm:$0xff] }
  0x10   :  { %7029 = vmatprep.subr.bf16.mxu0 %v7028_v9  ;;  %v7036_v21 = vpack.c.bf16 %v118_v19, %v116_v18  ;;  %v117_v23 = vld [vmem:[%s12952_s20 + $0x170] sm:$0xff]  ;;  %v120_v24 = vld [vmem:[%s12952_s20 + $0x188] sm:$0xff]  ;;  %v122_v25 = vld [vmem:[%s12952_s20 + $0x198] sm:$0xff] }
  0x11   :  { %v7038_v26 = vpack.c.bf16 %v117_v23, %v115_v22  ;;  %v7040_v27 = vpack.c.bf16 %v122_v25, %v120_v24  ;;  %v119_v28 = vld [vmem:[%s12952_s20 + $0x180] sm:$0xff]  ;;  %v121_v29 = vld [vmem:[%s12952_s20 + $0x190] sm:$0xff]  ;;  %v124_v30 = vld [vmem:[%s12952_s20 + $0x1a8] sm:$0xff] }
  0x12   :  { %v126_v31 = vld [vmem:[%s12952_s20 + $0x1b8] sm:$0xff]  ;;  %v7042_v32 = vpack.c.bf16 %v121_v29, %v119_v28  ;;  %v123_v34 = vld [vmem:[%s12952_s20 + $0x1a0] sm:$0xff]  ;;  %v125_v35 = vld [vmem:[%s12952_s20 + $0x1b0] sm:$0xff] }
  0x13   :  { %7031 = vmatpush1.bf16.msra.mxu0 %v7030_v14  ;;  %v7044_v33 = vpack.c.bf16 %v126_v31, %v124_v30  ;;  %v128_v36 = vld [vmem:[%s12952_s20 + $0x1c8] sm:$0xff]  ;;  %v130_v37 = vld [vmem:[%s12952_s20 + $0x1d8] sm:$0xff]  ;;  %v7046_v38 = vpack.c.bf16 %v125_v35, %v123_v34  ;;  %v127_v40 = vld [vmem:[%s12952_s20 + $0x1c0] sm:$0xff] }
  0x14   :  { %7033 = vmatprep.subr.bf16.mxu0 %v7032_v15  ;;  %v7048_v39 = vpack.c.bf16 %v130_v37, %v128_v36  ;;  %v129_v41 = vld [vmem:[%s12952_s20 + $0x1d0] sm:$0xff]  ;;  %v132_v42 = vld [vmem:[%s12952_s20 + $0x1e8] sm:$0xff]  ;;  %v134_v43 = vld [vmem:[%s12952_s20 + $0x1f8] sm:$0xff] }
  0x15   :  { %v7050_v44 = vpack.c.bf16 %v129_v41, %v127_v40  ;;  %v7052_v45 = vpack.c.bf16 %v134_v43, %v132_v42  ;;  %v131_v46 = vld [vmem:[%s12952_s20 + $0x1e0] sm:$0xff]  ;;  %v133_v47 = vld [vmem:[%s12952_s20 + $0x1f0] sm:$0xff]  ;;  %v68_v48 = vld [vmem:[%s12952_s20 + $0x8] sm:$0xff] }
  0x16   :  { %v70_v49 = vld [vmem:[%s12952_s20 + $0x18] sm:$0xff]  ;;  %v7054_v50 = vpack.c.bf16 %v133_v47, %v131_v46  ;;  %v67_v52 = vld [vmem:[%s12952_s20] sm:$0xff]  ;;  %v69_v53 = vld [vmem:[%s12952_s20 + $0x10] sm:$0xff] }
  0x17   :  { %7035 = vmatpush1.bf16.msra.mxu0 %v7034_v20  ;;  %v7056_v51 = vpack.c.bf16 %v70_v49, %v68_v48  ;;  %v72_v54 = vld [vmem:[%s12952_s20 + $0x28] sm:$0xff]  ;;  %v74_v55 = vld [vmem:[%s12952_s20 + $0x38] sm:$0xff]  ;;  %v7058_v57 = vpack.c.bf16 %v69_v53, %v67_v52  ;;  %v71_v59 = vld [vmem:[%s12952_s20 + $0x20] sm:$0xff] }
  0x18   :  { %7037 = vmatprep.subr.bf16.mxu0 %v7036_v21  ;;  %v99_v56 = vld [vmem:[%s12953_s25 + $0x1] sm:$0xff]  ;;  %v7060_v58 = vpack.c.bf16 %v74_v55, %v72_v54  ;;  %v73_v60 = vld [vmem:[%s12952_s20 + $0x30] sm:$0xff]  ;;  %v78_v62 = vld [vmem:[%s12952_s20 + $0x58] sm:$0xff] }
  0x19   :  { %v76_v61 = vld [vmem:[%s12952_s20 + $0x48] sm:$0xff]  ;;  %v7062_v63 = vpack.c.bf16 %v73_v60, %v71_v59  ;;  %v75_v2 = vld [vmem:[%s12952_s20 + $0x40] sm:$0xff]  ;;  %v77_v3 = vld [vmem:[%s12952_s20 + $0x50] sm:$0xff] }
  0x1a   :  { %v100_v0 = vld [vmem:[%s12953_s25 + $0x9] sm:$0xff]  ;;  %v7064_v1 = vpack.c.bf16 %v78_v62, %v76_v61  ;;  %v82_v5 = vld [vmem:[%s12952_s20 + $0x78] sm:$0xff]  ;;  %v7066_v6 = vpack.c.bf16 %v77_v3, %v75_v2  ;;  %v79_v10 = vld [vmem:[%s12952_s20 + $0x60] sm:$0xff] }
  0x1b   :  { %7039 = vmatpush1.bf16.msra.mxu0 %v7038_v26  ;;  %v80_v4 = vld [vmem:[%s12952_s20 + $0x68] sm:$0xff]  ;;  %v101_v8 = vld [vmem:[%s12953_s25 + $0x11] sm:$0xff]  ;;  %v102_v15 = vld [vmem:[%s12953_s25 + $0x19] sm:$0xf] }
  0x1c   :  { %7041 = vmatprep.subr.bf16.mxu0 %v7040_v27  ;;  %v7068_v9 = vpack.c.bf16 %v82_v5, %v80_v4  ;;  %v81_v11 = vld [vmem:[%s12952_s20 + $0x70] sm:$0xff]  ;;  %v84_v12 = vld [vmem:[%s12952_s20 + $0x88] sm:$0xff]  ;;  %v86_v13 = vld [vmem:[%s12952_s20 + $0x98] sm:$0xff] }
  0x1d   :  { %v7070_v14 = vpack.c.bf16 %v81_v11, %v79_v10  ;;  %v7072_v16 = vpack.c.bf16 %v86_v13, %v84_v12  ;;  %v83_v17 = vld [vmem:[%s12952_s20 + $0x80] sm:$0xff]  ;;  %v85_v18 = vld [vmem:[%s12952_s20 + $0x90] sm:$0xff]  ;;  %v88_v19 = vld [vmem:[%s12952_s20 + $0xa8] sm:$0xff] }
  0x1e   :  { %v90_v20 = vld [vmem:[%s12952_s20 + $0xb8] sm:$0xff]  ;;  %v7074_v21 = vpack.c.bf16 %v85_v18, %v83_v17  ;;  %v87_v23 = vld [vmem:[%s12952_s20 + $0xa0] sm:$0xff]  ;;  %v89_v24 = vld [vmem:[%s12952_s20 + $0xb0] sm:$0xff] }
  0x1f   :  { %7043 = vmatpush1.bf16.msra.mxu0 %v7042_v32  ;;  %v7076_v22 = vpack.c.bf16 %v90_v20, %v88_v19  ;;  %v92_v25 = vld [vmem:[%s12952_s20 + $0xc8] sm:$0xff]  ;;  %v94_v26 = vld [vmem:[%s12952_s20 + $0xd8] sm:$0xff]  ;;  %v7078_v27 = vpack.c.bf16 %v89_v24, %v87_v23  ;;  %v91_v29 = vld [vmem:[%s12952_s20 + $0xc0] sm:$0xff] }
  0x20   :  { %7045 = vmatprep.subr.bf16.mxu0 %v7044_v33  ;;  %v7080_v28 = vpack.c.bf16 %v94_v26, %v92_v25  ;;  %v93_v30 = vld [vmem:[%s12952_s20 + $0xd0] sm:$0xff]  ;;  %v96_v31 = vld [vmem:[%s12952_s20 + $0xe8] sm:$0xff]  ;;  %v98_v32 = vld [vmem:[%s12952_s20 + $0xf8] sm:$0xff] }
  0x21   :  { %v7082_v33 = vpack.c.bf16 %v93_v30, %v91_v29  ;;  %v7084_v34 = vpack.c.bf16 %v98_v32, %v96_v31  ;;  %v95_v35 = vld [vmem:[%s12952_s20 + $0xe0] sm:$0xff]  ;;  %v97_v36 = vld [vmem:[%s12952_s20 + $0xf0] sm:$0xff]  ;;  %v318_v37 = vld [vmem:[%s12952_s20 + $0x208] sm:$0xff] }
  0x23   :  { %7047 = vmatpush1.bf16.msra.mxu0 %v7046_v38  ;;  %v320_v38 = vld [vmem:[%s12952_s20 + $0x218] sm:$0xff] }
  0x24   :  { %7049 = vmatprep.subr.bf16.mxu0 %v7048_v39  ;;  %v7086_v39 = vpack.c.bf16 %v97_v36, %v95_v35 }
  0x27   :  { %7051 = vmatpush1.bf16.msra.mxu0 %v7050_v44 }
  0x28   :  { %7053 = vmatprep.subr.bf16.mxu0 %v7052_v45 }
  0x2b   :  { %7055 = vmatpush1.bf16.msra.mxu0 %v7054_v50 }
  0x2c   :  { %7057 = vmatprep.subr.bf16.mxu0 %v7056_v51 }
  0x2e   :  { %200 = vmatmul.mubr.f32.vlgmr.msra.gmra.mrb[0].mxu0 %v99_v56 }
  0x2f   :  { %7059 = vmatpush1.bf16.msra.mxu0 %v7058_v57  ;;  %205 = vmatprep.mubr.f32.mxu0 %v8653_v7 }
  0x30   :  { %7061 = vmatprep.subr.bf16.mxu0 %v7060_v58 }
  0x32   :  { %206 = vmatmul.mubr.f32.gmra.mrb[2].mxu0 %v100_v0 }
  0x33   :  { %7063 = vmatpush1.bf16.msra.mxu0 %v7062_v63  ;;  %211 = vmatprep.mubr.f32.mxu0 %v8653_v7 }
  0x34   :  { %7065 = vmatprep.subr.bf16.mxu0 %v7064_v1 }
  0x36   :  { %212 = vmatmul.mubr.f32.gmra.mrb[4].mxu0 %v101_v8 }
  0x37   :  { %7067 = vmatpush1.bf16.msra.mxu0 %v7066_v6  ;;  %217 = vmatprep.mubr.f32.mxu0 %v8653_v7 }
  0x38   :  { %7069 = vmatprep.subr.bf16.mxu0 %v7068_v9 }
  0x3a   :  { %218 = vmatmul.mubr.f32.gmra.mrb[6].mxu0 %v102_v15 }
  0x3b   :  { %7071 = vmatpush1.bf16.msra.mxu0 %v7070_v14  ;;  %288 = vmatprep.mubr.f32.mxu0 %v8653_v7 }
  0x3c   :  { %7073 = vmatprep.subr.bf16.mxu0 %v7072_v16 }
  0x3f   :  { %7075 = vmatpush1.bf16.msra.mxu0 %v7074_v21 }
  0x40   :  { %7077 = vmatprep.subr.bf16.mxu0 %v7076_v22 }
  0x43   :  { %7079 = vmatpush1.bf16.msra.mxu0 %v7078_v27 }
  0x44   :  { %7081 = vmatprep.subr.bf16.mxu0 %v7080_v28 }
  0x47   :  { %7083 = vmatpush1.bf16.msra.mxu0 %v7082_v33 }
  0x48   :  { %24 = vsyncpa [#allocation6], 0  ;;  %7085 = vmatprep.subr.bf16.mxu0 %v7084_v34  ;;  %v7088_v40 = vpack.c.bf16 %v320_v38, %v318_v37  ;;  %v317_v41 = vld [vmem:[%s12952_s20 + $0x200] sm:$0xff]  ;;  %v319_v42 = vld [vmem:[%s12952_s20 + $0x210] sm:$0xff]  ;;  %s12954_s23 = sld [smem:[#allocation10_spill]]  ;;  %vm749_vm0 = vcmask 1043456  }
  0x49   :  { %v322_v43 = vld [vmem:[%s12952_s20 + $0x228] sm:$0xff]  ;;  %v324_v44 = vld [vmem:[%s12952_s20 + $0x238] sm:$0xff]  ;;  %v63_v45 = vld [vmem:[%s12953_s25] sm:$0xff]  ;;  %v7090_v46 = vpack.c.bf16 %v319_v42, %v317_v41  ;;  %vm8654_vm1 = vmmov 1   ;;  %s12957_s26 = sld [smem:[#allocation11_spill]]  ;;  %vm742_vm3 = vcmask 228352  }
  0x4a   :  { %v7092_v47 = vpack.c.bf16 %v324_v44, %v322_v43  ;;  %v321_v48 = vld [vmem:[%s12952_s20 + $0x220] sm:$0xff]  ;;  %v323_v49 = vld [vmem:[%s12952_s20 + $0x230] sm:$0xff]  ;;  %v326_v50 = vld [vmem:[%s12952_s20 + $0x248] sm:$0xff]  ;;  %vm1882_vm4 = vcmask 1041408   ;;  %vm1878_vm6 = vcmask 80896   ;;  %vm8656_vm7 = vmmov 0  }
  0x4b   :  { %7087 = vmatpush1.bf16.msra.mxu0 %v7086_v39  ;;  %v328_v51 = vld [vmem:[%s12952_s20 + $0x258] sm:$0xff]  ;;  %v7094_v52 = vpack.c.bf16 %v323_v49, %v321_v48  ;;  %v64_v53 = vld [vmem:[%s12953_s25 + $0x8] sm:$0xff]  ;;  %v325_v55 = vld [vmem:[%s12952_s20 + $0x240] sm:$0xff] }
  0x4c   :  { %7089 = vmatprep.subr.bf16.mxu0 %v7088_v40  ;;  %v7096_v54 = vpack.c.bf16 %v328_v51, %v326_v50  ;;  %v327_v56 = vld [vmem:[%s12952_s20 + $0x250] sm:$0xff]  ;;  %v330_v57 = vld [vmem:[%s12952_s20 + $0x268] sm:$0xff]  ;;  %v332_v58 = vld [vmem:[%s12952_s20 + $0x278] sm:$0xff] }
  0x4d   :  { %v7098_v59 = vpack.c.bf16 %v327_v56, %v325_v55  ;;  %v65_v60 = vld [vmem:[%s12953_s25 + $0x10] sm:$0xff]  ;;  %v7100_v61 = vpack.c.bf16 %v332_v58, %v330_v57  ;;  %v329_v62 = vld [vmem:[%s12952_s20 + $0x260] sm:$0xff]  ;;  %v334_v0 = vld [vmem:[%s12952_s20 + $0x288] sm:$0xff] }
  0x4e   :  { %289 = vmatmul.mubr.f32.vlgmr.msra.gmra.mrb[0].mxu0 %v63_v45  ;;  %v331_v63 = vld [vmem:[%s12952_s20 + $0x270] sm:$0xff]  ;;  %v336_v1 = vld [vmem:[%s12952_s20 + $0x298] sm:$0xff]  ;;  %v333_v5 = vld [vmem:[%s12952_s20 + $0x280] sm:$0xff] }
  0x4f   :  { %7091 = vmatpush1.bf16.msra.mxu0 %v7090_v46  ;;  %294 = vmatprep.mubr.f32.mxu0 %v8653_v7  ;;  %v7102_v2 = vpack.c.bf16 %v331_v63, %v329_v62  ;;  %v66_v3 = vld [vmem:[%s12953_s25 + $0x18] sm:$0xf]  ;;  %v7104_v4 = vpack.c.bf16 %v336_v1, %v334_v0  ;;  %v335_v6 = vld [vmem:[%s12952_s20 + $0x290] sm:$0xff]  ;;  %v338_v8 = vld [vmem:[%s12952_s20 + $0x2a8] sm:$0xff] }
  0x50   :  { %7093 = vmatprep.subr.bf16.mxu0 %v7092_v47  ;;  %v340_v9 = vld [vmem:[%s12952_s20 + $0x2b8] sm:$0xff]  ;;  %v7106_v10 = vpack.c.bf16 %v335_v6, %v333_v5  ;;  %v337_v12 = vld [vmem:[%s12952_s20 + $0x2a0] sm:$0xff]  ;;  %v339_v13 = vld [vmem:[%s12952_s20 + $0x2b0] sm:$0xff] }
  0x51   :  { %v7108_v11 = vpack.c.bf16 %v340_v9, %v338_v8  ;;  %v342_v14 = vld [vmem:[%s12952_s20 + $0x2c8] sm:$0xff]  ;;  %v344_v15 = vld [vmem:[%s12952_s20 + $0x2d8] sm:$0xff]  ;;  %v7110_v16 = vpack.c.bf16 %v339_v13, %v337_v12  ;;  %v341_v18 = vld [vmem:[%s12952_s20 + $0x2c0] sm:$0xff] }
  0x52   :  { %295 = vmatmul.mubr.f32.gmra.mrb[2].mxu0 %v64_v53  ;;  %v7112_v17 = vpack.c.bf16 %v344_v15, %v342_v14  ;;  %v343_v19 = vld [vmem:[%s12952_s20 + $0x2d0] sm:$0xff]  ;;  %v346_v20 = vld [vmem:[%s12952_s20 + $0x2e8] sm:$0xff]  ;;  %v348_v21 = vld [vmem:[%s12952_s20 + $0x2f8] sm:$0xff] }
  0x53   :  { %7095 = vmatpush1.bf16.msra.mxu0 %v7094_v52  ;;  %300 = vmatprep.mubr.f32.mxu0 %v8653_v7  ;;  %v7114_v22 = vpack.c.bf16 %v343_v19, %v341_v18  ;;  %v7116_v23 = vpack.c.bf16 %v348_v21, %v346_v20  ;;  %v345_v24 = vld [vmem:[%s12952_s20 + $0x2e0] sm:$0xff]  ;;  %v347_v25 = vld [vmem:[%s12952_s20 + $0x2f0] sm:$0xff]  ;;  %v451_v26 = vld [vmem:[%s12952_s20 + $0x308] sm:$0xff] }
  0x54   :  { %7097 = vmatprep.subr.bf16.mxu0 %v7096_v54  ;;  %v453_v27 = vld [vmem:[%s12952_s20 + $0x318] sm:$0xff]  ;;  %v7118_v28 = vpack.c.bf16 %v347_v25, %v345_v24  ;;  %v450_v30 = vld [vmem:[%s12952_s20 + $0x300] sm:$0xff]  ;;  %v452_v31 = vld [vmem:[%s12952_s20 + $0x310] sm:$0xff] }
  0x55   :  { %v7120_v29 = vpack.c.bf16 %v453_v27, %v451_v26  ;;  %v455_v32 = vld [vmem:[%s12952_s20 + $0x328] sm:$0xff]  ;;  %v457_v33 = vld [vmem:[%s12952_s20 + $0x338] sm:$0xff]  ;;  %v7122_v35 = vpack.c.bf16 %v452_v31, %v450_v30  ;;  %v454_v37 = vld [vmem:[%s12952_s20 + $0x320] sm:$0xff] }
  0x56   :  { %301 = vmatmul.mubr.f32.gmra.mrb[4].mxu0 %v65_v60  ;;  %v313_v34 = vld [vmem:[%s12953_s25 + $0x2] sm:$0xff]  ;;  %v7124_v36 = vpack.c.bf16 %v457_v33, %v455_v32  ;;  %v456_v38 = vld [vmem:[%s12952_s20 + $0x330] sm:$0xff]  ;;  %v461_v40 = vld [vmem:[%s12952_s20 + $0x358] sm:$0xff] }
  0x57   :  { %7099 = vmatpush1.bf16.msra.mxu0 %v7098_v59  ;;  %306 = vmatprep.mubr.f32.mxu0 %v8653_v7  ;;  %v459_v39 = vld [vmem:[%s12952_s20 + $0x348] sm:$0xff]  ;;  %v7126_v41 = vpack.c.bf16 %v456_v38, %v454_v37  ;;  %v458_v44 = vld [vmem:[%s12952_s20 + $0x340] sm:$0xff]  ;;  %v460_v45 = vld [vmem:[%s12952_s20 + $0x350] sm:$0xff] }
  0x58   :  { %7101 = vmatprep.subr.bf16.mxu0 %v7100_v61  ;;  %v314_v42 = vld [vmem:[%s12953_s25 + $0xa] sm:$0xff]  ;;  %v7128_v43 = vpack.c.bf16 %v461_v40, %v459_v39  ;;  %v465_v47 = vld [vmem:[%s12952_s20 + $0x378] sm:$0xff]  ;;  %v7130_v48 = vpack.c.bf16 %v460_v45, %v458_v44  ;;  %v462_v51 = vld [vmem:[%s12952_s20 + $0x360] sm:$0xff] }
  0x59   :  { %v463_v46 = vld [vmem:[%s12952_s20 + $0x368] sm:$0xff]  ;;  %v315_v49 = vld [vmem:[%s12953_s25 + $0x12] sm:$0xff]  ;;  %v316_v56 = vld [vmem:[%s12953_s25 + $0x1a] sm:$0xf] }
  0x5a   :  { %307 = vmatmul.mubr.f32.gmra.mrb[6].mxu0 %v66_v3  ;;  %v7132_v50 = vpack.c.bf16 %v465_v47, %v463_v46  ;;  %v464_v52 = vld [vmem:[%s12952_s20 + $0x370] sm:$0xff]  ;;  %v467_v53 = vld [vmem:[%s12952_s20 + $0x388] sm:$0xff]  ;;  %v469_v54 = vld [vmem:[%s12952_s20 + $0x398] sm:$0xff] }
  0x5b   :  { %7103 = vmatpush1.bf16.msra.mxu0 %v7102_v2  ;;  %413 = vmatprep.mubr.f32.mxu0 %v8653_v7  ;;  %v7134_v55 = vpack.c.bf16 %v464_v52, %v462_v51  ;;  %v7136_v57 = vpack.c.bf16 %v469_v54, %v467_v53  ;;  %v466_v58 = vld [vmem:[%s12952_s20 + $0x380] sm:$0xff]  ;;  %v468_v59 = vld [vmem:[%s12952_s20 + $0x390] sm:$0xff]  ;;  %v471_v60 = vld [vmem:[%s12952_s20 + $0x3a8] sm:$0xff] }
  0x5c   :  { %7105 = vmatprep.subr.bf16.mxu0 %v7104_v4  ;;  %v473_v61 = vld [vmem:[%s12952_s20 + $0x3b8] sm:$0xff]  ;;  %v7138_v62 = vpack.c.bf16 %v468_v59, %v466_v58  ;;  %v470_v0 = vld [vmem:[%s12952_s20 + $0x3a0] sm:$0xff]  ;;  %v472_v1 = vld [vmem:[%s12952_s20 + $0x3b0] sm:$0xff] }
  0x5d   :  { %v7140_v63 = vpack.c.bf16 %v473_v61, %v471_v60  ;;  %v475_v2 = vld [vmem:[%s12952_s20 + $0x3c8] sm:$0xff]  ;;  %v477_v3 = vld [vmem:[%s12952_s20 + $0x3d8] sm:$0xff]  ;;  %v7142_v4 = vpack.c.bf16 %v472_v1, %v470_v0  ;;  %v474_v6 = vld [vmem:[%s12952_s20 + $0x3c0] sm:$0xff] }
  0x5e   :  { %v7144_v5 = vpack.c.bf16 %v477_v3, %v475_v2  ;;  %v476_v8 = vld [vmem:[%s12952_s20 + $0x3d0] sm:$0xff]  ;;  %v479_v9 = vld [vmem:[%s12952_s20 + $0x3e8] sm:$0xff]  ;;  %v478_v13 = vld [vmem:[%s12952_s20 + $0x3e0] sm:$0xff] }
  0x5f   :  { %7107 = vmatpush1.bf16.msra.mxu0 %v7106_v10  ;;  %v481_v10 = vld [vmem:[%s12952_s20 + $0x3f8] sm:$0xff]  ;;  %v480_v14 = vld [vmem:[%s12952_s20 + $0x3f0] sm:$0xff]  ;;  %v584_v15 = vld [vmem:[%s12952_s20 + $0x408] sm:$0xff] }
  0x60   :  { %7109 = vmatprep.subr.bf16.mxu0 %v7108_v11  ;;  %v7146_v11 = vpack.c.bf16 %v476_v8, %v474_v6  ;;  %v7148_v12 = vpack.c.bf16 %v481_v10, %v479_v9  ;;  %v583_v19 = vld [vmem:[%s12952_s20 + $0x400] sm:$0xff]  ;;  %v585_v20 = vld [vmem:[%s12952_s20 + $0x410] sm:$0xff]  ;;  %v588_v21 = vld [vmem:[%s12952_s20 + $0x428] sm:$0xff]  ;;  %v714_v9 = vlaneseq }
  0x61   :  { %v7154_v24 = vpack.c.bf16 %v585_v20, %v583_v19  ;;  %v587_v26 = vld [vmem:[%s12952_s20 + $0x420] sm:$0xff]  ;;  %v589_v27 = vld [vmem:[%s12952_s20 + $0x430] sm:$0xff]  ;;  %v449_v45 = vld [vmem:[%s12953_s25 + $0x1b] sm:$0xf] }
  0x62   :  { %v7158_v30 = vpack.c.bf16 %v589_v27, %v587_v26  ;;  %v447_v31 = vld [vmem:[%s12953_s25 + $0xb] sm:$0xff]  ;;  %v591_v33 = vld [vmem:[%s12952_s20 + $0x440] sm:$0xff]  ;;  %v448_v38 = vld [vmem:[%s12953_s25 + $0x13] sm:$0xff]  ;;  %v715_v10 = vshrl.u32 %v714_v9, 7 }
  0x63   :  { %7111 = vmatpush1.bf16.msra.mxu0 %v7110_v16  ;;  %v586_v16 = vld [vmem:[%s12952_s20 + $0x418] sm:$0xff]  ;;  %v595_v40 = vld [vmem:[%s12952_s20 + $0x460] sm:$0xff]  ;;  %v605_v54 = vld [vmem:[%s12952_s20 + $0x4b0] sm:$0xff] }
  0x64   :  { %7113 = vmatprep.subr.bf16.mxu0 %v7112_v17  ;;  %v7150_v17 = vpack.c.bf16 %v480_v14, %v478_v13  ;;  %v7152_v18 = vpack.c.bf16 %v586_v16, %v584_v15  ;;  %v599_v47 = vld [vmem:[%s12952_s20 + $0x480] sm:$0xff]  ;;  %v609_v60 = vld [vmem:[%s12952_s20 + $0x4d0] sm:$0xff]  ;;  %v612_v61 = vld [vmem:[%s12952_s20 + $0x4e8] sm:$0xff]  ;;  %v9325_v13 = vsub.s32 1, %v715_v10 }
  0x65   :  { %v603_v53 = vld [vmem:[%s12952_s20 + $0x4a0] sm:$0xff]  ;;  %v613_v2 = vld [vmem:[%s12952_s20 + $0x4f0] sm:$0xff]  ;;  %v582_v8 = vld [vmem:[%s12953_s25 + $0x1c] sm:$0xf] }
  0x66   :  { %v607_v59 = vld [vmem:[%s12952_s20 + $0x4c0] sm:$0xff]  ;;  %v581_v6 = vld [vmem:[%s12953_s25 + $0x14] sm:$0xff]  ;;  %vm9336_vm2 = vmpackc.low %vm749_vm0, %vm8654_vm1 }
  0x67   :  { %7115 = vmatpush1.bf16.msra.mxu0 %v7114_v22  ;;  %v590_v22 = vld [vmem:[%s12952_s20 + $0x438] sm:$0xff]  ;;  %v611_v1 = vld [vmem:[%s12952_s20 + $0x4e0] sm:$0xff]  ;;  %vm10169_vm5 = vmpackc.low %vm1882_vm4, %vm8654_vm1 }
  0x68   :  { %7117 = vmatprep.subr.bf16.mxu0 %v7116_v23  ;;  %v446_v23 = vld [vmem:[%s12953_s25 + $0x3] sm:$0xff]  ;;  %v7156_v25 = vpack.c.bf16 %v590_v22, %v588_v21  ;;  %v7182_v3 = vpack.c.bf16 %v613_v2, %v611_v1  ;;  %v940_v2 = vld [vmem:[%s12929_s5 + $0xb0] sm:$0xff] }
  0x69   :  { %v923_v1 = vld [vmem:[%s12929_s5 + $0x28] sm:$0xff]  ;;  %v942_v9 = vld [vmem:[%s12929_s5 + $0xc0] sm:$0xff] }
  0x6b   :  { %7119 = vmatpush1.bf16.msra.mxu0 %v7118_v28  ;;  %v592_v28 = vld [vmem:[%s12952_s20 + $0x448] sm:$0xff] }
  0x6c   :  { %7121 = vmatprep.subr.bf16.mxu0 %v7120_v29  ;;  %v594_v29 = vld [vmem:[%s12952_s20 + $0x458] sm:$0xff] }
  0x6d   :  { %v7160_v32 = vpack.c.bf16 %v594_v29, %v592_v28 }
  0x6e   :  { %414 = vmatmul.mubr.f32.vlgmr.msra.gmra.mrb[0].mxu0 %v313_v34  ;;  %v593_v34 = vld [vmem:[%s12952_s20 + $0x450] sm:$0xff] }
  0x6f   :  { %7123 = vmatpush1.bf16.msra.mxu0 %v7122_v35  ;;  %419 = vmatprep.mubr.f32.mxu0 %v8653_v7  ;;  %v596_v35 = vld [vmem:[%s12952_s20 + $0x468] sm:$0xff]  ;;  %v7162_v37 = vpack.c.bf16 %v593_v34, %v591_v33 }
  0x70   :  { %7125 = vmatprep.subr.bf16.mxu0 %v7124_v36  ;;  %v598_v36 = vld [vmem:[%s12952_s20 + $0x478] sm:$0xff] }
  0x71   :  { %v7164_v39 = vpack.c.bf16 %v598_v36, %v596_v35 }
  0x72   :  { %420 = vmatmul.mubr.f32.gmra.mrb[2].mxu0 %v314_v42  ;;  %v600_v42 = vld [vmem:[%s12952_s20 + $0x488] sm:$0xff] }
  0x73   :  { %7127 = vmatpush1.bf16.msra.mxu0 %v7126_v41  ;;  %425 = vmatprep.mubr.f32.mxu0 %v8653_v7  ;;  %v597_v41 = vld [vmem:[%s12952_s20 + $0x470] sm:$0xff] }
  0x74   :  { %7129 = vmatprep.subr.bf16.mxu0 %v7128_v43  ;;  %v602_v43 = vld [vmem:[%s12952_s20 + $0x498] sm:$0xff]  ;;  %v7166_v44 = vpack.c.bf16 %v597_v41, %v595_v40  ;;  %v934_v40 = vld [vmem:[%s12929_s5 + $0x80] sm:$0xff]  ;;  %v935_v41 = vld [vmem:[%s12929_s5 + $0x88] sm:$0xff] }
  0x75   :  { %v7168_v46 = vpack.c.bf16 %v602_v43, %v600_v42 }
  0x76   :  { %426 = vmatmul.mubr.f32.gmra.mrb[4].mxu0 %v315_v49  ;;  %v604_v49 = vld [vmem:[%s12952_s20 + $0x4a8] sm:$0xff] }
  0x77   :  { %7131 = vmatpush1.bf16.msra.mxu0 %v7130_v48  ;;  %431 = vmatprep.mubr.f32.mxu0 %v8653_v7  ;;  %v601_v48 = vld [vmem:[%s12952_s20 + $0x490] sm:$0xff] }
  0x78   :  { %7133 = vmatprep.subr.bf16.mxu0 %v7132_v50  ;;  %v606_v50 = vld [vmem:[%s12952_s20 + $0x4b8] sm:$0xff]  ;;  %v7170_v51 = vpack.c.bf16 %v601_v48, %v599_v47  ;;  %v9340_v47 = vpack.c.bf16 %v935_v41, %v934_v40  ;;  %v918_v48 = vld [vmem:[%s12929_s5] sm:$0xff]  ;;  %v1026_v40 = vld [vmem:[%s12930_s6 + $0x8] sm:$0xff] }
  0x79   :  { %v7172_v52 = vpack.c.bf16 %v606_v50, %v604_v49  ;;  %v919_v49 = vld [vmem:[%s12929_s5 + $0x8] sm:$0xff]  ;;  %v936_v50 = vld [vmem:[%s12929_s5 + $0x90] sm:$0xff] }
  0x7a   :  { %432 = vmatmul.mubr.f32.gmra.mrb[6].mxu0 %v316_v56  ;;  %v610_v56 = vld [vmem:[%s12952_s20 + $0x4d8] sm:$0xff]  ;;  %v1043_v41 = vld [vmem:[%s12930_s6 + $0x90] sm:$0xff] }
  0x7b   :  { %7135 = vmatpush1.bf16.msra.mxu0 %v7134_v55  ;;  %546 = vmatprep.mubr.f32.mxu0 %v8653_v7  ;;  %v608_v55 = vld [vmem:[%s12952_s20 + $0x4c8] sm:$0xff] }
  0x7c   :  { %7137 = vmatprep.subr.bf16.mxu0 %v7136_v57  ;;  %v7174_v57 = vpack.c.bf16 %v605_v54, %v603_v53  ;;  %v7176_v58 = vpack.c.bf16 %v610_v56, %v608_v55  ;;  %v833_v53 = vld [vmem:[%s12928_s4] sm:$0xff]  ;;  %v9369_v54 = vpack.c.bf16 %v919_v49, %v918_v48  ;;  %v920_v56 = vld [vmem:[%s12929_s5 + $0x10] sm:$0xff] }
  0x7f   :  { %7139 = vmatpush1.bf16.msra.mxu0 %v7138_v62  ;;  %v614_v62 = vld [vmem:[%s12952_s20 + $0x4f8] sm:$0xff] }
  0x80   :  { %7141 = vmatprep.subr.bf16.mxu0 %v7140_v63  ;;  %v7178_v63 = vpack.c.bf16 %v609_v60, %v607_v59  ;;  %v7180_v0 = vpack.c.bf16 %v614_v62, %v612_v61  ;;  %v939_v59 = vld [vmem:[%s12929_s5 + $0xa8] sm:$0xff] }
  0x81   :  { %v741_v60 = vld [vmem:[%s12957_s26 + $0x8] sm:$0x3f] }
  0x82   :  { %v834_v61 = vld [vmem:[%s12928_s4 + $0x8] sm:$0x3f] }
  0x83   :  { %7143 = vmatpush1.bf16.msra.mxu0 %v7142_v4  ;;  %v579_v4 = vld [vmem:[%s12953_s25 + $0x4] sm:$0xff] }
  0x84   :  { %7145 = vmatprep.subr.bf16.mxu0 %v7144_v5  ;;  %v580_v5 = vld [vmem:[%s12953_s25 + $0xc] sm:$0xff] }
  0x87   :  { %7147 = vmatpush1.bf16.msra.mxu0 %v7146_v11  ;;  %v9320_v11 = vsub.s32 0, %v715_v10  ;;  %v943_v10 = vld [vmem:[%s12929_s5 + $0xc8] sm:$0xff] }
  0x88   :  { %7149 = vmatprep.subr.bf16.mxu0 %v7148_v12  ;;  %v712_v12 = vld [vmem:[%s12954_s23] sm:$0x3] }
  0x89   :  { %v717_v14 = vrot.slane %v712_v12, %v9320_v11  ;;  %v721_v16 = vrot.slane %v712_v12, %v9325_v13 }
  0x8b   :  { %7151 = vmatpush1.bf16.msra.mxu0 %v7150_v17 }
  0x8c   :  { %7153 = vmatprep.subr.bf16.mxu0 %v7152_v18 }
  0x8e   :  { %547 = vmatmul.mubr.f32.vlgmr.msra.gmra.mrb[0].mxu0 %v446_v23 }
  0x8f   :  { %7155 = vmatpush1.bf16.msra.mxu0 %v7154_v24  ;;  %552 = vmatprep.mubr.f32.mxu0 %v8653_v7 }
  0x90   :  { %7157 = vmatprep.subr.bf16.mxu0 %v7156_v25 }
  0x92   :  { %553 = vmatmul.mubr.f32.gmra.mrb[2].mxu0 %v447_v31 }
  0x93   :  { %7159 = vmatpush1.bf16.msra.mxu0 %v7158_v30  ;;  %558 = vmatprep.mubr.f32.mxu0 %v8653_v7 }
  0x94   :  { %7161 = vmatprep.subr.bf16.mxu0 %v7160_v32 }
  0x96   :  { %559 = vmatmul.mubr.f32.gmra.mrb[4].mxu0 %v448_v38 }
  0x97   :  { %7163 = vmatpush1.bf16.msra.mxu0 %v7162_v37  ;;  %564 = vmatprep.mubr.f32.mxu0 %v8653_v7 }
  0x98   :  { %7165 = vmatprep.subr.bf16.mxu0 %v7164_v39 }
  0x9a   :  { %565 = vmatmul.mubr.f32.gmra.mrb[6].mxu0 %v449_v45  ;;  %v3681_v45 = vld [vmem:[%s12929_s5 + $0x18] sm:$0xff] }
  0x9b   :  { %7167 = vmatpush1.bf16.msra.mxu0 %v7166_v44  ;;  %679 = vmatprep.mubr.f32.mxu0 %v8653_v7 }
  0x9c   :  { %7169 = vmatprep.subr.bf16.mxu0 %v7168_v46 }
  0x9f   :  { %7171 = vmatpush1.bf16.msra.mxu0 %v7170_v51  ;;  %v937_v51 = vld [vmem:[%s12929_s5 + $0x98] sm:$0xff] }
  0xa0   :  { %7173 = vmatprep.subr.bf16.mxu0 %v7172_v52  ;;  %v740_v52 = vld [vmem:[%s12957_s26] sm:$0xff]  ;;  %v9371_v55 = vpack.c.bf16 %v937_v51, %v936_v50  ;;  %v1027_v50 = vld [vmem:[%s12930_s6 + $0x10] sm:$0xff]  ;;  %v1028_v51 = vld [vmem:[%s12930_s6 + $0x18] sm:$0xff] }
  0xa3   :  { %7175 = vmatpush1.bf16.msra.mxu0 %v7174_v57  ;;  %v921_v57 = vld [vmem:[%s12929_s5 + $0x18] sm:$0xff] }
  0xa4   :  { %7177 = vmatprep.subr.bf16.mxu0 %v7176_v58  ;;  %v938_v58 = vld [vmem:[%s12929_s5 + $0xa0] sm:$0xff]  ;;  %v9396_v62 = vpack.c.bf16 %v921_v57, %v920_v56  ;;  %v1046_v56 = vld [vmem:[%s12930_s6 + $0xa8] sm:$0xff] }
  0xa7   :  { %7179 = vmatpush1.bf16.msra.mxu0 %v7178_v63  ;;  %v9399_v63 = vpack.c.bf16 %v939_v59, %v938_v58  ;;  %v9550_v58 = vpack.c.bf16 %v1028_v51, %v1027_v50 }
  0xa8   :  { %7181 = vmatprep.subr.bf16.mxu0 %v7180_v0  ;;  %v922_v0 = vld [vmem:[%s12929_s5 + $0x20] sm:$0xff] }
  0xab   :  { %7183 = vmatpush1.bf16.msra.mxu0 %v7182_v3  ;;  %v941_v3 = vld [vmem:[%s12929_s5 + $0xb8] sm:$0xff] }
  0xae   :  { %680 = vmatmul.mubr.f32.vlgmr.msra.gmra.mrb[0].mxu0 %v579_v4  ;;  %v9417_v4 = vpack.c.bf16 %v923_v1, %v922_v0  ;;  %v1029_v0 = vld [vmem:[%s12930_s6 + $0x20] sm:$0xff]  ;;  %v1030_v1 = vld [vmem:[%s12930_s6 + $0x28] sm:$0xff] }
  0xaf   :  { %685 = vmatprep.mubr.f32.mxu0 %v8653_v7 }
  0xb2   :  { %686 = vmatmul.mubr.f32.gmra.mrb[2].mxu0 %v580_v5  ;;  %v9420_v5 = vpack.c.bf16 %v941_v3, %v940_v2  ;;  %v1047_v3 = vld [vmem:[%s12930_s6 + $0xb0] sm:$0xff] }
  0xb3   :  { %691 = vmatprep.mubr.f32.mxu0 %v8653_v7 }
  0xb6   :  { %692 = vmatmul.mubr.f32.gmra.mrb[4].mxu0 %v581_v6  ;;  %v924_v6 = vld [vmem:[%s12929_s5 + $0x30] sm:$0xff] }
  0xb7   :  { %697 = vmatprep.mubr.f32.mxu0 %v8653_v7 }
  0xba   :  { %698 = vmatmul.mubr.f32.gmra.mrb[6].mxu0 %v582_v8  ;;  %v925_v8 = vld [vmem:[%s12929_s5 + $0x38] sm:$0xff] }
  0xbb   :  { %820 = vmatprep.mubr.f32.mxu0 %v8653_v7  ;;  %v9435_v12 = vpack.c.bf16 %v925_v8, %v924_v6  ;;  %v1048_v6 = vld [vmem:[%s12930_s6 + $0xb8] sm:$0xff]  ;;  %v9572_v8 = vpack.c.bf16 %v1030_v1, %v1029_v0  ;;  %v1342_v1 = vld [vmem:[%s12931_s7 + $0x180] sm:$0xff] }
 0x181   :  { %v681_v15 = vpop.f32.mrb[0].mxu0 }
 0x182   :  { %v683_v17 = vpop.f32.mrb[1].mxu0  ;;  %v724_v18 = vadd.f32 %v717_v14, %v681_v15  ;;  %v926_v15 = vld [vmem:[%s12929_s5 + $0x40] sm:$0xff] }
 0x183   :  { %v725_v19 = vadd.f32 %v721_v16, %v683_v17  ;;  %v944_v17 = vld [vmem:[%s12929_s5 + $0xd0] sm:$0xff] }
 0x184   :  { %v732_v24 = vmax.f32 %v724_v18, 0.0  ;;  %v945_v18 = vld [vmem:[%s12929_s5 + $0xd8] sm:$0xff] }
 0x185   :  { %v687_v20 = vpop.f32.mrb[2].mxu0  ;;  %v733_v26 = vmax.f32 %v725_v19, 0.0 }
 0x186   :  { %v726_v21 = vadd.f32 %v717_v14, %v687_v20  ;;  %v689_v22 = vpop.f32.mrb[3].mxu0  ;;  %v9456_v20 = vpack.c.bf16 %v945_v18, %v944_v17  ;;  %v1050_v17 = vld [vmem:[%s12930_s6 + $0xc8] sm:$0xff] }
 0x187   :  { %v727_v23 = vadd.f32 %v721_v16, %v689_v22  ;;  %v929_v22 = vld [vmem:[%s12929_s5 + $0x58] sm:$0xff] }
 0x188   :  { %v734_v25 = vmax.f32 %v726_v21, 0.0  ;;  %v928_v21 = vld [vmem:[%s12929_s5 + $0x50] sm:$0xff] }
 0x189   :  { %v735_v27 = vmax.f32 %v727_v23, 0.0  ;;  %v693_v28 = vpop.f32.mrb[4].mxu0  ;;  %v946_v23 = vld [vmem:[%s12929_s5 + $0xe0] sm:$0xff] }
 0x18a   :  { %v7186_v29 = vpack.c.bf16 %v734_v25, %v732_v24  ;;  %v695_v30 = vpop.f32.mrb[5].mxu0  ;;  %v728_v32 = vadd.f32 %v717_v14, %v693_v28  ;;  %v947_v24 = vld [vmem:[%s12929_s5 + $0xe8] sm:$0xff]  ;;  %v9471_v25 = vpack.c.bf16 %v929_v22, %v928_v21  ;;  %v1033_v22 = vld [vmem:[%s12930_s6 + $0x40] sm:$0xff] }
 0x18b   :  { %v7184_v31 = vpack.c.bf16 %v735_v27, %v733_v26  ;;  %v729_v33 = vadd.f32 %v721_v16, %v695_v30  ;;  %v9474_v26 = vpack.c.bf16 %v947_v24, %v946_v23  ;;  %v930_v27 = vld [vmem:[%s12929_s5 + $0x60] sm:$0xff]  ;;  %v931_v28 = vld [vmem:[%s12929_s5 + $0x68] sm:$0xff]  ;;  %v949_v30 = vld [vmem:[%s12929_s5 + $0xf8] sm:$0xff] }
 0x18c   :  { %v736_v38 = vmax.f32 %v728_v32, 0.0  ;;  %v1034_v23 = vld [vmem:[%s12930_s6 + $0x48] sm:$0xff]  ;;  %v1051_v24 = vld [vmem:[%s12930_s6 + $0xd0] sm:$0xff] }
 0x18d   :  { %v699_v34 = vpop.f32.mrb[6].mxu0  ;;  %7185 = vmatprep.subr.bf16.mxu0 %v7184_v31  ;;  %7195 = vmatprep.subr.bf16.mxu1 %v7184_v31  ;;  %v737_v42 = vmax.f32 %v729_v33, 0.0  ;;  %v9489_v31 = vpack.c.bf16 %v931_v28, %v930_v27  ;;  %v932_v33 = vld [vmem:[%s12929_s5 + $0x70] sm:$0xff]  ;;  %v1052_v27 = vld [vmem:[%s12930_s6 + $0xd8] sm:$0xff]  ;;  %v7254_v28 = vpack.c.bf16 %v1034_v23, %v1033_v22  ;;  %v1350_v22 = vld [vmem:[%s12931_s7 + $0x1c0] sm:$0xff] }
 0x18e   :  { %v730_v35 = vadd.f32 %v717_v14, %v699_v34  ;;  %v701_v36 = vpop.f32.mrb[7].mxu0  ;;  %7187 = vmatpush1.bf16.msra.mxu0 %v7186_v29  ;;  %7197 = vmatpush1.bf16.msra.mxu1 %v7186_v29  ;;  %v9438_v14 = vpack.c.bf16 %v943_v10, %v942_v9  ;;  %v948_v29 = vld [vmem:[%s12929_s5 + $0xf0] sm:$0xff]  ;;  %v933_v34 = vld [vmem:[%s12929_s5 + $0x78] sm:$0xff]  ;;  %v9575_v9 = vpack.c.bf16 %v1048_v6, %v1047_v3  ;;  %v1347_v6 = vld [vmem:[%s12931_s7 + $0x1a8] sm:$0xff] }
 0x18f   :  { %v731_v37 = vadd.f32 %v721_v16, %v701_v36  ;;  %v927_v16 = vld [vmem:[%s12929_s5 + $0x48] sm:$0xff]  ;;  %v9492_v32 = vpack.c.bf16 %v949_v30, %v948_v29  ;;  %v1041_v36 = vld [vmem:[%s12930_s6 + $0x80] sm:$0xff]  ;;  %v1031_v10 = vld [vmem:[%s12930_s6 + $0x30] sm:$0xff]  ;;  %v7256_v29 = vpack.c.bf16 %v1052_v27, %v1051_v24 }
 0x190   :  { %v738_v39 = vmax.f32 %v730_v35, 0.0  ;;  %v9453_v19 = vpack.c.bf16 %v927_v16, %v926_v15  ;;  %v9501_v35 = vpack.c.bf16 %v933_v34, %v932_v33  ;;  %v1032_v15 = vld [vmem:[%s12930_s6 + $0x38] sm:$0xff]  ;;  %v1049_v16 = vld [vmem:[%s12930_s6 + $0xc0] sm:$0xff]  ;;  %v1035_v30 = vld [vmem:[%s12930_s6 + $0x50] sm:$0xff] }
 0x191   :  { %v739_v43 = vmax.f32 %v731_v37, 0.0  ;;  %v1042_v37 = vld [vmem:[%s12930_s6 + $0x88] sm:$0xff]  ;;  %v9590_v18 = vpack.c.bf16 %v1032_v15, %v1031_v10  ;;  %v7252_v21 = vpack.c.bf16 %v1050_v17, %v1049_v16  ;;  %v1036_v33 = vld [vmem:[%s12930_s6 + $0x58] sm:$0xff]  ;;  %v1053_v34 = vld [vmem:[%s12930_s6 + $0xe0] sm:$0xff] }
 0x192   :  { %v7191_v44 = vpack.c.bf16 %v738_v39, %v736_v38  ;;  %v9511_v38 = vpack.c.bf16 %v1042_v37, %v1041_v36  ;;  %v1025_v39 = vld [vmem:[%s12930_s6] sm:$0xff]  ;;  %v1054_v36 = vld [vmem:[%s12930_s6 + $0xe8] sm:$0xff]  ;;  %v7258_v37 = vpack.c.bf16 %v1036_v33, %v1035_v30  ;;  %v1348_v15 = vld [vmem:[%s12931_s7 + $0x1b0] sm:$0xff] }
 0x193   :  { %v7188_v46 = vpack.c.bf16 %v739_v43, %v737_v42  ;;  %v1044_v42 = vld [vmem:[%s12930_s6 + $0x98] sm:$0xff]  ;;  %v1346_v10 = vld [vmem:[%s12931_s7 + $0x1a0] sm:$0xff]  ;;  %v1351_v17 = vld [vmem:[%s12931_s7 + $0x1c8] sm:$0xff] }
 0x194   :  { %v9532_v49 = vpack.c.bf16 %v1044_v42, %v1043_v41  ;;  %v1038_v41 = vld [vmem:[%s12930_s6 + $0x68] sm:$0xff]  ;;  %v1055_v42 = vld [vmem:[%s12930_s6 + $0xf0] sm:$0xff]  ;;  %v7354_v16 = vpack.c.bf16 %v1348_v15, %v1346_v10  ;;  %v1300_v15 = vld [vmem:[%s12931_s7 + $0x40] sm:$0xff] }
 0x195   :  { %7190 = vmatprep.subr.msk.bf16.mxu0 %vm9336_vm2, %v7188_v46  ;;  %7200 = vmatprep.subr.msk.bf16.mxu1 %vm9336_vm2, %v7188_v46  ;;  %v1352_v23 = vld [vmem:[%s12931_s7 + $0x1d0] sm:$0xff]  ;;  %v1355_v27 = vld [vmem:[%s12931_s7 + $0x1e8] sm:$0xff] }
 0x196   :  { %7193 = vmatpush1.bf16.msk.msra.mxu0 %vm9336_vm2, %v7191_v44  ;;  %7203 = vmatpush1.bf16.msk.msra.mxu1 %vm9336_vm2, %v7191_v44  ;;  %v9528_v44 = vpack.c.bf16 %v1026_v40, %v1025_v39  ;;  %v7260_v39 = vpack.c.bf16 %v1054_v36, %v1053_v34  ;;  %v1037_v40 = vld [vmem:[%s12930_s6 + $0x60] sm:$0xff]  ;;  %v7358_v24 = vpack.c.bf16 %v1352_v23, %v1350_v22  ;;  %v1356_v33 = vld [vmem:[%s12931_s7 + $0x1f0] sm:$0xff]  ;;  %v1293_v34 = vld [vmem:[%s12931_s7 + $0x8] sm:$0xff] }
 0x197   :  { %7205 = vmatprep.subr.bf16.mxu1 %v9340_v47  ;;  %v7262_v50 = vpack.c.bf16 %v1038_v41, %v1037_v40  ;;  %v1295_v36 = vld [vmem:[%s12931_s7 + $0x18] sm:$0xff] }
 0x199   :  { %5788 = vmatmul.mubr.msk.f32.vlgmr.msra.gmra.mrb[8].mxu0 %vm742_vm3, %v740_v52  ;;  %5792 = vmatmul.mubr.msk.f32.vlgmr.msra.gmra.mrb[0].mxu1 %vm742_vm3, %v833_v53  ;;  %v1045_v53 = vld [vmem:[%s12930_s6 + $0xa0] sm:$0xff] }
 0x19a   :  { %826 = vmatprep.mubr.f32.mxu0 %v8653_v7  ;;  %911 = vmatprep.mubr.f32.mxu1 %v8653_v7 }
 0x19b   :  { %7207 = vmatpush3.bf16.msra.mxu1 %v9369_v54 }
 0x19c   :  { %7209 = vmatprep.subr.bf16.mxu1 %v9371_v55 }
 0x19d   :  { %5789 = vmatmul.mubr.msk.f32.gmra.mrb[10].mxu0 %vm742_vm3, %v741_v60  ;;  %5793 = vmatmul.mubr.msk.f32.gmra.mrb[2].mxu1 %vm742_vm3, %v834_v61  ;;  %v9555_v61 = vpack.c.bf16 %v1046_v56, %v1045_v53  ;;  %v1039_v53 = vld [vmem:[%s12930_s6 + $0x70] sm:$0xff]  ;;  %v1040_v56 = vld [vmem:[%s12930_s6 + $0x78] sm:$0xff] }
 0x19e   :  { %1953 = vmatprep.mubr.f32.mxu0 %v8653_v7  ;;  %v7266_v0 = vpack.c.bf16 %v1040_v56, %v1039_v53 }
 0x19f   :  { %7211 = vmatpush3.bf16.msra.mxu1 %v9396_v62 }
 0x1a0   :  { %7213 = vmatprep.subr.bf16.mxu1 %v9399_v63 }
 0x1a3   :  { %7215 = vmatpush3.bf16.msra.mxu1 %v9417_v4 }
 0x1a4   :  { %7217 = vmatprep.subr.bf16.mxu1 %v9420_v5 }
 0x1a7   :  { %7219 = vmatpush3.bf16.msra.mxu1 %v9435_v12 }
 0x1a8   :  { %7221 = vmatprep.subr.bf16.mxu1 %v9438_v14 }
 0x1ab   :  { %7223 = vmatpush3.bf16.msra.mxu1 %v9453_v19 }
 0x1ac   :  { %7225 = vmatprep.subr.bf16.mxu1 %v9456_v20 }
 0x1af   :  { %7227 = vmatpush3.bf16.msra.mxu1 %v9471_v25 }
 0x1b0   :  { %7229 = vmatprep.subr.bf16.mxu1 %v9474_v26 }
 0x1b3   :  { %7231 = vmatpush3.bf16.msra.mxu1 %v9489_v31 }
 0x1b4   :  { %7233 = vmatprep.subr.bf16.mxu1 %v9492_v32 }
 0x1b7   :  { %7235 = vmatpush3.bf16.msra.mxu1 %v9501_v35 }
 0x1b8   :  { %7237 = vmatprep.subr.bf16.mxu1 %v9511_v38 }
 0x26c   :  { %v9526_v43 = vpop.f32.mrb[8].mxu0  ;;  %v9530_v46 = vpop.f32.mrb[0].mxu1 }
 0x26d   :  { %v824_v48 = vpop.f32.mrb[9].mxu0  ;;  %v9540_v52 = vpop.f32.mrb[1].mxu1 }
 0x26e   :  { %1014 = vmatprep.mubr.f32.mxu1 %v824_v48 }
 0x26f   :  { %1015 = vmatmul.mubr.f32.vlgmr.msra.gmra.mrb[4].mxu1 %v9526_v43 }
 0x270   :  { %7239 = vmatpush3.bf16.msra.mxu1 %v9528_v44  ;;  %v828_v57 = vpop.f32.mrb[10].mxu0  ;;  %v9552_v59 = vpop.f32.mrb[2].mxu1 }
 0x271   :  { %v830_v60 = vpop.f32.mrb[11].mxu0  ;;  %7241 = vmatprep.subr.bf16.mxu1 %v9532_v49  ;;  %v9563_v2 = vpop.f32.mrb[3].mxu1 }
 0x272   :  { %1019 = vmatprep.mubr.f32.mxu1 %v830_v60 }
 0x273   :  { %1020 = vmatmul.mubr.f32.gmra.mrb[6].mxu1 %v828_v57 }
 0x274   :  { %7243 = vmatpush3.bf16.msra.mxu1 %v9550_v58  ;;  %1121 = vmatprep.mubr.f32.mxu1 %v824_v48  ;;  %v1056_v48 = vld [vmem:[%s12930_s6 + $0xf8] sm:$0xff] }
 0x275   :  { %7245 = vmatprep.subr.bf16.mxu1 %v9555_v61  ;;  %v7264_v51 = vpack.c.bf16 %v1056_v48, %v1055_v42 }
 0x278   :  { %7247 = vmatpush3.bf16.msra.mxu1 %v9572_v8 }
 0x279   :  { %7249 = vmatprep.subr.bf16.mxu1 %v9575_v9 }
 0x27c   :  { %7251 = vmatpush3.bf16.msra.mxu1 %v9590_v18 }
 0x27d   :  { %7253 = vmatprep.subr.bf16.mxu1 %v7252_v21 }
 0x280   :  { %7255 = vmatpush3.bf16.msra.mxu1 %v7254_v28 }
 0x281   :  { %7257 = vmatprep.subr.bf16.mxu1 %v7256_v29 }
 0x284   :  { %7259 = vmatpush3.bf16.msra.mxu1 %v7258_v37 }
 0x285   :  { %7261 = vmatprep.subr.bf16.mxu1 %v7260_v39 }
 0x288   :  { %7263 = vmatpush3.bf16.msra.mxu1 %v7262_v50 }
 0x289   :  { %7265 = vmatprep.subr.bf16.mxu1 %v7264_v51 }
 0x28c   :  { %7267 = vmatpush3.bf16.msra.mxu1 %v7266_v0 }
 0x28d   :  { %7269 = vmatprep.subr.bf16.mxu1 %v9340_v47  ;;  %v1327_v47 = vld [vmem:[%s12931_s7 + $0x108] sm:$0xff] }
 0x28f   :  { %1122 = vmatmul.mubr.f32.vlgmr.msra.gmra.mrb[8].mxu1 %v9526_v43  ;;  %v1339_v43 = vld [vmem:[%s12931_s7 + $0x168] sm:$0xff] }
 0x290   :  { %1126 = vmatprep.mubr.f32.mxu1 %v830_v60  ;;  %7271 = vmatpush3.bf16.msra.mxu1 %v9369_v54  ;;  %v1329_v54 = vld [vmem:[%s12931_s7 + $0x118] sm:$0xff] }
 0x291   :  { %7273 = vmatprep.subr.bf16.mxu1 %v9371_v55  ;;  %v1326_v55 = vld [vmem:[%s12931_s7 + $0x100] sm:$0xff]  ;;  %v1345_v60 = vld [vmem:[%s12931_s7 + $0x198] sm:$0xff] }
 0x293   :  { %1127 = vmatmul.mubr.f32.gmra.mrb[10].mxu1 %v828_v57  ;;  %v1340_v57 = vld [vmem:[%s12931_s7 + $0x170] sm:$0xff] }
 0x294   :  { %7275 = vmatpush3.bf16.msra.mxu1 %v9396_v62  ;;  %1198 = vmatprep.mubr.f32.mxu1 %v9540_v52  ;;  %v7332_v62 = vpack.c.bf16 %v1329_v54, %v1327_v47 }
 0x295   :  { %7277 = vmatprep.subr.bf16.mxu1 %v9399_v63  ;;  %v1328_v63 = vld [vmem:[%s12931_s7 + $0x110] sm:$0xff] }
 0x298   :  { %7279 = vmatpush3.bf16.msra.mxu1 %v9417_v4  ;;  %v1331_v4 = vld [vmem:[%s12931_s7 + $0x128] sm:$0xff] }
 0x299   :  { %7281 = vmatprep.subr.bf16.mxu1 %v9420_v5  ;;  %v1333_v5 = vld [vmem:[%s12931_s7 + $0x138] sm:$0xff] }
 0x29c   :  { %7283 = vmatpush3.bf16.msra.mxu1 %v9435_v12  ;;  %v7334_v12 = vpack.c.bf16 %v1328_v63, %v1326_v55 }
 0x29d   :  { %7285 = vmatprep.subr.bf16.mxu1 %v9438_v14  ;;  %v7336_v14 = vpack.c.bf16 %v1333_v5, %v1331_v4 }
 0x2a0   :  { %7287 = vmatpush3.bf16.msra.mxu1 %v9453_v19  ;;  %v1330_v19 = vld [vmem:[%s12931_s7 + $0x120] sm:$0xff] }
 0x2a1   :  { %7289 = vmatprep.subr.bf16.mxu1 %v9456_v20  ;;  %v1332_v20 = vld [vmem:[%s12931_s7 + $0x130] sm:$0xff] }
 0x2a4   :  { %7291 = vmatpush3.bf16.msra.mxu1 %v9471_v25  ;;  %v7338_v25 = vpack.c.bf16 %v1332_v20, %v1330_v19 }
 0x2a5   :  { %7293 = vmatprep.subr.bf16.mxu1 %v9474_v26  ;;  %v1335_v26 = vld [vmem:[%s12931_s7 + $0x148] sm:$0xff] }
 0x2a8   :  { %7295 = vmatpush3.bf16.msra.mxu1 %v9489_v31  ;;  %v1337_v31 = vld [vmem:[%s12931_s7 + $0x158] sm:$0xff] }
 0x2a9   :  { %7297 = vmatprep.subr.bf16.mxu1 %v9492_v32  ;;  %v7340_v32 = vpack.c.bf16 %v1337_v31, %v1335_v26 }
 0x2ac   :  { %7299 = vmatpush3.bf16.msra.mxu1 %v9501_v35  ;;  %v1334_v35 = vld [vmem:[%s12931_s7 + $0x140] sm:$0xff] }
 0x2ad   :  { %7301 = vmatprep.subr.bf16.mxu1 %v9511_v38  ;;  %v1336_v38 = vld [vmem:[%s12931_s7 + $0x150] sm:$0xff] }
 0x2af   :  { %1199 = vmatmul.mubr.f32.vlgmr.msra.gmra.mrb[12].mxu1 %v9530_v46 }
 0x2b0   :  { %7303 = vmatpush3.bf16.msra.mxu1 %v9528_v44  ;;  %1203 = vmatprep.mubr.f32.mxu1 %v9563_v2  ;;  %v1341_v44 = vld [vmem:[%s12931_s7 + $0x178] sm:$0xff] }
 0x2b1   :  { %7305 = vmatprep.subr.bf16.mxu1 %v9532_v49  ;;  %v7344_v49 = vpack.c.bf16 %v1341_v44, %v1339_v43 }
 0x2b3   :  { %1204 = vmatmul.mubr.f32.gmra.mrb[14].mxu1 %v9552_v59 }
 0x2b4   :  { %7307 = vmatpush3.bf16.msra.mxu1 %v9550_v58  ;;  %1273 = vmatprep.mubr.f32.mxu1 %v9540_v52  ;;  %v1338_v52 = vld [vmem:[%s12931_s7 + $0x160] sm:$0xff] }
 0x2b5   :  { %7309 = vmatprep.subr.bf16.mxu1 %v9555_v61  ;;  %v7346_v58 = vpack.c.bf16 %v1340_v57, %v1338_v52  ;;  %v1292_v52 = vld [vmem:[%s12931_s7] sm:$0xff]  ;;  %v1294_v57 = vld [vmem:[%s12931_s7 + $0x10] sm:$0xff] }
 0x2b8   :  { %7311 = vmatpush3.bf16.msra.mxu1 %v9572_v8  ;;  %v1349_v8 = vld [vmem:[%s12931_s7 + $0x1b8] sm:$0xff] }
 0x2b9   :  { %7313 = vmatprep.subr.bf16.mxu1 %v9575_v9  ;;  %v7352_v9 = vpack.c.bf16 %v1349_v8, %v1347_v6  ;;  %v1301_v6 = vld [vmem:[%s12931_s7 + $0x48] sm:$0xff]  ;;  %v1303_v8 = vld [vmem:[%s12931_s7 + $0x58] sm:$0xff] }
 0x2ba   :  { %v7372_v10 = vpack.c.bf16 %v1303_v8, %v1301_v6  ;;  %v1526_v6 = vld [vmem:[%s12931_s7 + $0x260] sm:$0xff]  ;;  %v1528_v8 = vld [vmem:[%s12931_s7 + $0x270] sm:$0xff] }
 0x2bc   :  { %7315 = vmatpush3.bf16.msra.mxu1 %v9590_v18  ;;  %v1353_v18 = vld [vmem:[%s12931_s7 + $0x1d8] sm:$0xff] }
 0x2bd   :  { %7317 = vmatprep.subr.bf16.mxu1 %v7252_v21  ;;  %v7356_v21 = vpack.c.bf16 %v1353_v18, %v1351_v17  ;;  %v1305_v18 = vld [vmem:[%s12931_s7 + $0x68] sm:$0xff] }
 0x2c0   :  { %7319 = vmatpush3.bf16.msra.mxu1 %v7254_v28  ;;  %v1357_v28 = vld [vmem:[%s12931_s7 + $0x1f8] sm:$0xff] }
 0x2c1   :  { %7321 = vmatprep.subr.bf16.mxu1 %v7256_v29  ;;  %v1354_v29 = vld [vmem:[%s12931_s7 + $0x1e0] sm:$0xff]  ;;  %v7360_v30 = vpack.c.bf16 %v1357_v28, %v1355_v27  ;;  %v1306_v27 = vld [vmem:[%s12931_s7 + $0x70] sm:$0xff]  ;;  %v1309_v28 = vld [vmem:[%s12931_s7 + $0x88] sm:$0xff] }
 0x2c4   :  { %7323 = vmatpush3.bf16.msra.mxu1 %v7258_v37  ;;  %v7362_v37 = vpack.c.bf16 %v1356_v33, %v1354_v29  ;;  %v1311_v29 = vld [vmem:[%s12931_s7 + $0x98] sm:$0xff] }
 0x2c5   :  { %7325 = vmatprep.subr.bf16.mxu1 %v7260_v39  ;;  %v7364_v39 = vpack.c.bf16 %v1295_v36, %v1293_v34  ;;  %v7380_v33 = vpack.c.bf16 %v1311_v29, %v1309_v28  ;;  %v1308_v34 = vld [vmem:[%s12931_s7 + $0x80] sm:$0xff]  ;;  %v1310_v36 = vld [vmem:[%s12931_s7 + $0x90] sm:$0xff]  ;;  %v1539_v29 = vld [vmem:[%s12931_s7 + $0x2c8] sm:$0xff] }
 0x2c6   :  { %v1536_v28 = vld [vmem:[%s12931_s7 + $0x2b0] sm:$0xff] }
 0x2c8   :  { %7327 = vmatpush3.bf16.msra.mxu1 %v7262_v50 }
 0x2c9   :  { %7329 = vmatprep.subr.bf16.mxu1 %v7264_v51 }
 0x2cc   :  { %7331 = vmatpush3.bf16.msra.mxu1 %v7266_v0 }
 0x2cd   :  { %7333 = vmatprep.subr.bf16.mxu1 %v7332_v62 }
 0x2cf   :  { %1274 = vmatmul.mubr.f32.vlgmr.msra.gmra.mrb[16].mxu1 %v9530_v46  ;;  %v7342_v46 = vpack.c.bf16 %v1336_v38, %v1334_v35 }
 0x2d0   :  { %1278 = vmatprep.mubr.f32.mxu1 %v9563_v2  ;;  %7335 = vmatpush1.bf16.msra.mxu1 %v7334_v12  ;;  %v1344_v2 = vld [vmem:[%s12931_s7 + $0x190] sm:$0xff] }
 0x2d1   :  { %7337 = vmatprep.subr.bf16.mxu1 %v7336_v14  ;;  %v7350_v3 = vpack.c.bf16 %v1344_v2, %v1342_v1  ;;  %v1296_v1 = vld [vmem:[%s12931_s7 + $0x20] sm:$0xff]  ;;  %v1298_v2 = vld [vmem:[%s12931_s7 + $0x30] sm:$0xff] }
 0x2d3   :  { %1279 = vmatmul.mubr.f32.gmra.mrb[18].mxu1 %v9552_v59  ;;  %v1343_v59 = vld [vmem:[%s12931_s7 + $0x188] sm:$0xff] }
 0x2d4   :  { %1422 = vmatprep.mubr.f32.mxu1 %v8653_v7  ;;  %7339 = vmatpush1.bf16.msra.mxu1 %v7338_v25  ;;  %v7348_v61 = vpack.c.bf16 %v1345_v60, %v1343_v59  ;;  %v1299_v59 = vld [vmem:[%s12931_s7 + $0x38] sm:$0xff]  ;;  %v7366_v60 = vpack.c.bf16 %v1294_v57, %v1292_v52 }
 0x2d5   :  { %7341 = vmatprep.subr.bf16.mxu1 %v7340_v32  ;;  %v1525_v52 = vld [vmem:[%s12931_s7 + $0x258] sm:$0xff] }
 0x2d8   :  { %7343 = vmatpush1.bf16.msra.mxu1 %v7342_v46 }
 0x2d9   :  { %7345 = vmatprep.subr.bf16.mxu1 %v7344_v49 }
 0x2dc   :  { %7347 = vmatpush1.bf16.msra.mxu1 %v7346_v58  ;;  %v1297_v58 = vld [vmem:[%s12931_s7 + $0x28] sm:$0xff] }
 0x2dd   :  { %7349 = vmatprep.subr.bf16.mxu1 %v7348_v61  ;;  %v7368_v61 = vpack.c.bf16 %v1299_v59, %v1297_v58  ;;  %v1522_v59 = vld [vmem:[%s12931_s7 + $0x240] sm:$0xff] }
 0x2e0   :  { %7351 = vmatpush1.bf16.msra.mxu1 %v7350_v3 }
 0x2e1   :  { %7353 = vmatprep.subr.bf16.mxu1 %v7352_v9  ;;  %v7370_v9 = vpack.c.bf16 %v1298_v2, %v1296_v1  ;;  %v1527_v1 = vld [vmem:[%s12931_s7 + $0x268] sm:$0xff] }
 0x2e4   :  { %7355 = vmatpush1.bf16.msra.mxu1 %v7354_v16  ;;  %v1302_v16 = vld [vmem:[%s12931_s7 + $0x50] sm:$0xff] }
 0x2e5   :  { %7357 = vmatprep.subr.bf16.mxu1 %v7356_v21  ;;  %v1307_v21 = vld [vmem:[%s12931_s7 + $0x78] sm:$0xff]  ;;  %v7374_v22 = vpack.c.bf16 %v1302_v16, %v1300_v15  ;;  %v7410_v15 = vpack.c.bf16 %v1528_v8, %v1526_v6 }
 0x2e6   :  { %v7376_v23 = vpack.c.bf16 %v1307_v21, %v1305_v18  ;;  %v1532_v18 = vld [vmem:[%s12931_s7 + $0x290] sm:$0xff]  ;;  %v1535_v21 = vld [vmem:[%s12931_s7 + $0x2a8] sm:$0xff] }
 0x2e8   :  { %7359 = vmatpush1.bf16.msra.mxu1 %v7358_v24  ;;  %v1304_v24 = vld [vmem:[%s12931_s7 + $0x60] sm:$0xff] }
 0x2e9   :  { %7361 = vmatprep.subr.bf16.mxu1 %v7360_v30  ;;  %v7378_v30 = vpack.c.bf16 %v1306_v27, %v1304_v24  ;;  %v1534_v27 = vld [vmem:[%s12931_s7 + $0x2a0] sm:$0xff] }
 0x2ec   :  { %7363 = vmatpush1.bf16.msra.mxu1 %v7362_v37  ;;  %v1313_v37 = vld [vmem:[%s12931_s7 + $0xa8] sm:$0xff] }
 0x2ed   :  { %7365 = vmatprep.subr.bf16.mxu1 %v7364_v39  ;;  %v1315_v39 = vld [vmem:[%s12931_s7 + $0xb8] sm:$0xff] }
 0x342   :  { %v5848_v40 = vpop.f32.mrb[4].mxu1 }
 0x343   :  { %v5849_v41 = vpop.f32.mrb[5].mxu1 }
 0x344   :  { %v5850_v42 = vadd.f32 %v5849_v41, %v5848_v40  ;;  %v7382_v40 = vpack.c.bf16 %v1310_v36, %v1308_v34  ;;  %v7384_v41 = vpack.c.bf16 %v1315_v39, %v1313_v37  ;;  %v1538_v36 = vld [vmem:[%s12931_s7 + $0x2c0] sm:$0xff]  ;;  %v1540_v37 = vld [vmem:[%s12931_s7 + $0x2d0] sm:$0xff]  ;;  %v1543_v39 = vld [vmem:[%s12931_s7 + $0x2e8] sm:$0xff] }
 0x346   :  { %v5851_v48 = vpop.f32.mrb[6].mxu1 }
 0x347   :  { %v5852_v50 = vpop.f32.mrb[7].mxu1 }
 0x348   :  { %v5853_v51 = vadd.f32 %v5852_v50, %v5851_v48  ;;  %v1314_v48 = vld [vmem:[%s12931_s7 + $0xb0] sm:$0xff]  ;;  %v1317_v50 = vld [vmem:[%s12931_s7 + $0xc8] sm:$0xff] }
 0x362   :  { %v5886_v53 = vpop.f32.mrb[8].mxu1 }
 0x363   :  { %v5887_v56 = vpop.f32.mrb[9].mxu1 }
 0x364   :  { %v5888_v0 = vadd.f32 %v5887_v56, %v5886_v53 }
 0x366   :  { %v1132_v47 = vmax.f32 %v5850_v42, %v5888_v0  ;;  %v5889_v54 = vpop.f32.mrb[10].mxu1  ;;  %v1312_v42 = vld [vmem:[%s12931_s7 + $0xa0] sm:$0xff] }
 0x367   :  { %v5890_v55 = vpop.f32.mrb[11].mxu1  ;;  %v7386_v53 = vpack.c.bf16 %v1314_v48, %v1312_v42  ;;  %v1316_v0 = vld [vmem:[%s12931_s7 + $0xc0] sm:$0xff] }
 0x368   :  { %v5891_v62 = vadd.f32 %v5890_v55, %v5889_v54  ;;  %v1321_v54 = vld [vmem:[%s12931_s7 + $0xe8] sm:$0xff]  ;;  %v1323_v55 = vld [vmem:[%s12931_s7 + $0xf8] sm:$0xff]  ;;  %v1542_v48 = vld [vmem:[%s12931_s7 + $0x2e0] sm:$0xff] }
 0x36a   :  { %v1133_v63 = vmax.f32 %v5853_v51, %v5891_v62  ;;  %v1319_v51 = vld [vmem:[%s12931_s7 + $0xd8] sm:$0xff] }
 0x36b   :  { %v7388_v56 = vpack.c.bf16 %v1319_v51, %v1317_v50  ;;  %v1544_v50 = vld [vmem:[%s12931_s7 + $0x2f0] sm:$0xff]  ;;  %v1630_v51 = vld [vmem:[%s12931_s7 + $0x308] sm:$0xff] }
 0x382   :  { %v5924_v4 = vpop.f32.mrb[12].mxu1 }
 0x383   :  { %v5925_v5 = vpop.f32.mrb[13].mxu1 }
 0x384   :  { %v5926_v12 = vadd.f32 %v5925_v5, %v5924_v4  ;;  %v1320_v4 = vld [vmem:[%s12931_s7 + $0xe0] sm:$0xff]  ;;  %v1322_v5 = vld [vmem:[%s12931_s7 + $0xf0] sm:$0xff] }
 0x386   :  { %v5927_v14 = vpop.f32.mrb[14].mxu1 }
 0x387   :  { %v5928_v19 = vpop.f32.mrb[15].mxu1 }
 0x388   :  { %v5929_v20 = vadd.f32 %v5928_v19, %v5927_v14  ;;  %v1517_v14 = vld [vmem:[%s12931_s7 + $0x218] sm:$0xff]  ;;  %v7394_v19 = vpack.c.bf16 %v1322_v5, %v1320_v4  ;;  %v1633_v5 = vld [vmem:[%s12931_s7 + $0x320] sm:$0xff] }
 0x3a2   :  { %v5962_v25 = vpop.f32.mrb[16].mxu1 }
 0x3a3   :  { %v5963_v26 = vpop.f32.mrb[17].mxu1 }
 0x3a4   :  { %v5964_v31 = vadd.f32 %v5963_v26, %v5962_v25  ;;  %v1514_v25 = vld [vmem:[%s12931_s7 + $0x200] sm:$0xff]  ;;  %v1516_v26 = vld [vmem:[%s12931_s7 + $0x210] sm:$0xff] }
 0x3a6   :  { %v1284_v32 = vmax.f32 %v5926_v12, %v5964_v31  ;;  %v5965_v35 = vpop.f32.mrb[18].mxu1  ;;  %v1515_v12 = vld [vmem:[%s12931_s7 + $0x208] sm:$0xff] }
 0x3a7   :  { %v5966_v38 = vpop.f32.mrb[19].mxu1  ;;  %v1519_v31 = vld [vmem:[%s12931_s7 + $0x228] sm:$0xff] }
 0x3a8   :  { %v9772_v43 = vmax.f32 %v1132_v47, %v1284_v32  ;;  %v5967_v44 = vadd.f32 %v5966_v38, %v5965_v35  ;;  %v1318_v47 = vld [vmem:[%s12931_s7 + $0xd0] sm:$0xff]  ;;  %v1521_v32 = vld [vmem:[%s12931_s7 + $0x238] sm:$0xff]  ;;  %v7398_v35 = vpack.c.bf16 %v1516_v26, %v1514_v25 }
 0x3a9   :  { %v7390_v62 = vpack.c.bf16 %v1318_v47, %v1316_v0  ;;  %v7400_v38 = vpack.c.bf16 %v1521_v32, %v1519_v31  ;;  %v1629_v47 = vld [vmem:[%s12931_s7 + $0x300] sm:$0xff]  ;;  %v1639_v32 = vld [vmem:[%s12931_s7 + $0x350] sm:$0xff] }
 0x3aa   :  { %1288 = vst [vmem:[#allocation2] sm:$0xff] %v9772_v43  ;;  %v1285_v46 = vmax.f32 %v5929_v20, %v5967_v44  ;;  %v7396_v20 = vpack.c.bf16 %v1517_v14, %v1515_v12  ;;  %v1518_v44 = vld [vmem:[%s12931_s7 + $0x220] sm:$0xff]  ;;  %v1635_v12 = vld [vmem:[%s12931_s7 + $0x330] sm:$0xff] }
 0x3ab   :  { %v7434_v25 = vpack.c.bf16 %v1635_v12, %v1633_v5  ;;  %v1637_v31 = vld [vmem:[%s12931_s7 + $0x340] sm:$0xff]  ;;  %v1757_v5 = vld [vmem:[%s12931_s7 + $0x468] sm:$0xff]  ;;  %v1759_v12 = vld [vmem:[%s12931_s7 + $0x478] sm:$0xff] }
 0x3ac   :  { %v1287_v49 = vmax.f32 %v1133_v63, %v1285_v46  ;;  %v7392_v63 = vpack.c.bf16 %v1323_v55, %v1321_v54  ;;  %v1520_v46 = vld [vmem:[%s12931_s7 + $0x230] sm:$0xff]  ;;  %v1634_v55 = vld [vmem:[%s12931_s7 + $0x328] sm:$0xff] }
 0x3ad   :  { %v7402_v57 = vpack.c.bf16 %v1520_v46, %v1518_v44  ;;  %v1631_v54 = vld [vmem:[%s12931_s7 + $0x310] sm:$0xff]  ;;  %v1644_v44 = vld [vmem:[%s12931_s7 + $0x378] sm:$0xff]  ;;  %v7438_v46 = vpack.c.bf16 %v1639_v32, %v1637_v31 }
 0x3ae   :  { %1289 = vst [vmem:[#allocation2 + $0x8] sm:$0x3f] %v1287_v49  ;;  %v1523_v49 = vld [vmem:[%s12931_s7 + $0x248] sm:$0xff]  ;;  %v1763_v31 = vld [vmem:[%s12931_s7 + $0x498] sm:$0xff] }
 0x3af   :  { %v7404_v58 = vpack.c.bf16 %v1525_v52, %v1523_v49  ;;  %v1641_v52 = vld [vmem:[%s12931_s7 + $0x360] sm:$0xff] }
 0x3b5   :  { %v1324_v3 = vld [vmem:[#allocation2 + $0x1] sm:$0xff]  ;;  %v1325_v17 = vld [vmem:[#allocation2 + $0x9] sm:$0x3] }
 0x3b6   :  { %1423 = vmatmul.mubr.f32.vlgmr.msra.gmra.mrb[20].mxu1 %v1324_v3  ;;  %v1512_v14 = vld [vmem:[#allocation2 + $0x2] sm:$0xff] }
 0x3b7   :  { %7367 = vmatpush1.bf16.msra.mxu1 %v7366_v60  ;;  %1428 = vmatprep.mubr.f32.mxu1 %v8653_v7  ;;  %v1524_v60 = vld [vmem:[%s12931_s7 + $0x250] sm:$0xff] }
 0x3b8   :  { %7369 = vmatprep.subr.bf16.mxu1 %v7368_v61  ;;  %v1291_v61 = vld [vmem:[#allocation2 + $0x8] sm:$0x3]  ;;  %v7406_v2 = vpack.c.bf16 %v1524_v60, %v1522_v59  ;;  %v1648_v59 = vld [vmem:[%s12931_s7 + $0x398] sm:$0xff] }
 0x3ba   :  { %1429 = vmatmul.mubr.f32.gmra.mrb[22].mxu1 %v1325_v17  ;;  %v1530_v17 = vld [vmem:[%s12931_s7 + $0x280] sm:$0xff] }
 0x3bb   :  { %7371 = vmatpush1.bf16.msra.mxu1 %v7370_v9  ;;  %1499 = vmatprep.mubr.f32.mxu1 %v8653_v7  ;;  %v1531_v9 = vld [vmem:[%s12931_s7 + $0x288] sm:$0xff] }
 0x3bc   :  { %7373 = vmatprep.subr.bf16.mxu1 %v7372_v10  ;;  %v1533_v10 = vld [vmem:[%s12931_s7 + $0x298] sm:$0xff] }
 0x3bd   :  { %v7412_v16 = vpack.c.bf16 %v1533_v10, %v1531_v9  ;;  %v1649_v9 = vld [vmem:[%s12931_s7 + $0x3a0] sm:$0xff]  ;;  %v1651_v10 = vld [vmem:[%s12931_s7 + $0x3b0] sm:$0xff] }
 0x3bf   :  { %7375 = vmatpush1.bf16.msra.mxu1 %v7374_v22  ;;  %v1537_v22 = vld [vmem:[%s12931_s7 + $0x2b8] sm:$0xff] }
 0x3c0   :  { %7377 = vmatprep.subr.bf16.mxu1 %v7376_v23  ;;  %v7414_v23 = vpack.c.bf16 %v1532_v18, %v1530_v17  ;;  %v7416_v24 = vpack.c.bf16 %v1537_v22, %v1535_v21  ;;  %v7450_v17 = vpack.c.bf16 %v1651_v10, %v1649_v9  ;;  %v1653_v21 = vld [vmem:[%s12931_s7 + $0x3c0] sm:$0xff]  ;;  %v1655_v22 = vld [vmem:[%s12931_s7 + $0x3d0] sm:$0xff] }
 0x3c3   :  { %7379 = vmatpush1.bf16.msra.mxu1 %v7378_v30  ;;  %v1541_v30 = vld [vmem:[%s12931_s7 + $0x2d8] sm:$0xff] }
 0x3c4   :  { %7381 = vmatprep.subr.bf16.mxu1 %v7380_v33  ;;  %v7418_v33 = vpack.c.bf16 %v1536_v28, %v1534_v27  ;;  %v7420_v34 = vpack.c.bf16 %v1541_v30, %v1539_v29  ;;  %v7454_v27 = vpack.c.bf16 %v1655_v22, %v1653_v21  ;;  %v1657_v29 = vld [vmem:[%s12931_s7 + $0x3e0] sm:$0xff]  ;;  %v1659_v30 = vld [vmem:[%s12931_s7 + $0x3f0] sm:$0xff]  ;;  %v1743_v21 = vld [vmem:[#allocation2 + $0xc] sm:$0x3] }
 0x3c5   :  { %v1857_v22 = vld [vmem:[%s12932_s8] sm:$0x3] }
 0x3c7   :  { %7383 = vmatpush1.bf16.msra.mxu1 %v7382_v40  ;;  %v1545_v40 = vld [vmem:[%s12931_s7 + $0x2f8] sm:$0xff] }
 0x3c8   :  { %7385 = vmatprep.subr.bf16.mxu1 %v7384_v41  ;;  %v7422_v41 = vpack.c.bf16 %v1540_v37, %v1538_v36  ;;  %v7424_v42 = vpack.c.bf16 %v1545_v40, %v1543_v39  ;;  %v7458_v36 = vpack.c.bf16 %v1659_v30, %v1657_v29  ;;  %v1744_v39 = vld [vmem:[%s12931_s7 + $0x400] sm:$0xff]  ;;  %v1746_v40 = vld [vmem:[%s12931_s7 + $0x410] sm:$0xff] }
 0x3cb   :  { %7387 = vmatpush1.bf16.msra.mxu1 %v7386_v53  ;;  %v1632_v53 = vld [vmem:[%s12931_s7 + $0x318] sm:$0xff] }
 0x3cc   :  { %7389 = vmatprep.subr.bf16.mxu1 %v7388_v56  ;;  %v7426_v56 = vpack.c.bf16 %v1544_v50, %v1542_v48  ;;  %v7428_v0 = vpack.c.bf16 %v1632_v53, %v1630_v51  ;;  %v7462_v48 = vpack.c.bf16 %v1746_v40, %v1744_v39  ;;  %v1748_v51 = vld [vmem:[%s12931_s7 + $0x420] sm:$0xff]  ;;  %v1750_v53 = vld [vmem:[%s12931_s7 + $0x430] sm:$0xff] }
 0x3cf   :  { %7391 = vmatpush1.bf16.msra.mxu1 %v7390_v62  ;;  %v1636_v62 = vld [vmem:[%s12931_s7 + $0x338] sm:$0xff] }
 0x3d0   :  { %7393 = vmatprep.subr.bf16.mxu1 %v7392_v63  ;;  %v7430_v63 = vpack.c.bf16 %v1631_v54, %v1629_v47  ;;  %v7432_v4 = vpack.c.bf16 %v1636_v62, %v1634_v55  ;;  %v1755_v47 = vld [vmem:[%s12931_s7 + $0x458] sm:$0xff]  ;;  %v7466_v54 = vpack.c.bf16 %v1750_v53, %v1748_v51  ;;  %v1752_v62 = vld [vmem:[%s12931_s7 + $0x440] sm:$0xff] }
 0x3d1   :  { %v2051_v53 = vld [vmem:[%s12935_s11 + $0x80] sm:$0xff] }
 0x3d3   :  { %7395 = vmatpush1.bf16.msra.mxu1 %v7394_v19  ;;  %v1638_v19 = vld [vmem:[%s12931_s7 + $0x348] sm:$0xff] }
 0x3d4   :  { %7397 = vmatprep.subr.bf16.mxu1 %v7396_v20  ;;  %v1640_v20 = vld [vmem:[%s12931_s7 + $0x358] sm:$0xff] }
 0x3d5   :  { %v7436_v26 = vpack.c.bf16 %v1640_v20, %v1638_v19  ;;  %v7472_v19 = vpack.c.bf16 %v1759_v12, %v1757_v5  ;;  %v1756_v20 = vld [vmem:[%s12931_s7 + $0x460] sm:$0xff] }
 0x3d6   :  { %1500 = vmatmul.mubr.f32.vlgmr.msra.gmra.mrb[20].mxu1 %v9772_v43  ;;  %v1529_v43 = vld [vmem:[%s12931_s7 + $0x278] sm:$0xff] }
 0x3d7   :  { %7399 = vmatpush1.bf16.msra.mxu1 %v7398_v35  ;;  %1505 = vmatprep.mubr.f32.mxu1 %v8653_v7  ;;  %v7408_v3 = vpack.c.bf16 %v1529_v43, %v1527_v1  ;;  %v1513_v35 = vld [vmem:[#allocation2 + $0xa] sm:$0x3]  ;;  %v1645_v1 = vld [vmem:[%s12931_s7 + $0x380] sm:$0xff]  ;;  %v1647_v43 = vld [vmem:[%s12931_s7 + $0x390] sm:$0xff] }
 0x3d8   :  { %7401 = vmatprep.subr.bf16.mxu1 %v7400_v38  ;;  %v1642_v38 = vld [vmem:[%s12931_s7 + $0x368] sm:$0xff]  ;;  %v7446_v6 = vpack.c.bf16 %v1647_v43, %v1645_v1 }
 0x3d9   :  { %v7440_v49 = vpack.c.bf16 %v1644_v44, %v1642_v38  ;;  %v1760_v38 = vld [vmem:[%s12931_s7 + $0x480] sm:$0xff]  ;;  %v1762_v44 = vld [vmem:[%s12931_s7 + $0x490] sm:$0xff] }
 0x3da   :  { %1506 = vmatmul.mubr.f32.gmra.mrb[22].mxu1 %v1291_v61 }
 0x3db   :  { %7403 = vmatpush1.bf16.msra.mxu1 %v7402_v57  ;;  %1610 = vmatprep.mubr.f32.mxu1 %v8653_v7  ;;  %v1643_v57 = vld [vmem:[%s12931_s7 + $0x370] sm:$0xff] }
 0x3dc   :  { %7405 = vmatprep.subr.bf16.mxu1 %v7404_v58  ;;  %v1646_v58 = vld [vmem:[%s12931_s7 + $0x388] sm:$0xff]  ;;  %v7442_v60 = vpack.c.bf16 %v1643_v57, %v1641_v52  ;;  %v7478_v52 = vpack.c.bf16 %v1762_v44, %v1760_v38  ;;  %v2057_v38 = vld [vmem:[%s12935_s11 + $0xb0] sm:$0xff]  ;;  %v2058_v44 = vld [vmem:[%s12935_s11 + $0xb8] sm:$0xff] }
 0x3dd   :  { %v7444_v61 = vpack.c.bf16 %v1648_v59, %v1646_v58  ;;  %v1764_v58 = vld [vmem:[%s12931_s7 + $0x4a0] sm:$0xff]  ;;  %v1766_v59 = vld [vmem:[%s12931_s7 + $0x4b0] sm:$0xff] }
 0x3de   :  { %v7482_v1 = vpack.c.bf16 %v1766_v59, %v1764_v58  ;;  %v2059_v58 = vld [vmem:[%s12935_s11 + $0xc0] sm:$0xff]  ;;  %v2060_v59 = vld [vmem:[%s12935_s11 + $0xc8] sm:$0xff] }
 0x3df   :  { %7407 = vmatpush1.bf16.msra.mxu1 %v7406_v2  ;;  %v1650_v2 = vld [vmem:[%s12931_s7 + $0x3a8] sm:$0xff] }
 0x3e0   :  { %7409 = vmatprep.subr.bf16.mxu1 %v7408_v3  ;;  %v1652_v3 = vld [vmem:[%s12931_s7 + $0x3b8] sm:$0xff] }
 0x3e1   :  { %v7448_v8 = vpack.c.bf16 %v1652_v3, %v1650_v2  ;;  %v1768_v2 = vld [vmem:[%s12931_s7 + $0x4c0] sm:$0xff]  ;;  %v1770_v3 = vld [vmem:[%s12931_s7 + $0x4d0] sm:$0xff] }
 0x3e2   :  { %v7486_v9 = vpack.c.bf16 %v1770_v3, %v1768_v2  ;;  %v2061_v2 = vld [vmem:[%s12935_s11 + $0xd0] sm:$0xff]  ;;  %v2062_v3 = vld [vmem:[%s12935_s11 + $0xd8] sm:$0xff] }
 0x3e3   :  { %7411 = vmatpush1.bf16.msra.mxu1 %v7410_v15  ;;  %v1654_v15 = vld [vmem:[%s12931_s7 + $0x3c8] sm:$0xff] }
 0x3e4   :  { %7413 = vmatprep.subr.bf16.mxu1 %v7412_v16  ;;  %v1656_v16 = vld [vmem:[%s12931_s7 + $0x3d8] sm:$0xff] }
 0x3e5   :  { %v7452_v18 = vpack.c.bf16 %v1656_v16, %v1654_v15  ;;  %v1772_v15 = vld [vmem:[%s12931_s7 + $0x4e0] sm:$0xff]  ;;  %v1774_v16 = vld [vmem:[%s12931_s7 + $0x4f0] sm:$0xff] }
 0x3e7   :  { %7415 = vmatpush1.bf16.msra.mxu1 %v7414_v23  ;;  %v1658_v23 = vld [vmem:[%s12931_s7 + $0x3e8] sm:$0xff] }
 0x3e8   :  { %7417 = vmatprep.subr.bf16.mxu1 %v7416_v24  ;;  %v1660_v24 = vld [vmem:[%s12931_s7 + $0x3f8] sm:$0xff] }
 0x3e9   :  { %v7456_v28 = vpack.c.bf16 %v1660_v24, %v1658_v23  ;;  %v1862_v23 = vrot.slane %v1857_v22, %v9320_v11 }
 0x3eb   :  { %7419 = vmatpush1.bf16.msra.mxu1 %v7418_v33  ;;  %v1745_v33 = vld [vmem:[%s12931_s7 + $0x408] sm:$0xff] }
 0x3ec   :  { %7421 = vmatprep.subr.bf16.mxu1 %v7420_v34  ;;  %v1747_v34 = vld [vmem:[%s12931_s7 + $0x418] sm:$0xff] }
 0x3ed   :  { %v7460_v37 = vpack.c.bf16 %v1747_v34, %v1745_v33 }
 0x3ef   :  { %7423 = vmatpush1.bf16.msra.mxu1 %v7422_v41  ;;  %v1749_v41 = vld [vmem:[%s12931_s7 + $0x428] sm:$0xff] }
 0x3f0   :  { %7425 = vmatprep.subr.bf16.mxu1 %v7424_v42  ;;  %v1751_v42 = vld [vmem:[%s12931_s7 + $0x438] sm:$0xff] }
 0x3f1   :  { %v7464_v50 = vpack.c.bf16 %v1751_v42, %v1749_v41 }
 0x3f3   :  { %7427 = vmatpush1.bf16.msra.mxu1 %v7426_v56  ;;  %v1627_v56 = vld [vmem:[#allocation2 + $0x3] sm:$0xff] }
 0x3f4   :  { %7429 = vmatprep.subr.bf16.mxu1 %v7428_v0  ;;  %v1753_v0 = vld [vmem:[%s12931_s7 + $0x448] sm:$0xff] }
 0x3f5   :  { %v7468_v55 = vpack.c.bf16 %v1755_v47, %v1753_v0  ;;  %v1877_v0 = vld [vmem:[%s12933_s9] sm:$0x1f] }
 0x3f6   :  { %1611 = vmatmul.mubr.f32.vlgmr.msra.gmra.mrb[20].mxu1 %v1512_v14 }
 0x3f7   :  { %7431 = vmatpush1.bf16.msra.mxu1 %v7430_v63  ;;  %1616 = vmatprep.mubr.f32.mxu1 %v8653_v7  ;;  %v1754_v63 = vld [vmem:[%s12931_s7 + $0x450] sm:$0xff] }
 0x3f8   :  { %7433 = vmatprep.subr.bf16.mxu1 %v7432_v4  ;;  %v1628_v4 = vld [vmem:[#allocation2 + $0xb] sm:$0x3]  ;;  %v7470_v14 = vpack.c.bf16 %v1754_v63, %v1752_v62  ;;  %v2053_v62 = vld [vmem:[%s12935_s11 + $0x90] sm:$0xff]  ;;  %v2054_v63 = vld [vmem:[%s12935_s11 + $0x98] sm:$0xff] }
 0x3f9   :  { %v10212_v12 = vpack.c.bf16 %v2054_v63, %v2053_v62  ;;  %v2158_v62 = vld [vmem:[%s12936_s12 + $0xa8] sm:$0xff] }
 0x3fa   :  { %1617 = vmatmul.mubr.f32.gmra.mrb[22].mxu1 %v1513_v35 }
 0x3fb   :  { %7435 = vmatpush1.bf16.msra.mxu1 %v7434_v25  ;;  %1725 = vmatprep.mubr.f32.mxu1 %v8653_v7  ;;  %v1758_v25 = vld [vmem:[%s12931_s7 + $0x470] sm:$0xff] }
 0x3fc   :  { %7437 = vmatprep.subr.bf16.mxu1 %v7436_v26  ;;  %v1761_v26 = vld [vmem:[%s12931_s7 + $0x488] sm:$0xff]  ;;  %v7474_v32 = vpack.c.bf16 %v1758_v25, %v1756_v20  ;;  %v2055_v20 = vld [vmem:[%s12935_s11 + $0xa0] sm:$0xff] }
 0x3fd   :  { %v7476_v35 = vpack.c.bf16 %v1763_v31, %v1761_v26  ;;  %v2056_v25 = vld [vmem:[%s12935_s11 + $0xa8] sm:$0xff] }
 0x3fe   :  { %v10231_v31 = vpack.c.bf16 %v2056_v25, %v2055_v20  ;;  %v2142_v20 = vld [vmem:[%s12936_s12 + $0x28] sm:$0xff] }
 0x3ff   :  { %7439 = vmatpush1.bf16.msra.mxu1 %v7438_v46  ;;  %v1765_v46 = vld [vmem:[%s12931_s7 + $0x4a8] sm:$0xff] }
 0x400   :  { %7441 = vmatprep.subr.bf16.mxu1 %v7440_v49  ;;  %v1767_v49 = vld [vmem:[%s12931_s7 + $0x4b8] sm:$0xff] }
 0x401   :  { %v7480_v57 = vpack.c.bf16 %v1767_v49, %v1765_v46  ;;  %v10249_v49 = vpack.c.bf16 %v2058_v44, %v2057_v38 }
 0x403   :  { %7443 = vmatpush1.bf16.msra.mxu1 %v7442_v60  ;;  %v1769_v60 = vld [vmem:[%s12931_s7 + $0x4c8] sm:$0xff] }
 0x404   :  { %7445 = vmatprep.subr.bf16.mxu1 %v7444_v61  ;;  %v1771_v61 = vld [vmem:[%s12931_s7 + $0x4d8] sm:$0xff] }
 0x405   :  { %v7484_v43 = vpack.c.bf16 %v1771_v61, %v1769_v60  ;;  %v10267_v61 = vpack.c.bf16 %v2060_v59, %v2059_v58  ;;  %v2161_v58 = vld [vmem:[%s12936_s12 + $0xc0] sm:$0xff]  ;;  %v2162_v59 = vld [vmem:[%s12936_s12 + $0xc8] sm:$0xff] }
 0x407   :  { %7447 = vmatpush1.bf16.msra.mxu1 %v7446_v6  ;;  %v1773_v6 = vld [vmem:[%s12931_s7 + $0x4e8] sm:$0xff] }
 0x408   :  { %7449 = vmatprep.subr.bf16.mxu1 %v7448_v8  ;;  %v1775_v8 = vld [vmem:[%s12931_s7 + $0x4f8] sm:$0xff] }
 0x409   :  { %v7488_v10 = vpack.c.bf16 %v1775_v8, %v1773_v6  ;;  %v10285_v8 = vpack.c.bf16 %v2062_v3, %v2061_v2  ;;  %v2145_v2 = vld [vmem:[%s12936_s12 + $0x40] sm:$0xff]  ;;  %v2146_v3 = vld [vmem:[%s12936_s12 + $0x48] sm:$0xff] }
 0x40b   :  { %7451 = vmatpush1.bf16.msra.mxu1 %v7450_v17  ;;  %v7490_v17 = vpack.c.bf16 %v1774_v16, %v1772_v15  ;;  %v2063_v15 = vld [vmem:[%s12935_s11 + $0xe0] sm:$0xff]  ;;  %v2064_v16 = vld [vmem:[%s12935_s11 + $0xe8] sm:$0xff] }
 0x40c   :  { %7453 = vmatprep.subr.bf16.mxu1 %v7452_v18  ;;  %v1742_v18 = vld [vmem:[#allocation2 + $0x4] sm:$0xff] }
 0x40f   :  { %7455 = vmatpush1.bf16.msra.mxu1 %v7454_v27  ;;  %v1866_v27 = vrot.slane %v1857_v22, %v9325_v13  ;;  %v2048_v22 = vld [vmem:[%s12935_s11 + $0x68] sm:$0xff] }
 0x410   :  { %7457 = vmatprep.subr.bf16.mxu1 %v7456_v28 }
 0x413   :  { %7459 = vmatpush1.bf16.msra.mxu1 %v7458_v36 }
 0x414   :  { %7461 = vmatprep.subr.bf16.mxu1 %v7460_v37 }
 0x416   :  { %1726 = vmatmul.mubr.f32.vlgmr.msra.gmra.mrb[20].mxu1 %v1627_v56  ;;  %v2052_v56 = vld [vmem:[%s12935_s11 + $0x88] sm:$0xff] }
 0x417   :  { %7463 = vmatpush1.bf16.msra.mxu1 %v7462_v48  ;;  %1731 = vmatprep.mubr.f32.mxu1 %v8653_v7  ;;  %v10188_v47 = vpack.c.bf16 %v2052_v56, %v2051_v53 }
 0x418   :  { %7465 = vmatprep.subr.bf16.mxu1 %v7464_v50  ;;  %v4796_v50 = vld [vmem:[%s12935_s11 + $0x18] sm:$0xff] }
 0x41a   :  { %1732 = vmatmul.mubr.f32.gmra.mrb[22].mxu1 %v1628_v4  ;;  %v1960_v4 = vld [vmem:[%s12934_s10] sm:$0x1f] }
 0x41b   :  { %7467 = vmatpush1.bf16.msra.mxu1 %v7466_v54  ;;  %1840 = vmatprep.mubr.f32.mxu1 %v8653_v7  ;;  %v2035_v54 = vld [vmem:[%s12935_s11] sm:$0xff] }
 0x41c   :  { %7469 = vmatprep.subr.bf16.mxu1 %v7468_v55  ;;  %v2036_v55 = vld [vmem:[%s12935_s11 + $0x8] sm:$0xff] }
 0x41d   :  { %v10209_v5 = vpack.c.bf16 %v2036_v55, %v2035_v54  ;;  %v2140_v54 = vld [vmem:[%s12936_s12 + $0x18] sm:$0xff]  ;;  %v2157_v55 = vld [vmem:[%s12936_s12 + $0xa0] sm:$0xff] }
 0x41f   :  { %7471 = vmatpush1.bf16.msra.mxu1 %v7470_v14  ;;  %v2037_v14 = vld [vmem:[%s12935_s11 + $0x10] sm:$0xff] }
 0x420   :  { %7473 = vmatprep.subr.bf16.mxu1 %v7472_v19  ;;  %v2038_v19 = vld [vmem:[%s12935_s11 + $0x18] sm:$0xff] }
 0x421   :  { %v10228_v26 = vpack.c.bf16 %v2038_v19, %v2037_v14  ;;  %v10380_v14 = vpack.c.bf16 %v2158_v62, %v2157_v55  ;;  %v2141_v19 = vld [vmem:[%s12936_s12 + $0x20] sm:$0xff]  ;;  %v2408_v55 = vld [vmem:[%s12937_s13 + $0xb8] sm:$0xff]  ;;  %v2390_v62 = vld [vmem:[%s12937_s13 + $0x30] sm:$0xff] }
 0x422   :  { %v10397_v38 = vpack.c.bf16 %v2142_v20, %v2141_v19  ;;  %v2409_v19 = vld [vmem:[%s12937_s13 + $0xc0] sm:$0xff]  ;;  %v2410_v20 = vld [vmem:[%s12937_s13 + $0xc8] sm:$0xff] }
 0x423   :  { %7475 = vmatpush1.bf16.msra.mxu1 %v7474_v32  ;;  %v2039_v32 = vld [vmem:[%s12935_s11 + $0x20] sm:$0xff] }
 0x424   :  { %7477 = vmatprep.subr.bf16.mxu1 %v7476_v35  ;;  %v2040_v35 = vld [vmem:[%s12935_s11 + $0x28] sm:$0xff] }
 0x425   :  { %v10246_v46 = vpack.c.bf16 %v2040_v35, %v2039_v32  ;;  %v2159_v32 = vld [vmem:[%s12936_s12 + $0xb0] sm:$0xff]  ;;  %v2160_v35 = vld [vmem:[%s12936_s12 + $0xb8] sm:$0xff] }
 0x426   :  { %v10400_v44 = vpack.c.bf16 %v2160_v35, %v2159_v32  ;;  %v7645_v32 = vpack.c.bf16 %v2410_v20, %v2409_v19  ;;  %v2393_v35 = vld [vmem:[%s12937_s13 + $0x48] sm:$0xff]  ;;  %v2564_v20 = vld [vmem:[%s12937_s13 + $0x130] sm:$0xff] }
 0x427   :  { %7479 = vmatpush1.bf16.msra.mxu1 %v7478_v52  ;;  %v2041_v52 = vld [vmem:[%s12935_s11 + $0x30] sm:$0xff] }
 0x428   :  { %7481 = vmatprep.subr.bf16.mxu1 %v7480_v57  ;;  %v2042_v57 = vld [vmem:[%s12935_s11 + $0x38] sm:$0xff] }
 0x429   :  { %v10264_v60 = vpack.c.bf16 %v2042_v57, %v2041_v52  ;;  %v2143_v52 = vld [vmem:[%s12936_s12 + $0x30] sm:$0xff]  ;;  %v2144_v57 = vld [vmem:[%s12936_s12 + $0x38] sm:$0xff] }
 0x42b   :  { %7483 = vmatpush1.bf16.msra.mxu1 %v7482_v1  ;;  %v2043_v1 = vld [vmem:[%s12935_s11 + $0x40] sm:$0xff] }
 0x42c   :  { %7485 = vmatprep.subr.bf16.mxu1 %v7484_v43  ;;  %v2044_v43 = vld [vmem:[%s12935_s11 + $0x48] sm:$0xff] }
 0x42d   :  { %v10282_v6 = vpack.c.bf16 %v2044_v43, %v2043_v1  ;;  %v7550_v1 = vpack.c.bf16 %v2144_v57, %v2143_v52  ;;  %v7552_v43 = vpack.c.bf16 %v2162_v59, %v2161_v58  ;;  %v2412_v52 = vld [vmem:[%s12937_s13 + $0xd8] sm:$0xff]  ;;  %v2394_v57 = vld [vmem:[%s12937_s13 + $0x50] sm:$0xff] }
 0x42e   :  { %v2395_v59 = vld [vmem:[%s12937_s13 + $0x58] sm:$0xff] }
 0x42f   :  { %7487 = vmatpush1.bf16.msra.mxu1 %v7486_v9  ;;  %v2045_v9 = vld [vmem:[%s12935_s11 + $0x50] sm:$0xff] }
 0x430   :  { %7489 = vmatprep.subr.bf16.mxu1 %v7488_v10  ;;  %v2046_v10 = vld [vmem:[%s12935_s11 + $0x58] sm:$0xff] }
 0x433   :  { %7491 = vmatpush1.bf16.msra.mxu1 %v7490_v17  ;;  %v10300_v17 = vpack.c.bf16 %v2046_v10, %v2045_v9  ;;  %v2163_v9 = vld [vmem:[%s12936_s12 + $0xd0] sm:$0xff]  ;;  %v2164_v10 = vld [vmem:[%s12936_s12 + $0xd8] sm:$0xff] }
 0x436   :  { %1841 = vmatmul.mubr.f32.vlgmr.msra.gmra.mrb[20].mxu1 %v1742_v18  ;;  %v10303_v18 = vpack.c.bf16 %v2064_v16, %v2063_v15  ;;  %v7554_v15 = vpack.c.bf16 %v2146_v3, %v2145_v2  ;;  %v7556_v16 = vpack.c.bf16 %v2164_v10, %v2163_v9  ;;  %v2414_v2 = vld [vmem:[%s12937_s13 + $0xe8] sm:$0xff]  ;;  %v2396_v3 = vld [vmem:[%s12937_s13 + $0x60] sm:$0xff] }
 0x437   :  { %1846 = vmatprep.mubr.f32.mxu1 %v8653_v7  ;;  %v2397_v10 = vld [vmem:[%s12937_s13 + $0x68] sm:$0xff] }
 0x43a   :  { %1847 = vmatmul.mubr.f32.gmra.mrb[22].mxu1 %v1743_v21  ;;  %v2047_v21 = vld [vmem:[%s12935_s11 + $0x60] sm:$0xff] }
 0x43b   :  { %6636 = vmatprep.mubr.msk.f32.mxu1 %vm8656_vm7, %v8653_v7 }
 0x509   :  { %v1842_v24 = vpop.f32.mrb[20].mxu1 }
 0x50a   :  { %v1844_v28 = vpop.f32.mrb[21].mxu1  ;;  %v1869_v29 = vadd.f32 %v1862_v23, %v1842_v24  ;;  %v2066_v24 = vld [vmem:[%s12935_s11 + $0xf8] sm:$0xff] }
 0x50b   :  { %v1870_v30 = vadd.f32 %v1866_v27, %v1844_v28 }
 0x50c   :  { %v1873_v39 = vmax.f32 %v1869_v29, 0.0  ;;  %v2049_v29 = vld [vmem:[%s12935_s11 + $0x70] sm:$0xff] }
 0x50d   :  { %v1848_v33 = vpop.f32.mrb[22].mxu1  ;;  %v1874_v41 = vmax.f32 %v1870_v30, 0.0  ;;  %v2050_v30 = vld [vmem:[%s12935_s11 + $0x78] sm:$0xff] }
 0x50e   :  { %v1871_v34 = vadd.f32 %v1862_v23, %v1848_v33  ;;  %v1850_v36 = vpop.f32.mrb[23].mxu1  ;;  %v2065_v23 = vld [vmem:[%s12935_s11 + $0xf0] sm:$0xff]  ;;  %v10330_v33 = vpack.c.bf16 %v2050_v30, %v2049_v29 }
 0x50f   :  { %v1872_v37 = vadd.f32 %v1866_v27, %v1850_v36  ;;  %v10318_v27 = vpack.c.bf16 %v2048_v22, %v2047_v21  ;;  %v10321_v28 = vpack.c.bf16 %v2066_v24, %v2065_v23  ;;  %v2154_v36 = vld [vmem:[%s12936_s12 + $0x88] sm:$0xff]  ;;  %v2147_v21 = vld [vmem:[%s12936_s12 + $0x50] sm:$0xff]  ;;  %v2148_v22 = vld [vmem:[%s12936_s12 + $0x58] sm:$0xff] }
 0x510   :  { %v1875_v40 = vmax.f32 %v1871_v34, 0.0  ;;  %v2153_v34 = vld [vmem:[%s12936_s12 + $0x80] sm:$0xff]  ;;  %v2166_v24 = vld [vmem:[%s12936_s12 + $0xe8] sm:$0xff]  ;;  %v7558_v29 = vpack.c.bf16 %v2148_v22, %v2147_v21  ;;  %v2416_v21 = vld [vmem:[%s12937_s13 + $0xf8] sm:$0xff] }
 0x511   :  { %v1876_v42 = vmax.f32 %v1872_v37, 0.0  ;;  %v10340_v37 = vpack.c.bf16 %v2154_v36, %v2153_v34  ;;  %v2165_v23 = vld [vmem:[%s12936_s12 + $0xe0] sm:$0xff]  ;;  %v2150_v36 = vld [vmem:[%s12936_s12 + $0x68] sm:$0xff]  ;;  %v2398_v22 = vld [vmem:[%s12937_s13 + $0x70] sm:$0xff] }
 0x512   :  { %v7495_v48 = vpack.c.bf16 %v1875_v40, %v1873_v39  ;;  %v2137_v39 = vld [vmem:[%s12936_s12] sm:$0xff]  ;;  %v2138_v40 = vld [vmem:[%s12936_s12 + $0x8] sm:$0xff]  ;;  %v7560_v30 = vpack.c.bf16 %v2166_v24, %v2165_v23  ;;  %v2399_v24 = vld [vmem:[%s12937_s13 + $0x78] sm:$0xff] }
 0x513   :  { %v7492_v51 = vpack.c.bf16 %v1876_v42, %v1874_v41  ;;  %v2155_v41 = vld [vmem:[%s12936_s12 + $0x90] sm:$0xff]  ;;  %v2156_v42 = vld [vmem:[%s12936_s12 + $0x98] sm:$0xff]  ;;  %v2149_v34 = vld [vmem:[%s12936_s12 + $0x60] sm:$0xff] }
 0x514   :  { %v10359_v56 = vpack.c.bf16 %v2156_v42, %v2155_v41  ;;  %v7562_v41 = vpack.c.bf16 %v2150_v36, %v2149_v34 }
 0x515   :  { %7494 = vmatprep.subr.msk.bf16.mxu0 %vm10169_vm5, %v7492_v51 }
 0x516   :  { %7497 = vmatpush1.bf16.msk.msra.mxu0 %vm10169_vm5, %v7495_v48 }
 0x517   :  { %7500 = vmatprep.subr.msk.bf16.mxu0 %vm10169_vm5, %v7492_v51  ;;  %v10357_v51 = vpack.c.bf16 %v2138_v40, %v2137_v39  ;;  %v2167_v39 = vld [vmem:[%s12936_s12 + $0xf0] sm:$0xff]  ;;  %v2168_v40 = vld [vmem:[%s12936_s12 + $0xf8] sm:$0xff] }
 0x518   :  { %v7564_v42 = vpack.c.bf16 %v2168_v40, %v2167_v39 }
 0x519   :  { %5796 = vmatmul.mubr.msk.f32.vlgmr.msra.gmra.mrb[12].mxu0 %vm1878_vm6, %v1877_v0  ;;  %v2139_v0 = vld [vmem:[%s12936_s12 + $0x10] sm:$0xff] }
 0x51a   :  { %7503 = vmatpush1.bf16.msk.msra.mxu0 %vm10169_vm5, %v7495_v48  ;;  %2028 = vmatprep.mubr.f32.mxu0 %v8653_v7  ;;  %v10375_v63 = vpack.c.bf16 %v2140_v54, %v2139_v0  ;;  %v2152_v0 = vld [vmem:[%s12936_s12 + $0x78] sm:$0xff] }
 0x51b   :  { %7505 = vmatprep.subr.bf16.mxu0 %v10188_v47 }
 0x51d   :  { %5799 = vmatmul.mubr.msk.f32.vlgmr.msra.gmra.mrb[14].mxu0 %vm1878_vm6, %v1960_v4 }
 0x51e   :  { %7507 = vmatpush3.bf16.msra.mxu0 %v10209_v5 }
 0x51f   :  { %7509 = vmatprep.subr.bf16.mxu0 %v10212_v12 }
 0x522   :  { %7511 = vmatpush3.bf16.msra.mxu0 %v10228_v26 }
 0x523   :  { %7513 = vmatprep.subr.bf16.mxu0 %v10231_v31 }
 0x526   :  { %7515 = vmatpush3.bf16.msra.mxu0 %v10246_v46 }
 0x527   :  { %7517 = vmatprep.subr.bf16.mxu0 %v10249_v49 }
 0x52a   :  { %7519 = vmatpush3.bf16.msra.mxu0 %v10264_v60 }
 0x52b   :  { %7521 = vmatprep.subr.bf16.mxu0 %v10267_v61 }
 0x52e   :  { %7523 = vmatpush3.bf16.msra.mxu0 %v10282_v6 }
 0x52f   :  { %7525 = vmatprep.subr.bf16.mxu0 %v10285_v8 }
 0x532   :  { %7527 = vmatpush3.bf16.msra.mxu0 %v10300_v17 }
 0x533   :  { %7529 = vmatprep.subr.bf16.mxu0 %v10303_v18 }
 0x536   :  { %7531 = vmatpush3.bf16.msra.mxu0 %v10318_v27 }
 0x537   :  { %7533 = vmatprep.subr.bf16.mxu0 %v10321_v28 }
 0x53a   :  { %7535 = vmatpush3.bf16.msra.mxu0 %v10330_v33 }
 0x53b   :  { %7537 = vmatprep.subr.bf16.mxu0 %v10340_v37 }
 0x5ec   :  { %v10355_v48 = vpop.f32.mrb[12].mxu0 }
 0x5ed   :  { %v1957_v53 = vpop.f32.mrb[13].mxu0 }
 0x5ee   :  { %2131 = vmatprep.mubr.f32.mxu0 %v1957_v53 }
 0x5ef   :  { %2132 = vmatmul.mubr.f32.vlgmr.msra.gmra.mrb[16].mxu0 %v10355_v48 }
 0x5f0   :  { %7539 = vmatpush3.bf16.msra.mxu0 %v10357_v51  ;;  %2233 = vmatprep.mubr.f32.mxu0 %v1957_v53  ;;  %v10377_v4 = vpop.f32.mrb[14].mxu0  ;;  %v2151_v53 = vld [vmem:[%s12936_s12 + $0x70] sm:$0xff] }
 0x5f1   :  { %7541 = vmatprep.subr.bf16.mxu0 %v10359_v56  ;;  %v10388_v25 = vpop.f32.mrb[15].mxu0  ;;  %v7566_v54 = vpack.c.bf16 %v2152_v0, %v2151_v53 }
 0x5f4   :  { %7543 = vmatpush3.bf16.msra.mxu0 %v10375_v63 }
 0x5f5   :  { %7545 = vmatprep.subr.bf16.mxu0 %v10380_v14 }
 0x5f8   :  { %7547 = vmatpush3.bf16.msra.mxu0 %v10397_v38 }
 0x5f9   :  { %7549 = vmatprep.subr.bf16.mxu0 %v10400_v44 }
 0x5fc   :  { %7551 = vmatpush3.bf16.msra.mxu0 %v7550_v1 }
 0x5fd   :  { %7553 = vmatprep.subr.bf16.mxu0 %v7552_v43 }
 0x600   :  { %7555 = vmatpush3.bf16.msra.mxu0 %v7554_v15 }
 0x601   :  { %7557 = vmatprep.subr.bf16.mxu0 %v7556_v16 }
 0x604   :  { %7559 = vmatpush3.bf16.msra.mxu0 %v7558_v29 }
 0x605   :  { %7561 = vmatprep.subr.bf16.mxu0 %v7560_v30 }
 0x608   :  { %7563 = vmatpush3.bf16.msra.mxu0 %v7562_v41 }
 0x609   :  { %7565 = vmatprep.subr.bf16.mxu0 %v7564_v42 }
 0x60c   :  { %7567 = vmatpush3.bf16.msra.mxu0 %v7566_v54 }
 0x60d   :  { %7569 = vmatprep.subr.bf16.mxu0 %v10188_v47  ;;  %v2401_v47 = vld [vmem:[%s12937_s13 + $0x80] sm:$0xff] }
 0x60f   :  { %2234 = vmatmul.mubr.f32.vlgmr.msra.gmra.mrb[18].mxu0 %v10355_v48 }
 0x610   :  { %7571 = vmatpush3.bf16.msra.mxu0 %v10209_v5  ;;  %2304 = vmatprep.mubr.f32.mxu0 %v10388_v25  ;;  %v2402_v5 = vld [vmem:[%s12937_s13 + $0x88] sm:$0xff] }
 0x611   :  { %7573 = vmatprep.subr.bf16.mxu0 %v10212_v12  ;;  %v2384_v12 = vld [vmem:[%s12937_s13] sm:$0xff] }
 0x614   :  { %7575 = vmatpush3.bf16.msra.mxu0 %v10228_v26  ;;  %v8655_v26 = vmov 0.0|0.0  }
 0x615   :  { %7577 = vmatprep.subr.bf16.mxu0 %v10231_v31  ;;  %7632 = vmatprep.subr.bf16.mxu1 %v8655_v26  ;;  %v7633_v31 = vpack.c.bf16 %v2402_v5, %v2401_v47 }
 0x617   :  { %7634 = vmatpush3.bf16.msra.mxu1 %v7633_v31 }
 0x618   :  { %7579 = vmatpush3.bf16.msra.mxu0 %v10246_v46  ;;  %v2385_v46 = vld [vmem:[%s12937_s13 + $0x8] sm:$0xff]  ;;  %7635 = vmatprep.subr.bf16.mxu1 %v8655_v26 }
 0x619   :  { %7581 = vmatprep.subr.bf16.mxu0 %v10249_v49  ;;  %v2403_v49 = vld [vmem:[%s12937_s13 + $0x90] sm:$0xff] }
 0x61c   :  { %7583 = vmatpush3.bf16.msra.mxu0 %v10264_v60  ;;  %v2404_v60 = vld [vmem:[%s12937_s13 + $0x98] sm:$0xff] }
 0x61d   :  { %7585 = vmatprep.subr.bf16.mxu0 %v10267_v61  ;;  %v7657_v61 = vpack.c.bf16 %v2385_v46, %v2384_v12 }
 0x620   :  { %7587 = vmatpush3.bf16.msra.mxu0 %v10282_v6  ;;  %v2386_v6 = vld [vmem:[%s12937_s13 + $0x10] sm:$0xff] }
 0x621   :  { %7589 = vmatprep.subr.bf16.mxu0 %v10285_v8  ;;  %v2387_v8 = vld [vmem:[%s12937_s13 + $0x18] sm:$0xff] }
 0x624   :  { %7591 = vmatpush3.bf16.msra.mxu0 %v10300_v17  ;;  %v7636_v17 = vpack.c.bf16 %v2404_v60, %v2403_v49  ;;  %v2558_v49 = vld [vmem:[%s12937_s13 + $0x100] sm:$0xff]  ;;  %v2559_v60 = vld [vmem:[%s12937_s13 + $0x108] sm:$0xff] }
 0x625   :  { %7593 = vmatprep.subr.bf16.mxu0 %v10303_v18  ;;  %v7660_v18 = vpack.c.bf16 %v2387_v8, %v2386_v6  ;;  %v2647_v6 = vld [vmem:[%s12937_s13 + $0x188] sm:$0xff]  ;;  %v7681_v8 = vpack.c.bf16 %v2559_v60, %v2558_v49  ;;  %v2872_v49 = vld [vmem:[%s12952_s20 + $0x138] sm:$0xff] }
 0x626   :  { %7637 = vmatpush3.bf16.msra.mxu1 %v7636_v17 }
 0x627   :  { %7638 = vmatprep.subr.bf16.mxu1 %v8655_v26 }
 0x628   :  { %7595 = vmatpush3.bf16.msra.mxu0 %v10318_v27  ;;  %v2405_v27 = vld [vmem:[%s12937_s13 + $0xa0] sm:$0xff] }
 0x629   :  { %7597 = vmatprep.subr.bf16.mxu0 %v10321_v28  ;;  %v2406_v28 = vld [vmem:[%s12937_s13 + $0xa8] sm:$0xff] }
 0x62a   :  { %v7639_v48 = vpack.c.bf16 %v2406_v28, %v2405_v27  ;;  %v2561_v27 = vld [vmem:[%s12937_s13 + $0x118] sm:$0xff]  ;;  %v2648_v28 = vld [vmem:[%s12937_s13 + $0x190] sm:$0xff] }
 0x62c   :  { %7599 = vmatpush3.bf16.msra.mxu0 %v10330_v33  ;;  %v2388_v33 = vld [vmem:[%s12937_s13 + $0x20] sm:$0xff]  ;;  %7640 = vmatpush3.bf16.msra.mxu1 %v7639_v48 }
 0x62d   :  { %7601 = vmatprep.subr.bf16.mxu0 %v10340_v37  ;;  %v2389_v37 = vld [vmem:[%s12937_s13 + $0x28] sm:$0xff]  ;;  %7641 = vmatprep.subr.bf16.mxu1 %v8655_v26 }
 0x62f   :  { %2305 = vmatmul.mubr.f32.vlgmr.msra.gmra.mrb[20].mxu0 %v10377_v4 }
 0x630   :  { %7603 = vmatpush3.bf16.msra.mxu0 %v10357_v51  ;;  %2374 = vmatprep.mubr.f32.mxu0 %v10388_v25  ;;  %v7663_v51 = vpack.c.bf16 %v2389_v37, %v2388_v33  ;;  %v2392_v25 = vld [vmem:[%s12937_s13 + $0x40] sm:$0xff]  ;;  %v2649_v33 = vld [vmem:[%s12937_s13 + $0x198] sm:$0xff] }
 0x631   :  { %7605 = vmatprep.subr.bf16.mxu0 %v10359_v56  ;;  %v2407_v56 = vld [vmem:[%s12937_s13 + $0xb0] sm:$0xff] }
 0x634   :  { %7607 = vmatpush3.bf16.msra.mxu0 %v10375_v63  ;;  %v2391_v63 = vld [vmem:[%s12937_s13 + $0x38] sm:$0xff] }
 0x635   :  { %7609 = vmatprep.subr.bf16.mxu0 %v10380_v14  ;;  %v7666_v14 = vpack.c.bf16 %v2391_v63, %v2390_v62  ;;  %v2563_v62 = vld [vmem:[%s12937_s13 + $0x128] sm:$0xff]  ;;  %v2650_v63 = vld [vmem:[%s12937_s13 + $0x1a0] sm:$0xff] }
 0x638   :  { %7611 = vmatpush3.bf16.msra.mxu0 %v10397_v38  ;;  %v7669_v38 = vpack.c.bf16 %v2393_v35, %v2392_v25  ;;  %v2565_v25 = vld [vmem:[%s12937_s13 + $0x138] sm:$0xff] }
 0x639   :  { %7613 = vmatprep.subr.bf16.mxu0 %v10400_v44  ;;  %v2411_v44 = vld [vmem:[%s12937_s13 + $0xd0] sm:$0xff]  ;;  %v2653_v35 = vld [vmem:[%s12937_s13 + $0x1b8] sm:$0xff] }
 0x63a   :  { %v7648_v58 = vpack.c.bf16 %v2412_v52, %v2411_v44  ;;  %v2566_v52 = vld [vmem:[%s12937_s13 + $0x140] sm:$0xff] }
 0x63c   :  { %7615 = vmatpush3.bf16.msra.mxu0 %v7550_v1  ;;  %v7672_v1 = vpack.c.bf16 %v2395_v59, %v2394_v57  ;;  %v2567_v57 = vld [vmem:[%s12937_s13 + $0x148] sm:$0xff] }
 0x63d   :  { %7617 = vmatprep.subr.bf16.mxu0 %v7552_v43  ;;  %v2413_v43 = vld [vmem:[%s12937_s13 + $0xe0] sm:$0xff]  ;;  %v2655_v59 = vld [vmem:[%s12937_s13 + $0x1c8] sm:$0xff] }
 0x63e   :  { %v7651_v9 = vpack.c.bf16 %v2414_v2, %v2413_v43  ;;  %v2568_v2 = vld [vmem:[%s12937_s13 + $0x150] sm:$0xff] }
 0x640   :  { %7619 = vmatpush3.bf16.msra.mxu0 %v7554_v15  ;;  %v7675_v15 = vpack.c.bf16 %v2397_v10, %v2396_v3  ;;  %v2569_v3 = vld [vmem:[%s12937_s13 + $0x158] sm:$0xff] }
 0x641   :  { %7621 = vmatprep.subr.bf16.mxu0 %v7556_v16  ;;  %v2415_v16 = vld [vmem:[%s12937_s13 + $0xf0] sm:$0xff]  ;;  %v2657_v10 = vld [vmem:[%s12937_s13 + $0x1d8] sm:$0xff] }
 0x642   :  { %v7654_v23 = vpack.c.bf16 %v2416_v21, %v2415_v16  ;;  %v2570_v21 = vld [vmem:[%s12937_s13 + $0x160] sm:$0xff] }
 0x644   :  { %7623 = vmatpush3.bf16.msra.mxu0 %v7558_v29  ;;  %v7678_v29 = vpack.c.bf16 %v2399_v24, %v2398_v22  ;;  %v2571_v22 = vld [vmem:[%s12937_s13 + $0x168] sm:$0xff] }
 0x645   :  { %7625 = vmatprep.subr.bf16.mxu0 %v7560_v30  ;;  %v2659_v24 = vld [vmem:[%s12937_s13 + $0x1e8] sm:$0xff] }
 0x648   :  { %7627 = vmatpush3.bf16.msra.mxu0 %v7562_v41 }
 0x649   :  { %7629 = vmatprep.subr.bf16.mxu0 %v7564_v42 }
 0x64c   :  { %7631 = vmatpush3.bf16.msra.mxu0 %v7566_v54 }
 0x64d   :  { %7656 = vmatprep.subr.bf16.mxu0 %v8655_v26 }
 0x64f   :  { %2375 = vmatmul.mubr.f32.vlgmr.msra.gmra.mrb[22].mxu0 %v10377_v4  ;;  %v7642_v4 = vpack.c.bf16 %v2408_v55, %v2407_v56  ;;  %v7708_v56 = vpack.c.bf16 %v2649_v33, %v2648_v28  ;;  %v2562_v55 = vld [vmem:[%s12937_s13 + $0x120] sm:$0xff]  ;;  %v2874_v28 = vld [vmem:[%s12952_s20 + $0x148] sm:$0xff] }
 0x650   :  { %7658 = vmatpush3.bf16.msra.mxu0 %v7657_v61  ;;  %6671 = vmatprep.mubr.msk.f32.mxu0 %vm8656_vm7, %v8653_v7  ;;  %v2646_v61 = vld [vmem:[%s12937_s13 + $0x180] sm:$0xff] }
 0x651   :  { %7659 = vmatprep.subr.bf16.mxu0 %v8655_v26  ;;  %7643 = vmatpush3.bf16.msra.mxu1 %v7642_v4  ;;  %v7705_v17 = vpack.c.bf16 %v2647_v6, %v2646_v61  ;;  %v2651_v4 = vld [vmem:[%s12937_s13 + $0x1a8] sm:$0xff]  ;;  %v2736_v6 = vld [vmem:[%s12937_s13 + $0x210] sm:$0xff] }
 0x652   :  { %7644 = vmatprep.subr.bf16.mxu1 %v8655_v26  ;;  %v7711_v19 = vpack.c.bf16 %v2651_v4, %v2650_v63  ;;  %v2739_v63 = vld [vmem:[%s12937_s13 + $0x228] sm:$0xff]  ;;  %v2873_v4 = vld [vmem:[%s12952_s20 + $0x140] sm:$0xff] }
 0x654   :  { %7661 = vmatpush3.bf16.msra.mxu0 %v7660_v18  ;;  %v2560_v18 = vld [vmem:[%s12937_s13 + $0x110] sm:$0xff] }
 0x655   :  { %7662 = vmatprep.subr.bf16.mxu0 %v8655_v26  ;;  %7646 = vmatpush3.bf16.msra.mxu1 %v7645_v32  ;;  %v2652_v32 = vld [vmem:[%s12937_s13 + $0x1b0] sm:$0xff] }
 0x656   :  { %7647 = vmatprep.subr.bf16.mxu1 %v8655_v26  ;;  %v7714_v44 = vpack.c.bf16 %v2653_v35, %v2652_v32  ;;  %v2740_v35 = vld [vmem:[%s12937_s13 + $0x230] sm:$0xff] }
 0x658   :  { %7664 = vmatpush3.bf16.msra.mxu0 %v7663_v51  ;;  %v7684_v51 = vpack.c.bf16 %v2561_v27, %v2560_v18  ;;  %v2869_v18 = vld [vmem:[%s12952_s20 + $0x120] sm:$0xff]  ;;  %v2871_v27 = vld [vmem:[%s12952_s20 + $0x130] sm:$0xff] }
 0x659   :  { %7665 = vmatprep.subr.bf16.mxu0 %v8655_v26  ;;  %7649 = vmatpush3.bf16.msra.mxu1 %v7648_v58  ;;  %v2654_v58 = vld [vmem:[%s12937_s13 + $0x1c0] sm:$0xff] }
 0x65a   :  { %7650 = vmatprep.subr.bf16.mxu1 %v8655_v26  ;;  %v7717_v43 = vpack.c.bf16 %v2655_v59, %v2654_v58  ;;  %v2882_v58 = vld [vmem:[%s12952_s20 + $0x188] sm:$0xff]  ;;  %v2884_v59 = vld [vmem:[%s12952_s20 + $0x198] sm:$0xff] }
 0x65c   :  { %7667 = vmatpush3.bf16.msra.mxu0 %v7666_v14  ;;  %v7687_v14 = vpack.c.bf16 %v2563_v62, %v2562_v55  ;;  %v2738_v55 = vld [vmem:[%s12937_s13 + $0x220] sm:$0xff] }
 0x65d   :  { %7668 = vmatprep.subr.bf16.mxu0 %v8655_v26  ;;  %7652 = vmatpush3.bf16.msra.mxu1 %v7651_v9  ;;  %v2656_v9 = vld [vmem:[%s12937_s13 + $0x1d0] sm:$0xff] }
 0x65e   :  { %7653 = vmatprep.subr.bf16.mxu1 %v8655_v26  ;;  %v7720_v16 = vpack.c.bf16 %v2657_v10, %v2656_v9  ;;  %v2743_v9 = vld [vmem:[%s12937_s13 + $0x248] sm:$0xff]  ;;  %v2881_v10 = vld [vmem:[%s12952_s20 + $0x180] sm:$0xff] }
 0x660   :  { %7670 = vmatpush3.bf16.msra.mxu0 %v7669_v38  ;;  %v7690_v38 = vpack.c.bf16 %v2565_v25, %v2564_v20  ;;  %v2880_v20 = vld [vmem:[%s12952_s20 + $0x178] sm:$0xff]  ;;  %v7735_v25 = vpack.c.bf16 %v2739_v63, %v2738_v55 }
 0x661   :  { %7671 = vmatprep.subr.bf16.mxu0 %v8655_v26  ;;  %7655 = vmatpush3.bf16.msra.mxu1 %v7654_v23  ;;  %v2658_v23 = vld [vmem:[%s12937_s13 + $0x1e0] sm:$0xff]  ;;  %v2836_v55 = vld [vmem:[%s12952_s20 + $0x38] sm:$0xff] }
 0x662   :  { %7680 = vmatprep.subr.bf16.mxu1 %v8655_v26 }
 0x664   :  { %7673 = vmatpush3.bf16.msra.mxu0 %v7672_v1  ;;  %v7693_v1 = vpack.c.bf16 %v2567_v57, %v2566_v52  ;;  %v2877_v52 = vld [vmem:[%s12952_s20 + $0x160] sm:$0xff]  ;;  %v2879_v57 = vld [vmem:[%s12952_s20 + $0x170] sm:$0xff] }
 0x665   :  { %7674 = vmatprep.subr.bf16.mxu0 %v8655_v26 }
 0x668   :  { %7676 = vmatpush3.bf16.msra.mxu0 %v7675_v15  ;;  %v7696_v15 = vpack.c.bf16 %v2569_v3, %v2568_v2  ;;  %v2742_v2 = vld [vmem:[%s12937_s13 + $0x240] sm:$0xff]  ;;  %v7768_v3 = vpack.c.bf16 %v2884_v59, %v2882_v58  ;;  %v2842_v58 = vld [vmem:[%s12952_s20 + $0x68] sm:$0xff]  ;;  %v2844_v59 = vld [vmem:[%s12952_s20 + $0x78] sm:$0xff] }
 0x669   :  { %7677 = vmatprep.subr.bf16.mxu0 %v8655_v26 }
 0x66c   :  { %7679 = vmatpush3.bf16.msra.mxu0 %v7678_v29  ;;  %v7699_v29 = vpack.c.bf16 %v2571_v22, %v2570_v21  ;;  %v2888_v21 = vld [vmem:[%s12952_s20 + $0x1b8] sm:$0xff]  ;;  %v7741_v22 = vpack.c.bf16 %v2743_v9, %v2742_v2  ;;  %v7796_v2 = vpack.c.bf16 %v2844_v59, %v2842_v58  ;;  %v2843_v9 = vld [vmem:[%s12952_s20 + $0x70] sm:$0xff]  ;;  %v3096_v59 = vld [vmem:[%s12952_s20 + $0x288] sm:$0xff] }
 0x66d   :  { %7704 = vmatprep.subr.bf16.mxu0 %v8655_v26  ;;  %v3093_v58 = vld [vmem:[%s12952_s20 + $0x270] sm:$0xff] }
 0x6c2   :  { %v6000_v30 = vpop.f32.mrb[16].mxu0 }
 0x6c3   :  { %v6001_v34 = vpop.f32.mrb[17].mxu0 }
 0x6c4   :  { %v6002_v36 = vadd.f32 %v6001_v34, %v6000_v30  ;;  %v7723_v30 = vpack.c.bf16 %v2659_v24, %v2658_v23  ;;  %v2572_v34 = vld [vmem:[%s12937_s13 + $0x170] sm:$0xff] }
 0x6c5   :  { %v2744_v24 = vld [vmem:[%s12937_s13 + $0x250] sm:$0xff] }
 0x6e2   :  { %v6035_v39 = vpop.f32.mrb[18].mxu0 }
 0x6e3   :  { %v6036_v40 = vpop.f32.mrb[19].mxu0 }
 0x6e4   :  { %v6037_v41 = vadd.f32 %v6036_v40, %v6035_v39  ;;  %v2660_v39 = vld [vmem:[%s12937_s13 + $0x1f0] sm:$0xff]  ;;  %v2661_v40 = vld [vmem:[%s12937_s13 + $0x1f8] sm:$0xff] }
 0x6e6   :  { %v2239_v42 = vmax.f32 %v6002_v36, %v6037_v41  ;;  %v2573_v36 = vld [vmem:[%s12937_s13 + $0x178] sm:$0xff]  ;;  %v2866_v41 = vld [vmem:[%s12952_s20 + $0x108] sm:$0xff] }
 0x702   :  { %v6070_v53 = vpop.f32.mrb[20].mxu0 }
 0x703   :  { %v6071_v0 = vpop.f32.mrb[21].mxu0 }
 0x704   :  { %v6072_v54 = vadd.f32 %v6071_v0, %v6070_v53  ;;  %v7702_v53 = vpack.c.bf16 %v2573_v36, %v2572_v34  ;;  %v7726_v0 = vpack.c.bf16 %v2661_v40, %v2660_v39  ;;  %v2885_v34 = vld [vmem:[%s12952_s20 + $0x1a0] sm:$0xff]  ;;  %v2887_v36 = vld [vmem:[%s12952_s20 + $0x1b0] sm:$0xff]  ;;  %v2890_v39 = vld [vmem:[%s12952_s20 + $0x1c8] sm:$0xff] }
 0x705   :  { %v2892_v40 = vld [vmem:[%s12952_s20 + $0x1d8] sm:$0xff] }
 0x722   :  { %v6105_v47 = vpop.f32.mrb[22].mxu0 }
 0x723   :  { %v6106_v5 = vpop.f32.mrb[23].mxu0 }
 0x724   :  { %v6107_v12 = vadd.f32 %v6106_v5, %v6105_v47  ;;  %v2735_v5 = vld [vmem:[%s12937_s13 + $0x208] sm:$0xff] }
 0x726   :  { %v2380_v31 = vmax.f32 %v6072_v54, %v6107_v12  ;;  %v2734_v54 = vld [vmem:[%s12937_s13 + $0x200] sm:$0xff] }
 0x727   :  { %v2865_v12 = vld [vmem:[%s12952_s20 + $0x100] sm:$0xff]  ;;  %v7729_v60 = vpack.c.bf16 %v2735_v5, %v2734_v54  ;;  %v2747_v54 = vld [vmem:[%s12937_s13 + $0x268] sm:$0xff]  ;;  %v2891_v5 = vld [vmem:[%s12952_s20 + $0x1d0] sm:$0xff] }
 0x728   :  { %v2381_v46 = vmax.f32 %v2239_v42, %v2380_v31  ;;  %v2868_v42 = vld [vmem:[%s12952_s20 + $0x118] sm:$0xff]  ;;  %v2867_v31 = vld [vmem:[%s12952_s20 + $0x110] sm:$0xff] }
 0x729   :  { %v7752_v47 = vpack.c.bf16 %v2868_v42, %v2866_v41  ;;  %v7754_v61 = vpack.c.bf16 %v2867_v31, %v2865_v12  ;;  %v7774_v42 = vpack.c.bf16 %v2887_v36, %v2885_v34  ;;  %v2894_v12 = vld [vmem:[%s12952_s20 + $0x1e8] sm:$0xff]  ;;  %v2896_v31 = vld [vmem:[%s12952_s20 + $0x1f8] sm:$0xff] }
 0x72a   :  { %2382 = vst [vmem:[#allocation3] sm:$0x1f] %v2381_v46  ;;  %v2870_v46 = vld [vmem:[%s12952_s20 + $0x128] sm:$0xff] }
 0x731   :  { %v2400_v37 = vld [vmem:[#allocation3 + $0x1] sm:$0x1]  ;;  %v2383_v48 = vld [vmem:[#allocation3] sm:$0x1]  ;;  %v2557_v33 = vld [vmem:[#allocation3 + $0x2] sm:$0x1] }
 0x732   :  { %6637 = vmatmul.mubr.f32.vlgmr.msra.gmra.mrb[24].mxu1 %v2400_v37  ;;  %6672 = vmatmul.mubr.f32.vlgmr.msra.gmra.mrb[24].mxu0 %v2383_v48  ;;  %v2645_v37 = vld [vmem:[#allocation3 + $0x3] sm:$0x1]  ;;  %v2876_v48 = vld [vmem:[%s12952_s20 + $0x158] sm:$0xff] }
 0x733   :  { %7682 = vmatpush3.bf16.msra.mxu1 %v7681_v8  ;;  %7706 = vmatpush3.bf16.msra.mxu0 %v7705_v17  ;;  %v2737_v8 = vld [vmem:[%s12937_s13 + $0x218] sm:$0xff]  ;;  %v7756_v17 = vpack.c.bf16 %v2872_v49, %v2870_v46  ;;  %v7760_v62 = vpack.c.bf16 %v2876_v48, %v2874_v28  ;;  %v2829_v48 = vld [vmem:[%s12952_s20] sm:$0xff] }
 0x734   :  { %7683 = vmatprep.subr.bf16.mxu1 %v8655_v26  ;;  %7707 = vmatprep.subr.bf16.mxu0 %v8655_v26 }
 0x735   :  { %6706 = vmatprep.mubr.msk.f32.mxu1 %vm8656_vm7, %v8653_v7  ;;  %6741 = vmatprep.mubr.msk.f32.mxu0 %vm8656_vm7, %v8653_v7 }
 0x737   :  { %7685 = vmatpush3.bf16.msra.mxu1 %v7684_v51  ;;  %7709 = vmatpush3.bf16.msra.mxu0 %v7708_v56  ;;  %v7732_v51 = vpack.c.bf16 %v2737_v8, %v2736_v6  ;;  %v7758_v56 = vpack.c.bf16 %v2871_v27, %v2869_v18  ;;  %v2749_v6 = vld [vmem:[%s12937_s13 + $0x278] sm:$0xff]  ;;  %v2893_v8 = vld [vmem:[%s12952_s20 + $0x1e0] sm:$0xff]  ;;  %v2830_v18 = vld [vmem:[%s12952_s20 + $0x8] sm:$0xff] }
 0x738   :  { %7686 = vmatprep.subr.bf16.mxu1 %v8655_v26  ;;  %7710 = vmatprep.subr.bf16.mxu0 %v8655_v26  ;;  %v2832_v27 = vld [vmem:[%s12952_s20 + $0x18] sm:$0xff] }
 0x73b   :  { %7688 = vmatpush3.bf16.msra.mxu1 %v7687_v14  ;;  %7712 = vmatpush3.bf16.msra.mxu0 %v7711_v19  ;;  %v2875_v14 = vld [vmem:[%s12952_s20 + $0x150] sm:$0xff]  ;;  %v2878_v19 = vld [vmem:[%s12952_s20 + $0x168] sm:$0xff] }
 0x73c   :  { %7689 = vmatprep.subr.bf16.mxu1 %v8655_v26  ;;  %7713 = vmatprep.subr.bf16.mxu0 %v8655_v26  ;;  %v7762_v32 = vpack.c.bf16 %v2875_v14, %v2873_v4  ;;  %v2833_v14 = vld [vmem:[%s12952_s20 + $0x20] sm:$0xff] }
 0x73f   :  { %7691 = vmatpush3.bf16.msra.mxu1 %v7690_v38  ;;  %7715 = vmatpush3.bf16.msra.mxu0 %v7714_v44  ;;  %v7764_v38 = vpack.c.bf16 %v2880_v20, %v2878_v19  ;;  %v2741_v44 = vld [vmem:[%s12937_s13 + $0x238] sm:$0xff]  ;;  %v2835_v19 = vld [vmem:[%s12952_s20 + $0x30] sm:$0xff] }
 0x740   :  { %7692 = vmatprep.subr.bf16.mxu1 %v8655_v26  ;;  %7716 = vmatprep.subr.bf16.mxu0 %v8655_v26  ;;  %v2733_v20 = vld [vmem:[#allocation3 + $0x4] sm:$0x1] }
 0x743   :  { %7694 = vmatpush3.bf16.msra.mxu1 %v7693_v1  ;;  %7718 = vmatpush3.bf16.msra.mxu0 %v7717_v43  ;;  %v7738_v1 = vpack.c.bf16 %v2741_v44, %v2740_v35  ;;  %v7766_v43 = vpack.c.bf16 %v2879_v57, %v2877_v52  ;;  %v7790_v35 = vpack.c.bf16 %v2835_v19, %v2833_v14  ;;  %v2837_v52 = vld [vmem:[%s12952_s20 + $0x40] sm:$0xff]  ;;  %v2839_v57 = vld [vmem:[%s12952_s20 + $0x50] sm:$0xff]  ;;  %v2826_v14 = vld [vmem:[%s12953_s25 + $0x28] sm:$0xff] }
 0x744   :  { %7695 = vmatprep.subr.bf16.mxu1 %v8655_v26  ;;  %7719 = vmatprep.subr.bf16.mxu0 %v8655_v26 }
 0x747   :  { %7697 = vmatpush3.bf16.msra.mxu1 %v7696_v15  ;;  %7721 = vmatpush3.bf16.msra.mxu0 %v7720_v16  ;;  %v2883_v15 = vld [vmem:[%s12952_s20 + $0x190] sm:$0xff]  ;;  %v2886_v16 = vld [vmem:[%s12952_s20 + $0x1a8] sm:$0xff] }
 0x748   :  { %7698 = vmatprep.subr.bf16.mxu1 %v8655_v26  ;;  %7722 = vmatprep.subr.bf16.mxu0 %v8655_v26  ;;  %v7770_v23 = vpack.c.bf16 %v2883_v15, %v2881_v10  ;;  %v2846_v10 = vld [vmem:[%s12952_s20 + $0x88] sm:$0xff]  ;;  %v2848_v15 = vld [vmem:[%s12952_s20 + $0x98] sm:$0xff] }
 0x74b   :  { %7700 = vmatpush3.bf16.msra.mxu1 %v7699_v29  ;;  %7724 = vmatpush3.bf16.msra.mxu0 %v7723_v30  ;;  %v7772_v29 = vpack.c.bf16 %v2888_v21, %v2886_v16  ;;  %v2745_v30 = vld [vmem:[%s12937_s13 + $0x258] sm:$0xff] }
 0x74c   :  { %7701 = vmatprep.subr.bf16.mxu1 %v8655_v26  ;;  %7725 = vmatprep.subr.bf16.mxu0 %v8655_v26  ;;  %v7744_v41 = vpack.c.bf16 %v2745_v30, %v2744_v24  ;;  %v2864_v21 = vld [vmem:[%s12953_s25 + $0x39] sm:$0xf]  ;;  %v2847_v24 = vld [vmem:[%s12952_s20 + $0x90] sm:$0xff] }
 0x74d   :  { %v2852_v30 = vld [vmem:[%s12952_s20 + $0xb8] sm:$0xff] }
 0x74f   :  { %7703 = vmatpush3.bf16.msra.mxu1 %v7702_v53  ;;  %7727 = vmatpush3.bf16.msra.mxu0 %v7726_v0  ;;  %v2746_v53 = vld [vmem:[%s12937_s13 + $0x260] sm:$0xff]  ;;  %v7776_v0 = vpack.c.bf16 %v2892_v40, %v2890_v39  ;;  %v2851_v40 = vld [vmem:[%s12952_s20 + $0xb0] sm:$0xff] }
 0x750   :  { %7728 = vmatprep.subr.bf16.mxu1 %v8655_v26  ;;  %7753 = vmatprep.subr.bf16.mxu0 %v7752_v47  ;;  %v2889_v47 = vld [vmem:[%s12952_s20 + $0x1c0] sm:$0xff]  ;;  %v7747_v46 = vpack.c.bf16 %v2747_v54, %v2746_v53 }
 0x751   :  { %v7778_v49 = vpack.c.bf16 %v2891_v5, %v2889_v47  ;;  %v2849_v39 = vld [vmem:[%s12952_s20 + $0xa0] sm:$0xff]  ;;  %v2855_v47 = vld [vmem:[%s12952_s20 + $0xd0] sm:$0xff]  ;;  %v2858_v5 = vld [vmem:[%s12952_s20 + $0xe8] sm:$0xff] }
 0x752   :  { %6707 = vmatmul.mubr.f32.vlgmr.msra.gmra.mrb[26].mxu1 %v2557_v33  ;;  %6742 = vmatmul.mubr.f32.vlgmr.msra.gmra.mrb[26].mxu0 %v2645_v37  ;;  %v7784_v37 = vpack.c.bf16 %v2832_v27, %v2830_v18  ;;  %v7806_v53 = vpack.c.bf16 %v2851_v40, %v2849_v39  ;;  %v2853_v54 = vld [vmem:[%s12952_s20 + $0xc0] sm:$0xff]  ;;  %v3081_v27 = vld [vmem:[%s12952_s20 + $0x210] sm:$0xff] }
 0x753   :  { %7730 = vmatpush3.bf16.msra.mxu1 %v7729_v60  ;;  %7755 = vmatpush1.bf16.msra.mxu0 %v7754_v61  ;;  %v2748_v60 = vld [vmem:[%s12937_s13 + $0x270] sm:$0xff]  ;;  %v7780_v61 = vpack.c.bf16 %v2896_v31, %v2894_v12  ;;  %v2860_v12 = vld [vmem:[%s12952_s20 + $0xf8] sm:$0xff]  ;;  %v7810_v31 = vpack.c.bf16 %v2855_v47, %v2853_v54  ;;  %v3079_v18 = vld [vmem:[%s12952_s20 + $0x200] sm:$0xff] }
 0x754   :  { %7731 = vmatprep.subr.bf16.mxu1 %v8655_v26  ;;  %7757 = vmatprep.subr.bf16.mxu0 %v7756_v17  ;;  %v2895_v17 = vld [vmem:[%s12952_s20 + $0x1f0] sm:$0xff]  ;;  %v7750_v28 = vpack.c.bf16 %v2749_v6, %v2748_v60  ;;  %v3082_v6 = vld [vmem:[%s12952_s20 + $0x218] sm:$0xff]  ;;  %v3103_v39 = vld [vmem:[%s12952_s20 + $0x2c0] sm:$0xff] }
 0x755   :  { %6776 = vmatprep.mubr.msk.f32.mxu1 %vm8656_vm7, %v8653_v7  ;;  %2961 = vmatprep.mubr.f32.mxu0 %v8653_v7  ;;  %v7782_v33 = vpack.c.bf16 %v2895_v17, %v2893_v8  ;;  %v2859_v60 = vld [vmem:[%s12952_s20 + $0xf0] sm:$0xff]  ;;  %v3107_v54 = vld [vmem:[%s12952_s20 + $0x2e0] sm:$0xff] }
 0x756   :  { %v3105_v40 = vld [vmem:[%s12952_s20 + $0x2d0] sm:$0xff] }
 0x757   :  { %7733 = vmatpush3.bf16.msra.mxu1 %v7732_v51  ;;  %7759 = vmatpush1.bf16.msra.mxu0 %v7758_v56  ;;  %v2831_v51 = vld [vmem:[%s12952_s20 + $0x10] sm:$0xff]  ;;  %v2834_v56 = vld [vmem:[%s12952_s20 + $0x28] sm:$0xff] }
 0x758   :  { %7734 = vmatprep.subr.bf16.mxu1 %v8655_v26  ;;  %7761 = vmatprep.subr.bf16.mxu0 %v7760_v62  ;;  %v2861_v62 = vld [vmem:[%s12953_s25 + $0x21] sm:$0xff]  ;;  %v7786_v63 = vpack.c.bf16 %v2831_v51, %v2829_v48  ;;  %v7788_v4 = vpack.c.bf16 %v2836_v55, %v2834_v56  ;;  %v7818_v48 = vpack.c.bf16 %v3081_v27, %v3079_v18  ;;  %v3085_v55 = vld [vmem:[%s12952_s20 + $0x230] sm:$0xff] }
 0x759   :  { %v3083_v56 = vld [vmem:[%s12952_s20 + $0x220] sm:$0xff]  ;;  %v3109_v47 = vld [vmem:[%s12952_s20 + $0x2f0] sm:$0xff] }
 0x75a   :  { %v3216_v27 = vld [vmem:[%s12952_s20 + $0x320] sm:$0xff] }
 0x75b   :  { %7736 = vmatpush3.bf16.msra.mxu1 %v7735_v25  ;;  %7763 = vmatpush1.bf16.msra.mxu0 %v7762_v32  ;;  %v2838_v25 = vld [vmem:[%s12952_s20 + $0x48] sm:$0xff]  ;;  %v2840_v32 = vld [vmem:[%s12952_s20 + $0x58] sm:$0xff] }
 0x75c   :  { %7737 = vmatprep.subr.bf16.mxu1 %v8655_v26  ;;  %7765 = vmatprep.subr.bf16.mxu0 %v7764_v38  ;;  %v2862_v38 = vld [vmem:[%s12953_s25 + $0x29] sm:$0xff]  ;;  %v7792_v44 = vpack.c.bf16 %v2840_v32, %v2838_v25 }
 0x75d   :  { %v3089_v25 = vld [vmem:[%s12952_s20 + $0x250] sm:$0xff]  ;;  %v3092_v32 = vld [vmem:[%s12952_s20 + $0x268] sm:$0xff] }
 0x75f   :  { %7739 = vmatpush3.bf16.msra.mxu1 %v7738_v1  ;;  %7767 = vmatpush1.bf16.msra.mxu0 %v7766_v43  ;;  %v7794_v1 = vpack.c.bf16 %v2839_v57, %v2837_v52  ;;  %v2863_v43 = vld [vmem:[%s12953_s25 + $0x31] sm:$0xff]  ;;  %v3091_v57 = vld [vmem:[%s12952_s20 + $0x260] sm:$0xff] }
 0x760   :  { %7740 = vmatprep.subr.bf16.mxu1 %v8655_v26  ;;  %7769 = vmatprep.subr.bf16.mxu0 %v7768_v3  ;;  %v2841_v3 = vld [vmem:[%s12952_s20 + $0x60] sm:$0xff] }
 0x761   :  { %v7798_v16 = vpack.c.bf16 %v2843_v9, %v2841_v3  ;;  %v3095_v9 = vld [vmem:[%s12952_s20 + $0x280] sm:$0xff] }
 0x763   :  { %7742 = vmatpush3.bf16.msra.mxu1 %v7741_v22  ;;  %7771 = vmatpush1.bf16.msra.mxu0 %v7770_v23  ;;  %v7800_v22 = vpack.c.bf16 %v2848_v15, %v2846_v10  ;;  %v2845_v23 = vld [vmem:[%s12952_s20 + $0x80] sm:$0xff]  ;;  %v3097_v10 = vld [vmem:[%s12952_s20 + $0x290] sm:$0xff]  ;;  %v3100_v15 = vld [vmem:[%s12952_s20 + $0x2a8] sm:$0xff] }
 0x764   :  { %7743 = vmatprep.subr.bf16.mxu1 %v8655_v26  ;;  %7773 = vmatprep.subr.bf16.mxu0 %v7772_v29  ;;  %v2850_v29 = vld [vmem:[%s12952_s20 + $0xa8] sm:$0xff]  ;;  %v7802_v34 = vpack.c.bf16 %v2847_v24, %v2845_v23  ;;  %v3099_v23 = vld [vmem:[%s12952_s20 + $0x2a0] sm:$0xff]  ;;  %v3101_v24 = vld [vmem:[%s12952_s20 + $0x2b0] sm:$0xff] }
 0x765   :  { %v7804_v36 = vpack.c.bf16 %v2852_v30, %v2850_v29  ;;  %v3104_v29 = vld [vmem:[%s12952_s20 + $0x2c8] sm:$0xff]  ;;  %v3106_v30 = vld [vmem:[%s12952_s20 + $0x2d8] sm:$0xff] }
 0x767   :  { %7745 = vmatpush3.bf16.msra.mxu1 %v7744_v41  ;;  %7775 = vmatpush1.bf16.msra.mxu0 %v7774_v42  ;;  %v2854_v41 = vld [vmem:[%s12952_s20 + $0xc8] sm:$0xff]  ;;  %v2856_v42 = vld [vmem:[%s12952_s20 + $0xd8] sm:$0xff] }
 0x768   :  { %7746 = vmatprep.subr.bf16.mxu1 %v8655_v26  ;;  %7777 = vmatprep.subr.bf16.mxu0 %v7776_v0  ;;  %v7808_v0 = vpack.c.bf16 %v2856_v42, %v2854_v41  ;;  %v3108_v41 = vld [vmem:[%s12952_s20 + $0x2e8] sm:$0xff]  ;;  %v3110_v42 = vld [vmem:[%s12952_s20 + $0x2f8] sm:$0xff] }
 0x76b   :  { %7748 = vmatpush3.bf16.msra.mxu1 %v7747_v46  ;;  %7779 = vmatpush1.bf16.msra.mxu0 %v7778_v49  ;;  %v7812_v46 = vpack.c.bf16 %v2860_v12, %v2858_v5  ;;  %v2857_v49 = vld [vmem:[%s12952_s20 + $0xe0] sm:$0xff]  ;;  %v3213_v5 = vld [vmem:[%s12952_s20 + $0x308] sm:$0xff]  ;;  %v3215_v12 = vld [vmem:[%s12952_s20 + $0x318] sm:$0xff] }
 0x76c   :  { %7749 = vmatprep.subr.bf16.mxu1 %v8655_v26  ;;  %7781 = vmatprep.subr.bf16.mxu0 %v7780_v61  ;;  %v3080_v61 = vld [vmem:[%s12952_s20 + $0x208] sm:$0xff]  ;;  %v7814_v8 = vpack.c.bf16 %v2859_v60, %v2857_v49  ;;  %v3212_v49 = vld [vmem:[%s12952_s20 + $0x300] sm:$0xff]  ;;  %v3214_v60 = vld [vmem:[%s12952_s20 + $0x310] sm:$0xff] }
 0x76d   :  { %v7816_v17 = vpack.c.bf16 %v3082_v6, %v3080_v61  ;;  %v3217_v61 = vld [vmem:[%s12952_s20 + $0x328] sm:$0xff]  ;;  %v3219_v6 = vld [vmem:[%s12952_s20 + $0x338] sm:$0xff] }
 0x76e   :  { %v7852_v18 = vpack.c.bf16 %v3219_v6, %v3217_v61  ;;  %v3351_v61 = vld [vmem:[%s12952_s20 + $0x430] sm:$0xff]  ;;  %v3354_v6 = vld [vmem:[%s12952_s20 + $0x448] sm:$0xff] }
 0x76f   :  { %7751 = vmatpush3.bf16.msra.mxu1 %v7750_v28  ;;  %7783 = vmatpush1.bf16.msra.mxu0 %v7782_v33  ;;  %v3084_v28 = vld [vmem:[%s12952_s20 + $0x228] sm:$0xff]  ;;  %v3086_v33 = vld [vmem:[%s12952_s20 + $0x238] sm:$0xff] }
 0x770   :  { %7785 = vmatprep.subr.bf16.mxu0 %v7784_v37  ;;  %v2825_v37 = vld [vmem:[%s12953_s25 + $0x20] sm:$0xff]  ;;  %v7820_v51 = vpack.c.bf16 %v3086_v33, %v3084_v28  ;;  %v3218_v28 = vld [vmem:[%s12952_s20 + $0x330] sm:$0xff]  ;;  %v3221_v33 = vld [vmem:[%s12952_s20 + $0x348] sm:$0xff] }
 0x772   :  { %6777 = vmatmul.mubr.f32.vlgmr.msra.gmra.mrb[28].mxu1 %v2733_v20  ;;  %2962 = vmatmul.mubr.f32.vlgmr.msra.gmra.mrb[28].mxu0 %v2861_v62  ;;  %v3088_v62 = vld [vmem:[%s12952_s20 + $0x248] sm:$0xff]  ;;  %v3087_v20 = vld [vmem:[%s12952_s20 + $0x240] sm:$0xff] }
 0x773   :  { %7787 = vmatpush1.bf16.msra.mxu0 %v7786_v63  ;;  %2967 = vmatprep.mubr.f32.mxu0 %v8653_v7  ;;  %v3090_v63 = vld [vmem:[%s12952_s20 + $0x258] sm:$0xff] }
 0x774   :  { %7789 = vmatprep.subr.bf16.mxu0 %v7788_v4  ;;  %3580 = vmatprep.mubr.f32.mxu1 %v8653_v7  ;;  %v7822_v4 = vpack.c.bf16 %v3085_v55, %v3083_v56  ;;  %v7824_v19 = vpack.c.bf16 %v3090_v63, %v3088_v62  ;;  %v3220_v55 = vld [vmem:[%s12952_s20 + $0x340] sm:$0xff]  ;;  %v3222_v62 = vld [vmem:[%s12952_s20 + $0x350] sm:$0xff]  ;;  %v3225_v63 = vld [vmem:[%s12952_s20 + $0x368] sm:$0xff] }
 0x776   :  { %2968 = vmatmul.mubr.f32.gmra.mrb[30].mxu0 %v2862_v38  ;;  %v7826_v38 = vpack.c.bf16 %v3089_v25, %v3087_v20  ;;  %v3224_v25 = vld [vmem:[%s12952_s20 + $0x360] sm:$0xff] }
 0x777   :  { %7791 = vmatpush1.bf16.msra.mxu0 %v7790_v35  ;;  %2973 = vmatprep.mubr.f32.mxu0 %v8653_v7  ;;  %v3094_v35 = vld [vmem:[%s12952_s20 + $0x278] sm:$0xff] }
 0x778   :  { %7793 = vmatprep.subr.bf16.mxu0 %v7792_v44  ;;  %v2827_v44 = vld [vmem:[%s12953_s25 + $0x30] sm:$0xff]  ;;  %v7828_v52 = vpack.c.bf16 %v3094_v35, %v3092_v32  ;;  %v3229_v35 = vld [vmem:[%s12952_s20 + $0x388] sm:$0xff] }
 0x779   :  { %v3226_v32 = vld [vmem:[%s12952_s20 + $0x370] sm:$0xff] }
 0x77a   :  { %2974 = vmatmul.mubr.f32.gmra.mrb[32].mxu0 %v2863_v43  ;;  %v7830_v43 = vpack.c.bf16 %v3093_v58, %v3091_v57  ;;  %v3228_v58 = vld [vmem:[%s12952_s20 + $0x380] sm:$0xff] }
 0x77b   :  { %7795 = vmatpush1.bf16.msra.mxu0 %v7794_v1  ;;  %2979 = vmatprep.mubr.f32.mxu0 %v8653_v7  ;;  %v3098_v1 = vld [vmem:[%s12952_s20 + $0x298] sm:$0xff] }
 0x77c   :  { %7797 = vmatprep.subr.bf16.mxu0 %v7796_v2  ;;  %v2828_v2 = vld [vmem:[%s12953_s25 + $0x38] sm:$0xf]  ;;  %v7832_v3 = vpack.c.bf16 %v3098_v1, %v3096_v59  ;;  %v3230_v59 = vld [vmem:[%s12952_s20 + $0x390] sm:$0xff]  ;;  %v3233_v1 = vld [vmem:[%s12952_s20 + $0x3a8] sm:$0xff] }
 0x77e   :  { %2980 = vmatmul.mubr.f32.gmra.mrb[34].mxu0 %v2864_v21  ;;  %v7834_v21 = vpack.c.bf16 %v3097_v10, %v3095_v9  ;;  %v3232_v9 = vld [vmem:[%s12952_s20 + $0x3a0] sm:$0xff]  ;;  %v3234_v10 = vld [vmem:[%s12952_s20 + $0x3b0] sm:$0xff] }
 0x77f   :  { %7799 = vmatpush1.bf16.msra.mxu0 %v7798_v16  ;;  %3050 = vmatprep.mubr.f32.mxu0 %v8653_v7  ;;  %v3102_v16 = vld [vmem:[%s12952_s20 + $0x2b8] sm:$0xff] }
 0x780   :  { %7801 = vmatprep.subr.bf16.mxu0 %v7800_v22  ;;  %v7836_v22 = vpack.c.bf16 %v3102_v16, %v3100_v15  ;;  %v3237_v15 = vld [vmem:[%s12952_s20 + $0x3c8] sm:$0xff]  ;;  %v3239_v16 = vld [vmem:[%s12952_s20 + $0x3d8] sm:$0xff] }
 0x783   :  { %7803 = vmatpush1.bf16.msra.mxu0 %v7802_v34  ;;  %v7838_v34 = vpack.c.bf16 %v3101_v24, %v3099_v23  ;;  %v3236_v23 = vld [vmem:[%s12952_s20 + $0x3c0] sm:$0xff]  ;;  %v3238_v24 = vld [vmem:[%s12952_s20 + $0x3d0] sm:$0xff] }
 0x784   :  { %7805 = vmatprep.subr.bf16.mxu0 %v7804_v36  ;;  %v7840_v36 = vpack.c.bf16 %v3106_v30, %v3104_v29  ;;  %v3241_v29 = vld [vmem:[%s12952_s20 + $0x3e8] sm:$0xff]  ;;  %v3243_v30 = vld [vmem:[%s12952_s20 + $0x3f8] sm:$0xff] }
 0x787   :  { %7807 = vmatpush1.bf16.msra.mxu0 %v7806_v53  ;;  %v7842_v53 = vpack.c.bf16 %v3105_v40, %v3103_v39  ;;  %v3240_v39 = vld [vmem:[%s12952_s20 + $0x3e0] sm:$0xff]  ;;  %v3242_v40 = vld [vmem:[%s12952_s20 + $0x3f0] sm:$0xff] }
 0x788   :  { %7809 = vmatprep.subr.bf16.mxu0 %v7808_v0  ;;  %v7844_v0 = vpack.c.bf16 %v3110_v42, %v3108_v41  ;;  %v3346_v41 = vld [vmem:[%s12952_s20 + $0x408] sm:$0xff]  ;;  %v3348_v42 = vld [vmem:[%s12952_s20 + $0x418] sm:$0xff] }
 0x78b   :  { %7811 = vmatpush1.bf16.msra.mxu0 %v7810_v31  ;;  %v7846_v31 = vpack.c.bf16 %v3109_v47, %v3107_v54  ;;  %v3345_v54 = vld [vmem:[%s12952_s20 + $0x400] sm:$0xff]  ;;  %v3347_v47 = vld [vmem:[%s12952_s20 + $0x410] sm:$0xff] }
 0x78c   :  { %7813 = vmatprep.subr.bf16.mxu0 %v7812_v46  ;;  %v7848_v46 = vpack.c.bf16 %v3215_v12, %v3213_v5  ;;  %v3350_v5 = vld [vmem:[%s12952_s20 + $0x428] sm:$0xff]  ;;  %v3352_v12 = vld [vmem:[%s12952_s20 + $0x438] sm:$0xff] }
 0x78f   :  { %7815 = vmatpush1.bf16.msra.mxu0 %v7814_v8  ;;  %v3075_v8 = vld [vmem:[%s12953_s25 + $0x22] sm:$0xff] }
 0x790   :  { %7817 = vmatprep.subr.bf16.mxu0 %v7816_v17  ;;  %v7850_v17 = vpack.c.bf16 %v3214_v60, %v3212_v49  ;;  %v7884_v49 = vpack.c.bf16 %v3352_v12, %v3350_v5  ;;  %v3349_v60 = vld [vmem:[%s12952_s20 + $0x420] sm:$0xff] }
 0x792   :  { %3051 = vmatmul.mubr.f32.vlgmr.msra.gmra.mrb[28].mxu0 %v2825_v37  ;;  %v3223_v37 = vld [vmem:[%s12952_s20 + $0x358] sm:$0xff] }
 0x793   :  { %7819 = vmatpush1.bf16.msra.mxu0 %v7818_v48  ;;  %3056 = vmatprep.mubr.f32.mxu0 %v8653_v7  ;;  %v7854_v48 = vpack.c.bf16 %v3218_v28, %v3216_v27  ;;  %v7856_v56 = vpack.c.bf16 %v3223_v37, %v3221_v33  ;;  %v3353_v28 = vld [vmem:[%s12952_s20 + $0x440] sm:$0xff]  ;;  %v3355_v33 = vld [vmem:[%s12952_s20 + $0x450] sm:$0xff]  ;;  %v3358_v37 = vld [vmem:[%s12952_s20 + $0x468] sm:$0xff] }
 0x794   :  { %7821 = vmatprep.subr.bf16.mxu0 %v7820_v51  ;;  %v3076_v51 = vld [vmem:[%s12953_s25 + $0x2a] sm:$0xff] }
 0x796   :  { %3057 = vmatmul.mubr.f32.gmra.mrb[30].mxu0 %v2826_v14  ;;  %v7858_v14 = vpack.c.bf16 %v3222_v62, %v3220_v55  ;;  %v3357_v62 = vld [vmem:[%s12952_s20 + $0x460] sm:$0xff] }
 0x797   :  { %7823 = vmatpush1.bf16.msra.mxu0 %v7822_v4  ;;  %3062 = vmatprep.mubr.f32.mxu0 %v8653_v7  ;;  %v3227_v4 = vld [vmem:[%s12952_s20 + $0x378] sm:$0xff] }
 0x798   :  { %7825 = vmatprep.subr.bf16.mxu0 %v7824_v19  ;;  %v3077_v19 = vld [vmem:[%s12953_s25 + $0x32] sm:$0xff]  ;;  %v7860_v20 = vpack.c.bf16 %v3227_v4, %v3225_v63  ;;  %v3362_v4 = vld [vmem:[%s12952_s20 + $0x488] sm:$0xff] }
 0x799   :  { %v3359_v63 = vld [vmem:[%s12952_s20 + $0x470] sm:$0xff] }
 0x79a   :  { %3063 = vmatmul.mubr.f32.gmra.mrb[32].mxu0 %v2827_v44  ;;  %v7862_v44 = vpack.c.bf16 %v3226_v32, %v3224_v25  ;;  %v3361_v32 = vld [vmem:[%s12952_s20 + $0x480] sm:$0xff] }
 0x79b   :  { %7827 = vmatpush1.bf16.msra.mxu0 %v7826_v38  ;;  %3068 = vmatprep.mubr.f32.mxu0 %v8653_v7  ;;  %v3231_v38 = vld [vmem:[%s12952_s20 + $0x398] sm:$0xff] }
 0x79c   :  { %7829 = vmatprep.subr.bf16.mxu0 %v7828_v52  ;;  %v3078_v52 = vld [vmem:[%s12953_s25 + $0x3a] sm:$0xf]  ;;  %v7864_v57 = vpack.c.bf16 %v3231_v38, %v3229_v35  ;;  %v3363_v35 = vld [vmem:[%s12952_s20 + $0x490] sm:$0xff]  ;;  %v3366_v38 = vld [vmem:[%s12952_s20 + $0x4a8] sm:$0xff] }
 0x79e   :  { %3069 = vmatmul.mubr.f32.gmra.mrb[34].mxu0 %v2828_v2  ;;  %v7866_v2 = vpack.c.bf16 %v3230_v59, %v3228_v58  ;;  %v3365_v58 = vld [vmem:[%s12952_s20 + $0x4a0] sm:$0xff]  ;;  %v3367_v59 = vld [vmem:[%s12952_s20 + $0x4b0] sm:$0xff] }
 0x79f   :  { %7831 = vmatpush1.bf16.msra.mxu0 %v7830_v43  ;;  %3175 = vmatprep.mubr.f32.mxu0 %v8653_v7  ;;  %v3235_v43 = vld [vmem:[%s12952_s20 + $0x3b8] sm:$0xff] }
 0x7a0   :  { %7833 = vmatprep.subr.bf16.mxu0 %v7832_v3  ;;  %v7868_v3 = vpack.c.bf16 %v3235_v43, %v3233_v1  ;;  %v3370_v1 = vld [vmem:[%s12952_s20 + $0x4c8] sm:$0xff]  ;;  %v3372_v43 = vld [vmem:[%s12952_s20 + $0x4d8] sm:$0xff] }
 0x7a3   :  { %7835 = vmatpush1.bf16.msra.mxu0 %v7834_v21  ;;  %v7870_v21 = vpack.c.bf16 %v3234_v10, %v3232_v9  ;;  %v3369_v9 = vld [vmem:[%s12952_s20 + $0x4c0] sm:$0xff]  ;;  %v3371_v10 = vld [vmem:[%s12952_s20 + $0x4d0] sm:$0xff] }
 0x7a4   :  { %7837 = vmatprep.subr.bf16.mxu0 %v7836_v22  ;;  %v7872_v22 = vpack.c.bf16 %v3239_v16, %v3237_v15  ;;  %v3374_v15 = vld [vmem:[%s12952_s20 + $0x4e8] sm:$0xff]  ;;  %v3376_v16 = vld [vmem:[%s12952_s20 + $0x4f8] sm:$0xff] }
 0x7a7   :  { %7839 = vmatpush1.bf16.msra.mxu0 %v7838_v34  ;;  %v7874_v34 = vpack.c.bf16 %v3238_v24, %v3236_v23  ;;  %v3373_v23 = vld [vmem:[%s12952_s20 + $0x4e0] sm:$0xff]  ;;  %v3375_v24 = vld [vmem:[%s12952_s20 + $0x4f0] sm:$0xff] }
 0x7a8   :  { %7841 = vmatprep.subr.bf16.mxu0 %v7840_v36  ;;  %v7876_v36 = vpack.c.bf16 %v3243_v30, %v3241_v29  ;;  %v7910_v29 = vpack.c.bf16 %v3375_v24, %v3373_v23  ;;  %v3341_v30 = vld [vmem:[%s12953_s25 + $0x24] sm:$0xff] }
 0x7a9   :  { %v3503_v23 = vld [vmem:[%s12957_s26 + $0x8] sm:$0x3f] }
 0x7ab   :  { %7843 = vmatpush1.bf16.msra.mxu0 %v7842_v53  ;;  %v7878_v53 = vpack.c.bf16 %v3242_v40, %v3240_v39  ;;  %v3344_v39 = vld [vmem:[%s12953_s25 + $0x3c] sm:$0xf] }
 0x7ac   :  { %7845 = vmatprep.subr.bf16.mxu0 %v7844_v0  ;;  %v7880_v0 = vpack.c.bf16 %v3348_v42, %v3346_v41 }
 0x7af   :  { %7847 = vmatpush1.bf16.msra.mxu0 %v7846_v31  ;;  %v3208_v31 = vld [vmem:[%s12953_s25 + $0x23] sm:$0xff] }
 0x7b0   :  { %7849 = vmatprep.subr.bf16.mxu0 %v7848_v46  ;;  %v7882_v46 = vpack.c.bf16 %v3347_v47, %v3345_v54 }
 0x7b2   :  { %3176 = vmatmul.mubr.f32.vlgmr.msra.gmra.mrb[28].mxu0 %v3075_v8  ;;  %v3356_v8 = vld [vmem:[%s12952_s20 + $0x458] sm:$0xff] }
 0x7b3   :  { %7851 = vmatpush1.bf16.msra.mxu0 %v7850_v17  ;;  %3181 = vmatprep.mubr.f32.mxu0 %v8653_v7  ;;  %v7886_v17 = vpack.c.bf16 %v3351_v61, %v3349_v60  ;;  %v7888_v27 = vpack.c.bf16 %v3356_v8, %v3354_v6  ;;  %v2821_v60 = vld [vmem:[%s12938_s14] sm:$0x1] }
 0x7b4   :  { %7853 = vmatprep.subr.bf16.mxu0 %v7852_v18  ;;  %v3209_v18 = vld [vmem:[%s12953_s25 + $0x2b] sm:$0xff] }
 0x7b6   :  { %3182 = vmatmul.mubr.f32.gmra.mrb[30].mxu0 %v3076_v51  ;;  %v7890_v51 = vpack.c.bf16 %v3355_v33, %v3353_v28 }
 0x7b7   :  { %7855 = vmatpush1.bf16.msra.mxu0 %v7854_v48  ;;  %3187 = vmatprep.mubr.f32.mxu0 %v8653_v7  ;;  %v3360_v48 = vld [vmem:[%s12952_s20 + $0x478] sm:$0xff] }
 0x7b8   :  { %7857 = vmatprep.subr.bf16.mxu0 %v7856_v56  ;;  %v3210_v56 = vld [vmem:[%s12953_s25 + $0x33] sm:$0xff]  ;;  %v7892_v55 = vpack.c.bf16 %v3360_v48, %v3358_v37 }
 0x7ba   :  { %3188 = vmatmul.mubr.f32.gmra.mrb[32].mxu0 %v3077_v19  ;;  %v7894_v19 = vpack.c.bf16 %v3359_v63, %v3357_v62 }
 0x7bb   :  { %7859 = vmatpush1.bf16.msra.mxu0 %v7858_v14  ;;  %3193 = vmatprep.mubr.f32.mxu0 %v8653_v7  ;;  %v3364_v14 = vld [vmem:[%s12952_s20 + $0x498] sm:$0xff] }
 0x7bc   :  { %7861 = vmatprep.subr.bf16.mxu0 %v7860_v20  ;;  %v3211_v20 = vld [vmem:[%s12953_s25 + $0x3b] sm:$0xf]  ;;  %v7896_v25 = vpack.c.bf16 %v3364_v14, %v3362_v4 }
 0x7be   :  { %3194 = vmatmul.mubr.f32.gmra.mrb[34].mxu0 %v3078_v52  ;;  %v7898_v52 = vpack.c.bf16 %v3363_v35, %v3361_v32 }
 0x7bf   :  { %7863 = vmatpush1.bf16.msra.mxu0 %v7862_v44  ;;  %3308 = vmatprep.mubr.f32.mxu0 %v8653_v7  ;;  %v3368_v44 = vld [vmem:[%s12952_s20 + $0x4b8] sm:$0xff] }
 0x7c0   :  { %7865 = vmatprep.subr.bf16.mxu0 %v7864_v57  ;;  %v7900_v57 = vpack.c.bf16 %v3368_v44, %v3366_v38 }
 0x7c3   :  { %7867 = vmatpush1.bf16.msra.mxu0 %v7866_v2  ;;  %v7902_v2 = vpack.c.bf16 %v3367_v59, %v3365_v58 }
 0x7c4   :  { %7869 = vmatprep.subr.bf16.mxu0 %v7868_v3  ;;  %v7904_v3 = vpack.c.bf16 %v3372_v43, %v3370_v1 }
 0x7c7   :  { %7871 = vmatpush1.bf16.msra.mxu0 %v7870_v21  ;;  %v7906_v21 = vpack.c.bf16 %v3371_v10, %v3369_v9 }
 0x7c8   :  { %7873 = vmatprep.subr.bf16.mxu0 %v7872_v22  ;;  %v7908_v22 = vpack.c.bf16 %v3376_v16, %v3374_v15  ;;  %v3502_v16 = vld [vmem:[%s12957_s26] sm:$0xff] }
 0x7cb   :  { %7875 = vmatpush1.bf16.msra.mxu0 %v7874_v34  ;;  %v3342_v34 = vld [vmem:[%s12953_s25 + $0x2c] sm:$0xff] }
 0x7cc   :  { %7877 = vmatprep.subr.bf16.mxu0 %v7876_v36  ;;  %v3343_v36 = vld [vmem:[%s12953_s25 + $0x34] sm:$0xff] }
 0x7cf   :  { %7879 = vmatpush1.bf16.msra.mxu0 %v7878_v53 }
 0x7d0   :  { %7881 = vmatprep.subr.bf16.mxu0 %v7880_v0 }
 0x7d2   :  { %3309 = vmatmul.mubr.f32.vlgmr.msra.gmra.mrb[28].mxu0 %v3208_v31 }
 0x7d3   :  { %7883 = vmatpush1.bf16.msra.mxu0 %v7882_v46  ;;  %3314 = vmatprep.mubr.f32.mxu0 %v8653_v7 }
 0x7d4   :  { %7885 = vmatprep.subr.bf16.mxu0 %v7884_v49 }
 0x7d6   :  { %3315 = vmatmul.mubr.f32.gmra.mrb[30].mxu0 %v3209_v18  ;;  %v3474_v18 = vld [vmem:[%s12954_s23] sm:$0x3] }
 0x7d7   :  { %7887 = vmatpush1.bf16.msra.mxu0 %v7886_v17  ;;  %3320 = vmatprep.mubr.f32.mxu0 %v8653_v7  ;;  %v3483_v33 = vrot.slane %v3474_v18, %v9325_v13 }
 0x7d8   :  { %7889 = vmatprep.subr.bf16.mxu0 %v7888_v27  ;;  %v3479_v27 = vrot.slane %v3474_v18, %v9320_v11  ;;  %v3703_v18 = vld [vmem:[%s12929_s5 + $0xc8] sm:$0xff] }
 0x7da   :  { %3321 = vmatmul.mubr.f32.gmra.mrb[32].mxu0 %v3210_v56 }
 0x7db   :  { %7891 = vmatpush1.bf16.msra.mxu0 %v7890_v51  ;;  %3326 = vmatprep.mubr.f32.mxu0 %v8653_v7 }
 0x7dc   :  { %7893 = vmatprep.subr.bf16.mxu0 %v7892_v55 }
 0x7de   :  { %3327 = vmatmul.mubr.f32.gmra.mrb[34].mxu0 %v3211_v20 }
 0x7df   :  { %7895 = vmatpush1.bf16.msra.mxu0 %v7894_v19  ;;  %3441 = vmatprep.mubr.f32.mxu0 %v8653_v7 }
 0x7e0   :  { %7897 = vmatprep.subr.bf16.mxu0 %v7896_v25 }
 0x7e3   :  { %7899 = vmatpush1.bf16.msra.mxu0 %v7898_v52 }
 0x7e4   :  { %7901 = vmatprep.subr.bf16.mxu0 %v7900_v57 }
 0x7e7   :  { %7903 = vmatpush1.bf16.msra.mxu0 %v7902_v2 }
 0x7e8   :  { %7905 = vmatprep.subr.bf16.mxu0 %v7904_v3 }
 0x7eb   :  { %7907 = vmatpush1.bf16.msra.mxu0 %v7906_v21  ;;  %v3694_v21 = vld [vmem:[%s12929_s5 + $0x80] sm:$0xff] }
 0x7ec   :  { %7909 = vmatprep.subr.bf16.mxu0 %v7908_v22  ;;  %v3695_v22 = vld [vmem:[%s12929_s5 + $0x88] sm:$0xff] }
 0x7ed   :  { %v11366_v24 = vpack.c.bf16 %v3695_v22, %v3694_v21 }
 0x7ef   :  { %7911 = vmatpush1.bf16.msra.mxu0 %v7910_v29  ;;  %v3678_v29 = vld [vmem:[%s12929_s5] sm:$0xff] }
 0x7f2   :  { %3442 = vmatmul.mubr.f32.vlgmr.msra.gmra.mrb[28].mxu0 %v3341_v30  ;;  %v3679_v30 = vld [vmem:[%s12929_s5 + $0x8] sm:$0xff] }
 0x7f3   :  { %3447 = vmatprep.mubr.f32.mxu0 %v8653_v7 }
 0x7f6   :  { %3448 = vmatmul.mubr.f32.gmra.mrb[30].mxu0 %v3342_v34  ;;  %v3696_v34 = vld [vmem:[%s12929_s5 + $0x90] sm:$0xff] }
 0x7f7   :  { %3453 = vmatprep.mubr.f32.mxu0 %v8653_v7 }
 0x7fa   :  { %3454 = vmatmul.mubr.f32.gmra.mrb[32].mxu0 %v3343_v36  ;;  %v3697_v36 = vld [vmem:[%s12929_s5 + $0x98] sm:$0xff] }
 0x7fb   :  { %3459 = vmatprep.mubr.f32.mxu0 %v8653_v7 }
 0x7fe   :  { %3460 = vmatmul.mubr.f32.gmra.mrb[34].mxu0 %v3344_v39  ;;  %v3593_v39 = vld [vmem:[%s12928_s4] sm:$0xff] }
 0x7ff   :  { %4182 = vmatprep.mubr.f32.mxu0 %v8653_v7 }
 0x805   :  { %v2483_v40 = vpop.f32.mrb[24].mxu1  ;;  %v2553_v41 = vpop.f32.mrb[24].mxu0 }
 0x806   :  { %v2554_v42 = vadd.f32 %v2553_v41, %v2483_v40  ;;  %v6638_v53 = vpop.f32.mrb[25].mxu1  ;;  %v6673_v0 = vpop.f32.mrb[25].mxu0  ;;  %v11387_v40 = vpack.c.bf16 %v3679_v30, %v3678_v29  ;;  %v11390_v41 = vpack.c.bf16 %v3697_v36, %v3696_v34  ;;  %v3787_v29 = vld [vmem:[%s12930_s6 + $0x10] sm:$0xff]  ;;  %v3788_v30 = vld [vmem:[%s12930_s6 + $0x18] sm:$0xff]  ;;  %v3805_v34 = vld [vmem:[%s12930_s6 + $0xa0] sm:$0xff] }
 0x807   :  { %v3698_v53 = vld [vmem:[%s12929_s5 + $0xa0] sm:$0xff]  ;;  %v3699_v0 = vld [vmem:[%s12929_s5 + $0xa8] sm:$0xff] }
 0x808   :  { %v3806_v36 = vld [vmem:[%s12930_s6 + $0xa8] sm:$0xff] }
 0x825   :  { %v2640_v54 = vpop.f32.mrb[26].mxu1  ;;  %v2728_v47 = vpop.f32.mrb[26].mxu0 }
 0x826   :  { %v2644_v5 = vadd.f32 %v2640_v54, %v2554_v42  ;;  %v6708_v12 = vpop.f32.mrb[27].mxu1  ;;  %v6743_v31 = vpop.f32.mrb[27].mxu0  ;;  %v3680_v42 = vld [vmem:[%s12929_s5 + $0x10] sm:$0xff]  ;;  %v3594_v54 = vld [vmem:[%s12928_s4 + $0x8] sm:$0x3f] }
 0x827   :  { %v3682_v12 = vld [vmem:[%s12929_s5 + $0x20] sm:$0xff]  ;;  %v3683_v31 = vld [vmem:[%s12929_s5 + $0x28] sm:$0xff] }
 0x828   :  { %v2732_v46 = vadd.f32 %v2728_v47, %v2644_v5  ;;  %v11410_v47 = vpack.c.bf16 %v3681_v45, %v3680_v42  ;;  %v11413_v5 = vpack.c.bf16 %v3699_v0, %v3698_v53  ;;  %v11558_v42 = vpack.c.bf16 %v3788_v30, %v3787_v29  ;;  %v3789_v0 = vld [vmem:[%s12930_s6 + $0x20] sm:$0xff]  ;;  %v3816_v29 = vld [vmem:[%s12930_s6 + $0xf8] sm:$0xff] }
 0x829   :  { %v11561_v53 = vpack.c.bf16 %v3806_v36, %v3805_v34  ;;  %v3799_v36 = vld [vmem:[%s12930_s6 + $0x70] sm:$0xff] }
 0x845   :  { %v2816_v49 = vpop.f32.mrb[28].mxu1 }
 0x846   :  { %v2820_v61 = vadd.f32 %v2816_v49, %v2732_v46  ;;  %v6778_v6 = vpop.f32.mrb[29].mxu1  ;;  %v3700_v46 = vld [vmem:[%s12929_s5 + $0xb0] sm:$0xff]  ;;  %v3701_v49 = vld [vmem:[%s12929_s5 + $0xb8] sm:$0xff] }
 0x847   :  { %v3684_v6 = vld [vmem:[%s12929_s5 + $0x30] sm:$0xff] }
 0x848   :  { %v2822_v8 = vadd.f32 %v2821_v60, %v2820_v61  ;;  %v11429_v60 = vpack.c.bf16 %v3683_v31, %v3682_v12  ;;  %v11432_v61 = vpack.c.bf16 %v3701_v49, %v3700_v46  ;;  %v3807_v12 = vld [vmem:[%s12930_s6 + $0xb0] sm:$0xff]  ;;  %v3808_v31 = vld [vmem:[%s12930_s6 + $0xb8] sm:$0xff] }
 0x84a   :  { %v2823_v17 = vmax.f32 %v2822_v8, 0.0  ;;  %v3685_v8 = vld [vmem:[%s12929_s5 + $0x38] sm:$0xff] }
 0x84c   :  { %2824 = vst [vmem:[#allocation4] sm:$0x1] %v2823_v17  ;;  %v3702_v17 = vld [vmem:[%s12929_s5 + $0xc0] sm:$0xff] }
 0x8c5   :  { %v3443_v28 = vpop.f32.mrb[28].mxu0 }
 0x8c6   :  { %v3445_v37 = vpop.f32.mrb[29].mxu0  ;;  %v3486_v48 = vadd.f32 %v3479_v27, %v3443_v28  ;;  %v11450_v28 = vpack.c.bf16 %v3703_v18, %v3702_v17  ;;  %v3792_v17 = vld [vmem:[%s12930_s6 + $0x38] sm:$0xff] }
 0x8c7   :  { %v3487_v51 = vadd.f32 %v3483_v33, %v3445_v37  ;;  %v3687_v37 = vld [vmem:[%s12929_s5 + $0x48] sm:$0xff] }
 0x8c8   :  { %v3494_v4 = vmax.f32 %v3486_v48, 0.0  ;;  %v3704_v48 = vld [vmem:[%s12929_s5 + $0xd0] sm:$0xff] }
 0x8c9   :  { %v3449_v56 = vpop.f32.mrb[30].mxu0  ;;  %v3495_v19 = vmax.f32 %v3487_v51, 0.0  ;;  %v3705_v51 = vld [vmem:[%s12929_s5 + $0xd8] sm:$0xff] }
 0x8ca   :  { %v3488_v55 = vadd.f32 %v3479_v27, %v3449_v56  ;;  %v3451_v62 = vpop.f32.mrb[31].mxu0 }
 0x8cb   :  { %v3489_v63 = vadd.f32 %v3483_v33, %v3451_v62  ;;  %v3688_v62 = vld [vmem:[%s12929_s5 + $0x50] sm:$0xff] }
 0x8cc   :  { %v3496_v14 = vmax.f32 %v3488_v55, 0.0  ;;  %v11468_v55 = vpack.c.bf16 %v3705_v51, %v3704_v48 }
 0x8cd   :  { %v3497_v20 = vmax.f32 %v3489_v63, 0.0  ;;  %v3455_v25 = vpop.f32.mrb[32].mxu0  ;;  %v3689_v63 = vld [vmem:[%s12929_s5 + $0x58] sm:$0xff] }
 0x8ce   :  { %v7914_v32 = vpack.c.bf16 %v3496_v14, %v3494_v4  ;;  %v3457_v35 = vpop.f32.mrb[33].mxu0  ;;  %v3490_v44 = vadd.f32 %v3479_v27, %v3455_v25  ;;  %v3706_v4 = vld [vmem:[%s12929_s5 + $0xe0] sm:$0xff]  ;;  %v3707_v14 = vld [vmem:[%s12929_s5 + $0xe8] sm:$0xff] }
 0x8cf   :  { %v7912_v38 = vpack.c.bf16 %v3497_v20, %v3495_v19  ;;  %v3491_v52 = vadd.f32 %v3483_v33, %v3457_v35  ;;  %v11483_v19 = vpack.c.bf16 %v3689_v63, %v3688_v62  ;;  %v11486_v20 = vpack.c.bf16 %v3707_v14, %v3706_v4  ;;  %v3690_v25 = vld [vmem:[%s12929_s5 + $0x60] sm:$0xff]  ;;  %v3708_v35 = vld [vmem:[%s12929_s5 + $0xf0] sm:$0xff]  ;;  %v3794_v4 = vld [vmem:[%s12930_s6 + $0x48] sm:$0xff] }
 0x8d0   :  { %v3498_v43 = vmax.f32 %v3490_v44, 0.0  ;;  %v3793_v63 = vld [vmem:[%s12930_s6 + $0x40] sm:$0xff] }
 0x8d1   :  { %v3461_v57 = vpop.f32.mrb[34].mxu0  ;;  %7913 = vmatprep.subr.bf16.mxu1 %v7912_v38  ;;  %v3499_v3 = vmax.f32 %v3491_v52, 0.0 }
 0x8d2   :  { %v3492_v58 = vadd.f32 %v3479_v27, %v3461_v57  ;;  %v3463_v59 = vpop.f32.mrb[35].mxu0  ;;  %7915 = vmatpush1.bf16.msra.mxu1 %v7914_v32  ;;  %v11447_v27 = vpack.c.bf16 %v3685_v8, %v3684_v6  ;;  %v3692_v57 = vld [vmem:[%s12929_s5 + $0x70] sm:$0xff]  ;;  %v11581_v6 = vpack.c.bf16 %v3808_v31, %v3807_v12  ;;  %v4103_v12 = vld [vmem:[%s12931_s7 + $0x188] sm:$0xff]  ;;  %v4105_v31 = vld [vmem:[%s12931_s7 + $0x198] sm:$0xff] }
 0x8d3   :  { %v3493_v1 = vadd.f32 %v3483_v33, %v3463_v59  ;;  %v3686_v33 = vld [vmem:[%s12929_s5 + $0x40] sm:$0xff]  ;;  %v3791_v8 = vld [vmem:[%s12930_s6 + $0x30] sm:$0xff] }
 0x8d4   :  { %v3500_v2 = vmax.f32 %v3492_v58, 0.0  ;;  %v11465_v56 = vpack.c.bf16 %v3687_v37, %v3686_v33  ;;  %v3693_v58 = vld [vmem:[%s12929_s5 + $0x78] sm:$0xff]  ;;  %v3809_v33 = vld [vmem:[%s12930_s6 + $0xc0] sm:$0xff]  ;;  %v3810_v37 = vld [vmem:[%s12930_s6 + $0xc8] sm:$0xff]  ;;  %v11598_v48 = vpack.c.bf16 %v3792_v17, %v3791_v8 }
 0x8d5   :  { %v3501_v9 = vmax.f32 %v3493_v1, 0.0  ;;  %v11513_v59 = vpack.c.bf16 %v3693_v58, %v3692_v57  ;;  %v3801_v1 = vld [vmem:[%s12930_s6 + $0x80] sm:$0xff]  ;;  %v11603_v62 = vpack.c.bf16 %v3810_v37, %v3809_v33  ;;  %v3795_v57 = vld [vmem:[%s12930_s6 + $0x50] sm:$0xff]  ;;  %v3796_v58 = vld [vmem:[%s12930_s6 + $0x58] sm:$0xff] }
 0x8d6   :  { %v7919_v10 = vpack.c.bf16 %v3500_v2, %v3498_v43  ;;  %v3802_v43 = vld [vmem:[%s12930_s6 + $0x88] sm:$0xff]  ;;  %v4106_v37 = vld [vmem:[%s12931_s7 + $0x1a0] sm:$0xff] }
 0x8d7   :  { %v7916_v15 = vpack.c.bf16 %v3501_v9, %v3499_v3  ;;  %v11523_v2 = vpack.c.bf16 %v3802_v43, %v3801_v1  ;;  %v3785_v3 = vld [vmem:[%s12930_s6] sm:$0xff]  ;;  %v3786_v9 = vld [vmem:[%s12930_s6 + $0x8] sm:$0xff] }
 0x8d8   :  { %v11540_v21 = vpack.c.bf16 %v3786_v9, %v3785_v3  ;;  %v3813_v1 = vld [vmem:[%s12930_s6 + $0xe0] sm:$0xff]  ;;  %v3814_v43 = vld [vmem:[%s12930_s6 + $0xe8] sm:$0xff]  ;;  %v7986_v3 = vpack.c.bf16 %v3796_v58, %v3795_v57 }
 0x8d9   :  { %7918 = vmatprep.subr.msk.bf16.mxu1 %vm9336_vm2, %v7916_v15  ;;  %v7988_v9 = vpack.c.bf16 %v3814_v43, %v3813_v1  ;;  %v4107_v17 = vld [vmem:[%s12931_s7 + $0x1a8] sm:$0xff]  ;;  %v4114_v57 = vld [vmem:[%s12931_s7 + $0x1e0] sm:$0xff]  ;;  %v4116_v1 = vld [vmem:[%s12931_s7 + $0x1f0] sm:$0xff] }
 0x8da   :  { %7921 = vmatpush1.bf16.msk.msra.mxu1 %vm9336_vm2, %v7919_v10  ;;  %v4053_v43 = vld [vmem:[%s12931_s7 + $0x8] sm:$0xff] }
 0x8db   :  { %7923 = vmatprep.subr.bf16.mxu1 %v7912_v38  ;;  %v3709_v38 = vld [vmem:[%s12929_s5 + $0xf8] sm:$0xff] }
 0x8dc   :  { %v11504_v52 = vpack.c.bf16 %v3709_v38, %v3708_v35  ;;  %v7982_v35 = vpack.c.bf16 %v3794_v4, %v3793_v63  ;;  %v4113_v63 = vld [vmem:[%s12931_s7 + $0x1d8] sm:$0xff] }
 0x8dd   :  { %5802 = vmatmul.mubr.msk.f32.vlgmr.msra.gmra.mrb[30].mxu1 %vm742_vm3, %v3502_v16 }
 0x8de   :  { %7925 = vmatpush1.bf16.msra.mxu1 %v7914_v32  ;;  %3586 = vmatprep.mubr.f32.mxu1 %v8653_v7  ;;  %v3691_v32 = vld [vmem:[%s12929_s5 + $0x68] sm:$0xff] }
 0x8df   :  { %7928 = vmatprep.subr.msk.bf16.mxu1 %vm9336_vm2, %v7916_v15  ;;  %v11501_v44 = vpack.c.bf16 %v3691_v32, %v3690_v25  ;;  %v3804_v15 = vld [vmem:[%s12930_s6 + $0x98] sm:$0xff]  ;;  %v3811_v25 = vld [vmem:[%s12930_s6 + $0xd0] sm:$0xff] }
 0x8e0   :  { %v3812_v32 = vld [vmem:[%s12930_s6 + $0xd8] sm:$0xff] }
 0x8e1   :  { %5803 = vmatmul.mubr.msk.f32.gmra.mrb[32].mxu1 %vm742_vm3, %v3503_v23  ;;  %v7984_v38 = vpack.c.bf16 %v3812_v32, %v3811_v25  ;;  %v4112_v25 = vld [vmem:[%s12931_s7 + $0x1d0] sm:$0xff] }
 0x8e2   :  { %7931 = vmatpush1.bf16.msk.msra.mxu1 %vm9336_vm2, %v7919_v10  ;;  %3665 = vmatprep.mubr.f32.mxu1 %v8653_v7  ;;  %v3803_v10 = vld [vmem:[%s12930_s6 + $0x90] sm:$0xff] }
 0x8e3   :  { %7933 = vmatprep.subr.bf16.mxu1 %v11366_v24  ;;  %v11542_v23 = vpack.c.bf16 %v3804_v15, %v3803_v10  ;;  %v3797_v10 = vld [vmem:[%s12930_s6 + $0x60] sm:$0xff]  ;;  %v3798_v15 = vld [vmem:[%s12930_s6 + $0x68] sm:$0xff] }
 0x8e4   :  { %v7990_v30 = vpack.c.bf16 %v3798_v15, %v3797_v10 }
 0x8e5   :  { %5806 = vmatmul.mubr.msk.f32.vlgmr.msra.gmra.mrb[34].mxu1 %vm742_vm3, %v3593_v39 }
 0x8e6   :  { %3671 = vmatprep.mubr.f32.mxu1 %v8653_v7  ;;  %7935 = vmatpush3.bf16.msra.mxu1 %v11387_v40 }
 0x8e7   :  { %7937 = vmatprep.subr.bf16.mxu1 %v11390_v41 }
 0x8e9   :  { %5807 = vmatmul.mubr.msk.f32.gmra.mrb[36].mxu1 %vm742_vm3, %v3594_v54  ;;  %v3790_v54 = vld [vmem:[%s12930_s6 + $0x28] sm:$0xff] }
 0x8ea   :  { %7939 = vmatpush3.bf16.msra.mxu1 %v11410_v47  ;;  %v11576_v46 = vpack.c.bf16 %v3790_v54, %v3789_v0  ;;  %v3800_v0 = vld [vmem:[%s12930_s6 + $0x78] sm:$0xff] }
 0x8eb   :  { %7941 = vmatprep.subr.bf16.mxu1 %v11413_v5  ;;  %v7994_v54 = vpack.c.bf16 %v3800_v0, %v3799_v36 }
 0x8ee   :  { %7943 = vmatpush3.bf16.msra.mxu1 %v11429_v60 }
 0x8ef   :  { %7945 = vmatprep.subr.bf16.mxu1 %v11432_v61 }
 0x8f2   :  { %7947 = vmatpush3.bf16.msra.mxu1 %v11447_v27 }
 0x8f3   :  { %7949 = vmatprep.subr.bf16.mxu1 %v11450_v28 }
 0x8f6   :  { %7951 = vmatpush3.bf16.msra.mxu1 %v11465_v56 }
 0x8f7   :  { %7953 = vmatprep.subr.bf16.mxu1 %v11468_v55 }
 0x8fa   :  { %7955 = vmatpush3.bf16.msra.mxu1 %v11483_v19 }
 0x8fb   :  { %7957 = vmatprep.subr.bf16.mxu1 %v11486_v20 }
 0x8fe   :  { %7959 = vmatpush3.bf16.msra.mxu1 %v11501_v44 }
 0x8ff   :  { %7961 = vmatprep.subr.bf16.mxu1 %v11504_v52 }
 0x902   :  { %7963 = vmatpush3.bf16.msra.mxu1 %v11513_v59 }
 0x903   :  { %7965 = vmatprep.subr.bf16.mxu1 %v11523_v2 }
 0x9b0   :  { %v11538_v16 = vpop.f32.mrb[30].mxu1 }
 0x9b1   :  { %v3584_v22 = vpop.f32.mrb[31].mxu1 }
 0x9b2   :  { %3774 = vmatprep.mubr.f32.mxu1 %v3584_v22 }
 0x9b3   :  { %3775 = vmatmul.mubr.f32.vlgmr.msra.gmra.mrb[38].mxu1 %v11538_v16 }
 0x9b4   :  { %7967 = vmatpush3.bf16.msra.mxu1 %v11540_v21  ;;  %v3588_v39 = vpop.f32.mrb[32].mxu1 }
 0x9b5   :  { %v3590_v45 = vpop.f32.mrb[33].mxu1  ;;  %7969 = vmatprep.subr.bf16.mxu1 %v11542_v23 }
 0x9b6   :  { %3779 = vmatprep.mubr.f32.mxu1 %v3590_v45 }
 0x9b7   :  { %3780 = vmatmul.mubr.f32.gmra.mrb[40].mxu1 %v3588_v39 }
 0x9b8   :  { %7971 = vmatpush3.bf16.msra.mxu1 %v11558_v42  ;;  %3881 = vmatprep.mubr.f32.mxu1 %v3584_v22  ;;  %v11578_v49 = vpop.f32.mrb[34].mxu1  ;;  %v3815_v22 = vld [vmem:[%s12930_s6 + $0xf0] sm:$0xff]  ;;  %s8657_s6 = smov [#allocation5]  }
 0x9b9   :  { %7973 = vmatprep.subr.bf16.mxu1 %v11561_v53  ;;  %v11589_v18 = vpop.f32.mrb[35].mxu1  ;;  %v7992_v34 = vpack.c.bf16 %v3816_v29, %v3815_v22  ;;  %s5778_s29 = sshll.u32 %s8657_s6, 4  ;;  %s5779_s29 = int_to_ptr.vmem [resolvable:$true] %s5778_s29 }
 0x9ba   :  { %p8634_p1 = scmp.lt.s32.totalorder %s5779_s29, %s5779_s29 }
 0x9bc   :  { %7975 = vmatpush3.bf16.msra.mxu1 %v11576_v46  ;;  %v11600_v51 = vpop.f32.mrb[36].mxu1 }
 0x9bd   :  { %7977 = vmatprep.subr.bf16.mxu1 %v11581_v6  ;;  %v11611_v14 = vpop.f32.mrb[37].mxu1 }
 0x9c0   :  { %7979 = vmatpush3.bf16.msra.mxu1 %v11598_v48 }
 0x9c1   :  { %7981 = vmatprep.subr.bf16.mxu1 %v11603_v62 }
 0x9c4   :  { %7983 = vmatpush3.bf16.msra.mxu1 %v7982_v35 }
 0x9c5   :  { %7985 = vmatprep.subr.bf16.mxu1 %v7984_v38 }
 0x9c8   :  { %7987 = vmatpush3.bf16.msra.mxu1 %v7986_v3 }
 0x9c9   :  { %7989 = vmatprep.subr.bf16.mxu1 %v7988_v9 }
 0x9cc   :  { %7991 = vmatpush3.bf16.msra.mxu1 %v7990_v30 }
 0x9cd   :  { %7993 = vmatprep.subr.bf16.mxu1 %v7992_v34 }
 0x9d0   :  { %7995 = vmatpush3.bf16.msra.mxu1 %v7994_v54 }
 0x9d1   :  { %7997 = vmatprep.subr.bf16.mxu1 %v11366_v24  ;;  %v4087_v24 = vld [vmem:[%s12931_s7 + $0x108] sm:$0xff] }
 0x9d3   :  { %3882 = vmatmul.mubr.f32.vlgmr.msra.gmra.mrb[42].mxu1 %v11538_v16  ;;  %v4099_v16 = vld [vmem:[%s12931_s7 + $0x168] sm:$0xff] }
 0x9d4   :  { %3886 = vmatprep.mubr.f32.mxu1 %v3590_v45  ;;  %7999 = vmatpush3.bf16.msra.mxu1 %v11387_v40  ;;  %v4089_v40 = vld [vmem:[%s12931_s7 + $0x118] sm:$0xff]  ;;  %v4100_v45 = vld [vmem:[%s12931_s7 + $0x170] sm:$0xff] }
 0x9d5   :  { %8001 = vmatprep.subr.bf16.mxu1 %v11390_v41  ;;  %v4086_v41 = vld [vmem:[%s12931_s7 + $0x100] sm:$0xff] }
 0x9d7   :  { %3887 = vmatmul.mubr.f32.gmra.mrb[44].mxu1 %v3588_v39 }
 0x9d8   :  { %8003 = vmatpush3.bf16.msra.mxu1 %v11410_v47  ;;  %3958 = vmatprep.mubr.f32.mxu1 %v11589_v18  ;;  %v8060_v47 = vpack.c.bf16 %v4089_v40, %v4087_v24 }
 0x9d9   :  { %8005 = vmatprep.subr.bf16.mxu1 %v11413_v5  ;;  %v4088_v5 = vld [vmem:[%s12931_s7 + $0x110] sm:$0xff] }
 0x9da   :  { %8061 = vmatprep.subr.bf16.mxu0 %v8060_v47 }
 0x9dc   :  { %8007 = vmatpush3.bf16.msra.mxu1 %v11429_v60  ;;  %v4091_v60 = vld [vmem:[%s12931_s7 + $0x128] sm:$0xff] }
 0x9dd   :  { %8009 = vmatprep.subr.bf16.mxu1 %v11432_v61  ;;  %v4093_v61 = vld [vmem:[%s12931_s7 + $0x138] sm:$0xff] }
 0x9e0   :  { %8011 = vmatpush3.bf16.msra.mxu1 %v11447_v27  ;;  %v8062_v27 = vpack.c.bf16 %v4088_v5, %v4086_v41 }
 0x9e1   :  { %8013 = vmatprep.subr.bf16.mxu1 %v11450_v28  ;;  %v8064_v28 = vpack.c.bf16 %v4093_v61, %v4091_v60 }
 0x9e2   :  { %8063 = vmatpush1.bf16.msra.mxu0 %v8062_v27 }
 0x9e3   :  { %8065 = vmatprep.subr.bf16.mxu0 %v8064_v28 }
 0x9e4   :  { %8015 = vmatpush3.bf16.msra.mxu1 %v11465_v56  ;;  %v4090_v56 = vld [vmem:[%s12931_s7 + $0x120] sm:$0xff] }
 0x9e5   :  { %8017 = vmatprep.subr.bf16.mxu1 %v11468_v55  ;;  %v4092_v55 = vld [vmem:[%s12931_s7 + $0x130] sm:$0xff] }
 0x9e8   :  { %8019 = vmatpush3.bf16.msra.mxu1 %v11483_v19  ;;  %v8066_v19 = vpack.c.bf16 %v4092_v55, %v4090_v56 }
 0x9e9   :  { %8021 = vmatprep.subr.bf16.mxu1 %v11486_v20  ;;  %v4095_v20 = vld [vmem:[%s12931_s7 + $0x148] sm:$0xff] }
 0x9ea   :  { %8067 = vmatpush1.bf16.msra.mxu0 %v8066_v19 }
 0x9ec   :  { %8023 = vmatpush3.bf16.msra.mxu1 %v11501_v44  ;;  %v4097_v44 = vld [vmem:[%s12931_s7 + $0x158] sm:$0xff] }
 0x9ed   :  { %8025 = vmatprep.subr.bf16.mxu1 %v11504_v52  ;;  %v8068_v52 = vpack.c.bf16 %v4097_v44, %v4095_v20 }
 0x9ef   :  { %8069 = vmatprep.subr.bf16.mxu0 %v8068_v52 }
 0x9f0   :  { %8027 = vmatpush3.bf16.msra.mxu1 %v11513_v59  ;;  %v4094_v59 = vld [vmem:[%s12931_s7 + $0x140] sm:$0xff] }
 0x9f1   :  { %8029 = vmatprep.subr.bf16.mxu1 %v11523_v2  ;;  %v4096_v2 = vld [vmem:[%s12931_s7 + $0x150] sm:$0xff] }
 0x9f3   :  { %3959 = vmatmul.mubr.f32.vlgmr.msra.gmra.mrb[46].mxu1 %v11578_v49 }
 0x9f4   :  { %8031 = vmatpush3.bf16.msra.mxu1 %v11540_v21  ;;  %3963 = vmatprep.mubr.f32.mxu1 %v11611_v14  ;;  %v4101_v21 = vld [vmem:[%s12931_s7 + $0x178] sm:$0xff] }
 0x9f5   :  { %8033 = vmatprep.subr.bf16.mxu1 %v11542_v23  ;;  %v8070_v23 = vpack.c.bf16 %v4096_v2, %v4094_v59  ;;  %v8072_v39 = vpack.c.bf16 %v4101_v21, %v4099_v16 }
 0x9f7   :  { %3964 = vmatmul.mubr.f32.gmra.mrb[48].mxu1 %v11600_v51  ;;  %8071 = vmatpush1.bf16.msra.mxu0 %v8070_v23 }
 0x9f8   :  { %8035 = vmatpush3.bf16.msra.mxu1 %v11558_v42  ;;  %4033 = vmatprep.mubr.f32.mxu1 %v11589_v18  ;;  %v4098_v42 = vld [vmem:[%s12931_s7 + $0x160] sm:$0xff]  ;;  %v4109_v18 = vld [vmem:[%s12931_s7 + $0x1b8] sm:$0xff] }
 0x9f9   :  { %8037 = vmatprep.subr.bf16.mxu1 %v11561_v53  ;;  %8073 = vmatprep.subr.bf16.mxu0 %v8072_v39  ;;  %v8074_v53 = vpack.c.bf16 %v4100_v45, %v4098_v42  ;;  %v8080_v33 = vpack.c.bf16 %v4109_v18, %v4107_v17  ;;  %v4052_v45 = vld [vmem:[%s12931_s7] sm:$0xff]  ;;  %v4061_v18 = vld [vmem:[%s12931_s7 + $0x48] sm:$0xff] }
 0x9fb   :  { %8075 = vmatpush1.bf16.msra.mxu0 %v8074_v53  ;;  %v4054_v53 = vld [vmem:[%s12931_s7 + $0x10] sm:$0xff] }
 0x9fc   :  { %8039 = vmatpush3.bf16.msra.mxu1 %v11576_v46  ;;  %v8076_v46 = vpack.c.bf16 %v4105_v31, %v4103_v12  ;;  %v4057_v12 = vld [vmem:[%s12931_s7 + $0x28] sm:$0xff]  ;;  %v4059_v31 = vld [vmem:[%s12931_s7 + $0x38] sm:$0xff] }
 0x9fd   :  { %8041 = vmatprep.subr.bf16.mxu1 %v11581_v6  ;;  %v4104_v6 = vld [vmem:[%s12931_s7 + $0x190] sm:$0xff] }
 0x9fe   :  { %8077 = vmatprep.subr.bf16.mxu0 %v8076_v46  ;;  %v8094_v46 = vpack.c.bf16 %v4054_v53, %v4052_v45  ;;  %v4283_v45 = vld [vmem:[%s12931_s7 + $0x248] sm:$0xff]  ;;  %v4285_v53 = vld [vmem:[%s12931_s7 + $0x258] sm:$0xff] }
 0xa00   :  { %8043 = vmatpush3.bf16.msra.mxu1 %v11598_v48  ;;  %v4108_v48 = vld [vmem:[%s12931_s7 + $0x1b0] sm:$0xff] }
 0xa01   :  { %8045 = vmatprep.subr.bf16.mxu1 %v11603_v62  ;;  %v4111_v62 = vld [vmem:[%s12931_s7 + $0x1c8] sm:$0xff] }
 0xa02   :  { %v8084_v4 = vpack.c.bf16 %v4113_v63, %v4111_v62  ;;  %v4062_v62 = vld [vmem:[%s12931_s7 + $0x50] sm:$0xff] }
 0xa04   :  { %8047 = vmatpush3.bf16.msra.mxu1 %v7982_v35  ;;  %v4115_v35 = vld [vmem:[%s12931_s7 + $0x1e8] sm:$0xff] }
 0xa05   :  { %8049 = vmatprep.subr.bf16.mxu1 %v7984_v38  ;;  %v4117_v38 = vld [vmem:[%s12931_s7 + $0x1f8] sm:$0xff] }
 0xa06   :  { %v8088_v58 = vpack.c.bf16 %v4117_v38, %v4115_v35  ;;  %v4064_v35 = vld [vmem:[%s12931_s7 + $0x60] sm:$0xff]  ;;  %v4066_v38 = vld [vmem:[%s12931_s7 + $0x70] sm:$0xff] }
 0xa08   :  { %8051 = vmatpush3.bf16.msra.mxu1 %v7986_v3  ;;  %v4055_v3 = vld [vmem:[%s12931_s7 + $0x18] sm:$0xff] }
 0xa09   :  { %8053 = vmatprep.subr.bf16.mxu1 %v7988_v9  ;;  %v8090_v9 = vpack.c.bf16 %v4116_v1, %v4114_v57  ;;  %v8092_v10 = vpack.c.bf16 %v4055_v3, %v4053_v43  ;;  %v4069_v57 = vld [vmem:[%s12931_s7 + $0x88] sm:$0xff]  ;;  %v8106_v1 = vpack.c.bf16 %v4066_v38, %v4064_v35  ;;  %v4068_v3 = vld [vmem:[%s12931_s7 + $0x80] sm:$0xff] }
 0xa0c   :  { %8055 = vmatpush3.bf16.msra.mxu1 %v7990_v30 }
 0xa0d   :  { %8057 = vmatprep.subr.bf16.mxu1 %v7992_v34 }
 0xa10   :  { %8059 = vmatpush3.bf16.msra.mxu1 %v7994_v54 }
 0xa13   :  { %4034 = vmatmul.mubr.f32.vlgmr.msra.gmra.mrb[50].mxu1 %v11578_v49  ;;  %v4102_v49 = vld [vmem:[%s12931_s7 + $0x180] sm:$0xff] }
 0xa14   :  { %4038 = vmatprep.mubr.f32.mxu1 %v11611_v14  ;;  %v8078_v8 = vpack.c.bf16 %v4104_v6, %v4102_v49  ;;  %v4110_v14 = vld [vmem:[%s12931_s7 + $0x1c0] sm:$0xff]  ;;  %v8096_v49 = vpack.c.bf16 %v4059_v31, %v4057_v12  ;;  %v8132_v31 = vpack.c.bf16 %v4285_v53, %v4283_v45 }
 0xa15   :  { %v8086_v32 = vpack.c.bf16 %v4112_v25, %v4110_v14  ;;  %v4056_v6 = vld [vmem:[%s12931_s7 + $0x20] sm:$0xff]  ;;  %v4067_v14 = vld [vmem:[%s12931_s7 + $0x78] sm:$0xff] }
 0xa16   :  { %8079 = vmatpush1.bf16.msra.mxu0 %v8078_v8  ;;  %v4058_v8 = vld [vmem:[%s12931_s7 + $0x30] sm:$0xff] }
 0xa17   :  { %4039 = vmatmul.mubr.f32.gmra.mrb[52].mxu1 %v11600_v51  ;;  %v8082_v51 = vpack.c.bf16 %v4108_v48, %v4106_v37  ;;  %8081 = vmatprep.subr.bf16.mxu0 %v8080_v33  ;;  %v4063_v33 = vld [vmem:[%s12931_s7 + $0x58] sm:$0xff]  ;;  %v8098_v37 = vpack.c.bf16 %v4058_v8, %v4056_v6  ;;  %v4287_v8 = vld [vmem:[%s12931_s7 + $0x268] sm:$0xff] }
 0xa18   :  { %4711 = vmatprep.mubr.f32.mxu1 %v8653_v7  ;;  %v8100_v48 = vpack.c.bf16 %v4063_v33, %v4061_v18  ;;  %v4286_v33 = vld [vmem:[%s12931_s7 + $0x260] sm:$0xff] }
 0xa1a   :  { %8083 = vmatpush1.bf16.msra.mxu0 %v8082_v51  ;;  %v4060_v51 = vld [vmem:[%s12931_s7 + $0x40] sm:$0xff] }
 0xa1b   :  { %8085 = vmatprep.subr.bf16.mxu0 %v8084_v4  ;;  %v4065_v4 = vld [vmem:[%s12931_s7 + $0x68] sm:$0xff]  ;;  %v8102_v25 = vpack.c.bf16 %v4062_v62, %v4060_v51  ;;  %v4293_v51 = vld [vmem:[%s12931_s7 + $0x298] sm:$0xff] }
 0xa1e   :  { %8087 = vmatpush1.bf16.msra.mxu0 %v8086_v32  ;;  %v8104_v32 = vpack.c.bf16 %v4067_v14, %v4065_v4  ;;  %v4290_v4 = vld [vmem:[%s12931_s7 + $0x280] sm:$0xff]  ;;  %v4292_v14 = vld [vmem:[%s12931_s7 + $0x290] sm:$0xff] }
 0xa1f   :  { %8089 = vmatprep.subr.bf16.mxu0 %v8088_v58  ;;  %v4071_v58 = vld [vmem:[%s12931_s7 + $0x98] sm:$0xff]  ;;  %v8142_v35 = vpack.c.bf16 %v4292_v14, %v4290_v4 }
 0xa20   :  { %v8108_v43 = vpack.c.bf16 %v4071_v58, %v4069_v57  ;;  %v4294_v57 = vld [vmem:[%s12931_s7 + $0x2a0] sm:$0xff]  ;;  %v4296_v58 = vld [vmem:[%s12931_s7 + $0x2b0] sm:$0xff]  ;;  %v4416_v4 = vld [vmem:[%s12931_s7 + $0x3d8] sm:$0xff] }
 0xa22   :  { %8091 = vmatpush1.bf16.msra.mxu0 %v8090_v9  ;;  %v4070_v9 = vld [vmem:[%s12931_s7 + $0x90] sm:$0xff] }
 0xa23   :  { %8093 = vmatprep.subr.bf16.mxu0 %v8092_v10  ;;  %v4073_v10 = vld [vmem:[%s12931_s7 + $0xa8] sm:$0xff] }
 0xa86   :  { %v6225_v15 = vpop.f32.mrb[38].mxu1 }
 0xa87   :  { %v6226_v22 = vpop.f32.mrb[39].mxu1 }
 0xa88   :  { %v6227_v29 = vadd.f32 %v6226_v22, %v6225_v15  ;;  %v4075_v15 = vld [vmem:[%s12931_s7 + $0xb8] sm:$0xff]  ;;  %v8110_v22 = vpack.c.bf16 %v4070_v9, %v4068_v3  ;;  %v8146_v3 = vpack.c.bf16 %v4296_v58, %v4294_v57 }
 0xa89   :  { %v4420_v57 = vld [vmem:[%s12931_s7 + $0x3f8] sm:$0xff] }
 0xa8a   :  { %v6228_v30 = vpop.f32.mrb[40].mxu1 }
 0xa8b   :  { %v6229_v34 = vpop.f32.mrb[41].mxu1 }
 0xa8c   :  { %v6230_v36 = vadd.f32 %v6229_v34, %v6228_v30  ;;  %v4072_v30 = vld [vmem:[%s12931_s7 + $0xa0] sm:$0xff]  ;;  %v4074_v34 = vld [vmem:[%s12931_s7 + $0xb0] sm:$0xff] }
 0xaa6   :  { %v6263_v0 = vpop.f32.mrb[42].mxu1 }
 0xaa7   :  { %v6264_v54 = vpop.f32.mrb[43].mxu1 }
 0xaa8   :  { %v6265_v24 = vadd.f32 %v6264_v54, %v6263_v0  ;;  %v4079_v0 = vld [vmem:[%s12931_s7 + $0xd8] sm:$0xff]  ;;  %v8114_v54 = vpack.c.bf16 %v4074_v34, %v4072_v30 }
 0xaaa   :  { %v3892_v40 = vmax.f32 %v6227_v29, %v6265_v24  ;;  %v6266_v41 = vpop.f32.mrb[44].mxu1  ;;  %v8112_v29 = vpack.c.bf16 %v4075_v15, %v4073_v10  ;;  %v4298_v10 = vld [vmem:[%s12931_s7 + $0x2c0] sm:$0xff]  ;;  %v4300_v15 = vld [vmem:[%s12931_s7 + $0x2d0] sm:$0xff] }
 0xaab   :  { %v6267_v47 = vpop.f32.mrb[45].mxu1  ;;  %v8150_v30 = vpack.c.bf16 %v4300_v15, %v4298_v10  ;;  %v4507_v10 = vld [vmem:[%s12931_s7 + $0x418] sm:$0xff] }
 0xaac   :  { %v6268_v5 = vadd.f32 %v6267_v47, %v6266_v41  ;;  %v4078_v41 = vld [vmem:[%s12931_s7 + $0xd0] sm:$0xff]  ;;  %v4081_v47 = vld [vmem:[%s12931_s7 + $0xe8] sm:$0xff] }
 0xaae   :  { %v3893_v60 = vmax.f32 %v6230_v36, %v6268_v5  ;;  %v4077_v36 = vld [vmem:[%s12931_s7 + $0xc8] sm:$0xff]  ;;  %v4083_v5 = vld [vmem:[%s12931_s7 + $0xf8] sm:$0xff] }
 0xaaf   :  { %v8116_v24 = vpack.c.bf16 %v4079_v0, %v4077_v36  ;;  %v4302_v36 = vld [vmem:[%s12931_s7 + $0x2e0] sm:$0xff]  ;;  %v4304_v0 = vld [vmem:[%s12931_s7 + $0x2f0] sm:$0xff] }
 0xac6   :  { %v6301_v61 = vpop.f32.mrb[46].mxu1 }
 0xac7   :  { %v6302_v27 = vpop.f32.mrb[47].mxu1 }
 0xac8   :  { %v6303_v28 = vadd.f32 %v6302_v27, %v6301_v61  ;;  %v8120_v61 = vpack.c.bf16 %v4083_v5, %v4081_v47  ;;  %v4080_v27 = vld [vmem:[%s12931_s7 + $0xe0] sm:$0xff]  ;;  %v4391_v5 = vld [vmem:[%s12931_s7 + $0x310] sm:$0xff] }
 0xac9   :  { %v4389_v47 = vld [vmem:[%s12931_s7 + $0x300] sm:$0xff] }
 0xaca   :  { %v6304_v56 = vpop.f32.mrb[48].mxu1 }
 0xacb   :  { %v6305_v55 = vpop.f32.mrb[49].mxu1 }
 0xacc   :  { %v6306_v19 = vadd.f32 %v6305_v55, %v6304_v56  ;;  %v4275_v56 = vld [vmem:[%s12931_s7 + $0x208] sm:$0xff]  ;;  %v4277_v55 = vld [vmem:[%s12931_s7 + $0x218] sm:$0xff] }
 0xae6   :  { %v6339_v20 = vpop.f32.mrb[50].mxu1 }
 0xae7   :  { %v6340_v44 = vpop.f32.mrb[51].mxu1 }
 0xae8   :  { %v6341_v52 = vadd.f32 %v6340_v44, %v6339_v20  ;;  %v8124_v20 = vpack.c.bf16 %v4277_v55, %v4275_v56  ;;  %v4274_v44 = vld [vmem:[%s12931_s7 + $0x200] sm:$0xff]  ;;  %v4395_v55 = vld [vmem:[%s12931_s7 + $0x330] sm:$0xff] }
 0xae9   :  { %v4393_v56 = vld [vmem:[%s12931_s7 + $0x320] sm:$0xff] }
 0xaea   :  { %v4044_v59 = vmax.f32 %v6303_v28, %v6341_v52  ;;  %v6342_v2 = vpop.f32.mrb[52].mxu1  ;;  %v4082_v28 = vld [vmem:[%s12931_s7 + $0xf0] sm:$0xff] }
 0xaeb   :  { %v6343_v16 = vpop.f32.mrb[53].mxu1  ;;  %v4276_v52 = vld [vmem:[%s12931_s7 + $0x210] sm:$0xff] }
 0xaec   :  { %v11788_v21 = vmax.f32 %v3892_v40, %v4044_v59  ;;  %v6344_v23 = vadd.f32 %v6343_v16, %v6342_v2  ;;  %v4076_v40 = vld [vmem:[%s12931_s7 + $0xc0] sm:$0xff]  ;;  %v4279_v59 = vld [vmem:[%s12931_s7 + $0x228] sm:$0xff]  ;;  %v4281_v2 = vld [vmem:[%s12931_s7 + $0x238] sm:$0xff]  ;;  %v8126_v16 = vpack.c.bf16 %v4276_v52, %v4274_v44  ;;  %v8162_v52 = vpack.c.bf16 %v4395_v55, %v4393_v56 }
 0xaed   :  { %v4400_v44 = vld [vmem:[%s12931_s7 + $0x358] sm:$0xff]  ;;  %v4517_v55 = vld [vmem:[%s12931_s7 + $0x468] sm:$0xff] }
 0xaee   :  { %4048 = vst [vmem:[#allocation2] sm:$0xff] %v11788_v21  ;;  %v4045_v39 = vmax.f32 %v6306_v19, %v6344_v23  ;;  %v8122_v19 = vpack.c.bf16 %v4082_v28, %v4080_v27  ;;  %v8128_v23 = vpack.c.bf16 %v4281_v2, %v4279_v59  ;;  %v8158_v27 = vpack.c.bf16 %v4391_v5, %v4389_v47  ;;  %v4397_v2 = vld [vmem:[%s12931_s7 + $0x340] sm:$0xff]  ;;  %v4513_v47 = vld [vmem:[%s12931_s7 + $0x448] sm:$0xff]  ;;  %v4515_v5 = vld [vmem:[%s12931_s7 + $0x458] sm:$0xff] }
 0xaf0   :  { %v4047_v42 = vmax.f32 %v3893_v60, %v4045_v39  ;;  %v8118_v60 = vpack.c.bf16 %v4078_v41, %v4076_v40  ;;  %v4278_v39 = vld [vmem:[%s12931_s7 + $0x220] sm:$0xff]  ;;  %v8154_v40 = vpack.c.bf16 %v4304_v0, %v4302_v36  ;;  %v4511_v36 = vld [vmem:[%s12931_s7 + $0x438] sm:$0xff] }
 0xaf2   :  { %4049 = vst [vmem:[#allocation2 + $0x8] sm:$0x3f] %v4047_v42  ;;  %v4280_v42 = vld [vmem:[%s12931_s7 + $0x230] sm:$0xff] }
 0xaf3   :  { %v8130_v12 = vpack.c.bf16 %v4280_v42, %v4278_v39  ;;  %v4402_v39 = vld [vmem:[%s12931_s7 + $0x368] sm:$0xff]  ;;  %v4404_v42 = vld [vmem:[%s12931_s7 + $0x378] sm:$0xff] }
 0xaf4   :  { %v8168_v53 = vpack.c.bf16 %v4404_v42, %v4402_v39  ;;  %v4520_v42 = vld [vmem:[%s12931_s7 + $0x480] sm:$0xff] }
 0xaf9   :  { %v4084_v17 = vld [vmem:[#allocation2 + $0x1] sm:$0xff]  ;;  %v4085_v63 = vld [vmem:[#allocation2 + $0x9] sm:$0x3]  ;;  %v4388_v56 = vld [vmem:[#allocation2 + $0xb] sm:$0x3] }
 0xafa   :  { %4183 = vmatmul.mubr.f32.vlgmr.msra.gmra.mrb[36].mxu0 %v4084_v17  ;;  %v4051_v6 = vld [vmem:[#allocation2 + $0x8] sm:$0x3] }
 0xafb   :  { %8095 = vmatpush1.bf16.msra.mxu0 %v8094_v46  ;;  %4188 = vmatprep.mubr.f32.mxu0 %v8653_v7  ;;  %v4282_v46 = vld [vmem:[%s12931_s7 + $0x240] sm:$0xff] }
 0xafc   :  { %8097 = vmatprep.subr.bf16.mxu0 %v8096_v49  ;;  %v4284_v49 = vld [vmem:[%s12931_s7 + $0x250] sm:$0xff] }
 0xafd   :  { %v8134_v17 = vpack.c.bf16 %v4284_v49, %v4282_v46  ;;  %v4406_v46 = vld [vmem:[%s12931_s7 + $0x388] sm:$0xff]  ;;  %v4408_v49 = vld [vmem:[%s12931_s7 + $0x398] sm:$0xff] }
 0xafe   :  { %4189 = vmatmul.mubr.f32.gmra.mrb[38].mxu0 %v4085_v63 }
 0xaff   :  { %8099 = vmatpush1.bf16.msra.mxu0 %v8098_v37  ;;  %4259 = vmatprep.mubr.f32.mxu0 %v8653_v7  ;;  %v4288_v37 = vld [vmem:[%s12931_s7 + $0x270] sm:$0xff] }
 0xb00   :  { %8101 = vmatprep.subr.bf16.mxu0 %v8100_v48  ;;  %v4291_v48 = vld [vmem:[%s12931_s7 + $0x288] sm:$0xff]  ;;  %v8138_v62 = vpack.c.bf16 %v4288_v37, %v4286_v33  ;;  %v4412_v33 = vld [vmem:[%s12931_s7 + $0x3b8] sm:$0xff] }
 0xb01   :  { %v8140_v63 = vpack.c.bf16 %v4293_v51, %v4291_v48  ;;  %v4409_v51 = vld [vmem:[%s12931_s7 + $0x3a0] sm:$0xff] }
 0xb03   :  { %8103 = vmatpush1.bf16.msra.mxu0 %v8102_v25  ;;  %v4295_v25 = vld [vmem:[%s12931_s7 + $0x2a8] sm:$0xff] }
 0xb04   :  { %8105 = vmatprep.subr.bf16.mxu0 %v8104_v32  ;;  %v4297_v32 = vld [vmem:[%s12931_s7 + $0x2b8] sm:$0xff] }
 0xb05   :  { %v8144_v38 = vpack.c.bf16 %v4297_v32, %v4295_v25  ;;  %v4413_v32 = vld [vmem:[%s12931_s7 + $0x3c0] sm:$0xff] }
 0xb07   :  { %8107 = vmatpush1.bf16.msra.mxu0 %v8106_v1  ;;  %v4299_v1 = vld [vmem:[%s12931_s7 + $0x2c8] sm:$0xff] }
 0xb08   :  { %8109 = vmatprep.subr.bf16.mxu0 %v8108_v43  ;;  %v4301_v43 = vld [vmem:[%s12931_s7 + $0x2d8] sm:$0xff] }
 0xb09   :  { %v8148_v9 = vpack.c.bf16 %v4301_v43, %v4299_v1  ;;  %v4417_v43 = vld [vmem:[%s12931_s7 + $0x3e0] sm:$0xff] }
 0xb0b   :  { %8111 = vmatpush1.bf16.msra.mxu0 %v8110_v22  ;;  %v4303_v22 = vld [vmem:[%s12931_s7 + $0x2e8] sm:$0xff] }
 0xb0c   :  { %8113 = vmatprep.subr.bf16.mxu0 %v8112_v29  ;;  %v4305_v29 = vld [vmem:[%s12931_s7 + $0x2f8] sm:$0xff] }
 0xb0d   :  { %v8152_v34 = vpack.c.bf16 %v4305_v29, %v4303_v22  ;;  %v4504_v29 = vld [vmem:[%s12931_s7 + $0x400] sm:$0xff] }
 0xb0f   :  { %8115 = vmatpush1.bf16.msra.mxu0 %v8114_v54  ;;  %v4390_v54 = vld [vmem:[%s12931_s7 + $0x308] sm:$0xff] }
 0xb10   :  { %8117 = vmatprep.subr.bf16.mxu0 %v8116_v24  ;;  %v4392_v24 = vld [vmem:[%s12931_s7 + $0x318] sm:$0xff] }
 0xb11   :  { %v8156_v41 = vpack.c.bf16 %v4392_v24, %v4390_v54  ;;  %v4508_v24 = vld [vmem:[%s12931_s7 + $0x420] sm:$0xff] }
 0xb13   :  { %8119 = vmatpush1.bf16.msra.mxu0 %v8118_v60  ;;  %v4394_v60 = vld [vmem:[%s12931_s7 + $0x328] sm:$0xff] }
 0xb14   :  { %8121 = vmatprep.subr.bf16.mxu0 %v8120_v61  ;;  %v4396_v61 = vld [vmem:[%s12931_s7 + $0x338] sm:$0xff] }
 0xb15   :  { %v8160_v28 = vpack.c.bf16 %v4396_v61, %v4394_v60  ;;  %v8196_v61 = vpack.c.bf16 %v4515_v5, %v4513_v47  ;;  %v4793_v47 = vld [vmem:[%s12935_s11] sm:$0xff]  ;;  %v4794_v5 = vld [vmem:[%s12935_s11 + $0x8] sm:$0xff] }
 0xb17   :  { %8123 = vmatpush1.bf16.msra.mxu0 %v8122_v19  ;;  %v4272_v19 = vld [vmem:[#allocation2 + $0x2] sm:$0xff] }
 0xb18   :  { %8125 = vmatprep.subr.bf16.mxu0 %v8124_v20  ;;  %v4398_v20 = vld [vmem:[%s12931_s7 + $0x348] sm:$0xff] }
 0xb19   :  { %v8164_v59 = vpack.c.bf16 %v4400_v44, %v4398_v20 }
 0xb1a   :  { %4260 = vmatmul.mubr.f32.vlgmr.msra.gmra.mrb[36].mxu0 %v11788_v21  ;;  %v4289_v21 = vld [vmem:[%s12931_s7 + $0x278] sm:$0xff] }
 0xb1b   :  { %8127 = vmatpush1.bf16.msra.mxu0 %v8126_v16  ;;  %4265 = vmatprep.mubr.f32.mxu0 %v8653_v7  ;;  %v8136_v18 = vpack.c.bf16 %v4289_v21, %v4287_v8  ;;  %v4399_v16 = vld [vmem:[%s12931_s7 + $0x350] sm:$0xff]  ;;  %v8172_v8 = vpack.c.bf16 %v4408_v49, %v4406_v46  ;;  %v4405_v21 = vld [vmem:[%s12931_s7 + $0x380] sm:$0xff] }
 0xb1c   :  { %8129 = vmatprep.subr.bf16.mxu0 %v8128_v23  ;;  %v4273_v23 = vld [vmem:[#allocation2 + $0xa] sm:$0x3]  ;;  %v8166_v45 = vpack.c.bf16 %v4399_v16, %v4397_v2  ;;  %v4523_v16 = vld [vmem:[%s12931_s7 + $0x498] sm:$0xff]  ;;  %v4524_v49 = vld [vmem:[%s12931_s7 + $0x4a0] sm:$0xff] }
 0xb1d   :  { %v4521_v2 = vld [vmem:[%s12931_s7 + $0x488] sm:$0xff] }
 0xb1e   :  { %4266 = vmatmul.mubr.f32.gmra.mrb[38].mxu0 %v4051_v6  ;;  %v8204_v39 = vpack.c.bf16 %v4523_v16, %v4521_v2  ;;  %v4798_v2 = vld [vmem:[%s12935_s11 + $0x28] sm:$0xff]  ;;  %v4815_v16 = vld [vmem:[%s12935_s11 + $0xb0] sm:$0xff] }
 0xb1f   :  { %8131 = vmatpush1.bf16.msra.mxu0 %v8130_v12  ;;  %4370 = vmatprep.mubr.f32.mxu0 %v8653_v7  ;;  %v4401_v12 = vld [vmem:[%s12931_s7 + $0x360] sm:$0xff] }
 0xb20   :  { %8133 = vmatprep.subr.bf16.mxu0 %v8132_v31  ;;  %v4403_v31 = vld [vmem:[%s12931_s7 + $0x370] sm:$0xff] }
 0xb21   :  { %v8170_v6 = vpack.c.bf16 %v4403_v31, %v4401_v12  ;;  %v4527_v12 = vld [vmem:[%s12931_s7 + $0x4b8] sm:$0xff] }
 0xb23   :  { %8135 = vmatpush1.bf16.msra.mxu0 %v8134_v17  ;;  %v4407_v17 = vld [vmem:[%s12931_s7 + $0x390] sm:$0xff] }
 0xb24   :  { %8137 = vmatprep.subr.bf16.mxu0 %v8136_v18  ;;  %v4410_v18 = vld [vmem:[%s12931_s7 + $0x3a8] sm:$0xff]  ;;  %v8174_v37 = vpack.c.bf16 %v4407_v17, %v4405_v21  ;;  %v4531_v21 = vld [vmem:[%s12931_s7 + $0x4d8] sm:$0xff] }
 0xb25   :  { %v8176_v48 = vpack.c.bf16 %v4412_v33, %v4410_v18  ;;  %v4528_v33 = vld [vmem:[%s12931_s7 + $0x4c0] sm:$0xff] }
 0xb27   :  { %8139 = vmatpush1.bf16.msra.mxu0 %v8138_v62  ;;  %v4411_v62 = vld [vmem:[%s12931_s7 + $0x3b0] sm:$0xff] }
 0xb28   :  { %8141 = vmatprep.subr.bf16.mxu0 %v8140_v63  ;;  %v4414_v63 = vld [vmem:[%s12931_s7 + $0x3c8] sm:$0xff]  ;;  %v8178_v14 = vpack.c.bf16 %v4411_v62, %v4409_v51  ;;  %v4535_v51 = vld [vmem:[%s12931_s7 + $0x4f8] sm:$0xff] }
 0xb29   :  { %v8180_v25 = vpack.c.bf16 %v4416_v4, %v4414_v63  ;;  %v4532_v4 = vld [vmem:[%s12931_s7 + $0x4e0] sm:$0xff] }
 0xb2b   :  { %8143 = vmatpush1.bf16.msra.mxu0 %v8142_v35  ;;  %v4415_v35 = vld [vmem:[%s12931_s7 + $0x3d0] sm:$0xff] }
 0xb2c   :  { %8145 = vmatprep.subr.bf16.mxu0 %v8144_v38  ;;  %v4418_v38 = vld [vmem:[%s12931_s7 + $0x3e8] sm:$0xff]  ;;  %v8182_v58 = vpack.c.bf16 %v4415_v35, %v4413_v32 }
 0xb2d   :  { %v8184_v1 = vpack.c.bf16 %v4420_v57, %v4418_v38  ;;  %v4502_v32 = vld [vmem:[#allocation2 + $0x4] sm:$0xff]  ;;  %v4503_v35 = vld [vmem:[#allocation2 + $0xc] sm:$0x3]  ;;  %v4617_v38 = vld [vmem:[%s12932_s8] sm:$0x3] }
 0xb2e   :  { %v4622_v57 = vrot.slane %v4617_v38, %v9320_v11  ;;  %v4809_v11 = vld [vmem:[%s12935_s11 + $0x80] sm:$0xff] }
 0xb2f   :  { %8147 = vmatpush1.bf16.msra.mxu0 %v8146_v3  ;;  %v4419_v3 = vld [vmem:[%s12931_s7 + $0x3f0] sm:$0xff] }
 0xb30   :  { %8149 = vmatprep.subr.bf16.mxu0 %v8148_v9  ;;  %v4505_v9 = vld [vmem:[%s12931_s7 + $0x408] sm:$0xff]  ;;  %v8186_v15 = vpack.c.bf16 %v4419_v3, %v4417_v43 }
 0xb31   :  { %v8188_v22 = vpack.c.bf16 %v4507_v10, %v4505_v9 }
 0xb33   :  { %8151 = vmatpush1.bf16.msra.mxu0 %v8150_v30  ;;  %v4506_v30 = vld [vmem:[%s12931_s7 + $0x410] sm:$0xff] }
 0xb34   :  { %8153 = vmatprep.subr.bf16.mxu0 %v8152_v34  ;;  %v4509_v34 = vld [vmem:[%s12931_s7 + $0x428] sm:$0xff]  ;;  %v8190_v0 = vpack.c.bf16 %v4506_v30, %v4504_v29 }
 0xb35   :  { %v8192_v54 = vpack.c.bf16 %v4511_v36, %v4509_v34 }
 0xb37   :  { %8155 = vmatpush1.bf16.msra.mxu0 %v8154_v40  ;;  %v4510_v40 = vld [vmem:[%s12931_s7 + $0x430] sm:$0xff] }
 0xb38   :  { %8157 = vmatprep.subr.bf16.mxu0 %v8156_v41  ;;  %v4387_v41 = vld [vmem:[#allocation2 + $0x3] sm:$0xff]  ;;  %v8194_v60 = vpack.c.bf16 %v4510_v40, %v4508_v24 }
 0xb39   :  { %v4637_v40 = vld [vmem:[%s12933_s9] sm:$0x1f] }
 0xb3a   :  { %4371 = vmatmul.mubr.f32.vlgmr.msra.gmra.mrb[36].mxu0 %v4272_v19  ;;  %v4519_v19 = vld [vmem:[%s12931_s7 + $0x478] sm:$0xff] }
 0xb3b   :  { %8159 = vmatpush1.bf16.msra.mxu0 %v8158_v27  ;;  %4376 = vmatprep.mubr.f32.mxu0 %v8653_v7  ;;  %v4512_v27 = vld [vmem:[%s12931_s7 + $0x440] sm:$0xff]  ;;  %v8200_v44 = vpack.c.bf16 %v4519_v19, %v4517_v55  ;;  %v4795_v55 = vld [vmem:[%s12935_s11 + $0x10] sm:$0xff] }
 0xb3c   :  { %8161 = vmatprep.subr.bf16.mxu0 %v8160_v28  ;;  %v4514_v28 = vld [vmem:[%s12931_s7 + $0x450] sm:$0xff]  ;;  %v4813_v19 = vld [vmem:[%s12935_s11 + $0xa0] sm:$0xff] }
 0xb3d   :  { %v8198_v20 = vpack.c.bf16 %v4514_v28, %v4512_v27  ;;  %v4718_v27 = vld [vmem:[%s12934_s10] sm:$0x1f]  ;;  %v12223_v28 = vpack.c.bf16 %v4794_v5, %v4793_v47 }
 0xb3e   :  { %4377 = vmatmul.mubr.f32.gmra.mrb[38].mxu0 %v4273_v23 }
 0xb3f   :  { %8163 = vmatpush1.bf16.msra.mxu0 %v8162_v52  ;;  %4485 = vmatprep.mubr.f32.mxu0 %v8653_v7  ;;  %v4516_v52 = vld [vmem:[%s12931_s7 + $0x460] sm:$0xff] }
 0xb40   :  { %8165 = vmatprep.subr.bf16.mxu0 %v8164_v59  ;;  %v4518_v59 = vld [vmem:[%s12931_s7 + $0x470] sm:$0xff] }
 0xb41   :  { %v8202_v23 = vpack.c.bf16 %v4518_v59, %v4516_v52  ;;  %v4797_v59 = vld [vmem:[%s12935_s11 + $0x20] sm:$0xff] }
 0xb43   :  { %8167 = vmatpush1.bf16.msra.mxu0 %v8166_v45  ;;  %v4522_v45 = vld [vmem:[%s12931_s7 + $0x490] sm:$0xff] }
 0xb44   :  { %8169 = vmatprep.subr.bf16.mxu0 %v8168_v53  ;;  %v4525_v53 = vld [vmem:[%s12931_s7 + $0x4a8] sm:$0xff]  ;;  %v8206_v31 = vpack.c.bf16 %v4522_v45, %v4520_v42  ;;  %v4799_v45 = vld [vmem:[%s12935_s11 + $0x30] sm:$0xff] }
 0xb45   :  { %v8208_v46 = vpack.c.bf16 %v4527_v12, %v4525_v53  ;;  %v4800_v53 = vld [vmem:[%s12935_s11 + $0x38] sm:$0xff]  ;;  %v4817_v12 = vld [vmem:[%s12935_s11 + $0xc0] sm:$0xff] }
 0xb47   :  { %8171 = vmatpush1.bf16.msra.mxu0 %v8170_v6  ;;  %v4526_v6 = vld [vmem:[%s12931_s7 + $0x4b0] sm:$0xff] }
 0xb48   :  { %8173 = vmatprep.subr.bf16.mxu0 %v8172_v8  ;;  %v4529_v8 = vld [vmem:[%s12931_s7 + $0x4c8] sm:$0xff]  ;;  %v8210_v17 = vpack.c.bf16 %v4526_v6, %v4524_v49  ;;  %v4801_v6 = vld [vmem:[%s12935_s11 + $0x40] sm:$0xff] }
 0xb49   :  { %v8212_v18 = vpack.c.bf16 %v4531_v21, %v4529_v8  ;;  %v4802_v8 = vld [vmem:[%s12935_s11 + $0x48] sm:$0xff]  ;;  %v4819_v21 = vld [vmem:[%s12935_s11 + $0xd0] sm:$0xff] }
 0xb4b   :  { %8175 = vmatpush1.bf16.msra.mxu0 %v8174_v37  ;;  %v4530_v37 = vld [vmem:[%s12931_s7 + $0x4d0] sm:$0xff] }
 0xb4c   :  { %8177 = vmatprep.subr.bf16.mxu0 %v8176_v48  ;;  %v4533_v48 = vld [vmem:[%s12931_s7 + $0x4e8] sm:$0xff]  ;;  %v8214_v62 = vpack.c.bf16 %v4530_v37, %v4528_v33  ;;  %v4803_v37 = vld [vmem:[%s12935_s11 + $0x50] sm:$0xff] }
 0xb4d   :  { %v8216_v63 = vpack.c.bf16 %v4535_v51, %v4533_v48  ;;  %v4804_v48 = vld [vmem:[%s12935_s11 + $0x58] sm:$0xff]  ;;  %v4821_v51 = vld [vmem:[%s12935_s11 + $0xe0] sm:$0xff] }
 0xb4f   :  { %8179 = vmatpush1.bf16.msra.mxu0 %v8178_v14  ;;  %v4534_v14 = vld [vmem:[%s12931_s7 + $0x4f0] sm:$0xff] }
 0xb50   :  { %8181 = vmatprep.subr.bf16.mxu0 %v8180_v25  ;;  %v8218_v25 = vpack.c.bf16 %v4534_v14, %v4532_v4  ;;  %v4805_v14 = vld [vmem:[%s12935_s11 + $0x60] sm:$0xff] }
 0xb53   :  { %8183 = vmatpush1.bf16.msra.mxu0 %v8182_v58 }
 0xb54   :  { %8185 = vmatprep.subr.bf16.mxu0 %v8184_v1  ;;  %v4626_v1 = vrot.slane %v4617_v38, %v9325_v13  ;;  %v4810_v13 = vld [vmem:[%s12935_s11 + $0x88] sm:$0xff] }
 0xb57   :  { %8187 = vmatpush1.bf16.msra.mxu0 %v8186_v15 }
 0xb58   :  { %8189 = vmatprep.subr.bf16.mxu0 %v8188_v22 }
 0xb5a   :  { %4486 = vmatmul.mubr.f32.vlgmr.msra.gmra.mrb[36].mxu0 %v4387_v41  ;;  %v12202_v41 = vpack.c.bf16 %v4810_v13, %v4809_v11  ;;  %v4898_v11 = vld [vmem:[%s12936_s12 + $0x18] sm:$0xff]  ;;  %v4915_v13 = vld [vmem:[%s12936_s12 + $0xa0] sm:$0xff] }
 0xb5b   :  { %8191 = vmatpush1.bf16.msra.mxu0 %v8190_v0  ;;  %4491 = vmatprep.mubr.f32.mxu0 %v8653_v7 }
 0xb5c   :  { %8193 = vmatprep.subr.bf16.mxu0 %v8192_v54 }
 0xb5e   :  { %4492 = vmatmul.mubr.f32.gmra.mrb[38].mxu0 %v4388_v56 }
 0xb5f   :  { %8195 = vmatpush1.bf16.msra.mxu0 %v8194_v60  ;;  %4600 = vmatprep.mubr.f32.mxu0 %v8653_v7  ;;  %v4811_v60 = vld [vmem:[%s12935_s11 + $0x90] sm:$0xff] }
 0xb60   :  { %8197 = vmatprep.subr.bf16.mxu0 %v8196_v61  ;;  %v4812_v61 = vld [vmem:[%s12935_s11 + $0x98] sm:$0xff] }
 0xb61   :  { %v12226_v56 = vpack.c.bf16 %v4812_v61, %v4811_v60  ;;  %v4899_v61 = vld [vmem:[%s12936_s12 + $0x20] sm:$0xff] }
 0xb63   :  { %8199 = vmatpush1.bf16.msra.mxu0 %v8198_v20  ;;  %v4814_v20 = vld [vmem:[%s12935_s11 + $0xa8] sm:$0xff] }
 0xb64   :  { %8201 = vmatprep.subr.bf16.mxu0 %v8200_v44  ;;  %v12242_v44 = vpack.c.bf16 %v4796_v50, %v4795_v55  ;;  %v12245_v52 = vpack.c.bf16 %v4814_v20, %v4813_v19  ;;  %v4917_v50 = vld [vmem:[%s12936_s12 + $0xb0] sm:$0xff]  ;;  %v4918_v19 = vld [vmem:[%s12936_s12 + $0xb8] sm:$0xff] }
 0xb67   :  { %8203 = vmatpush1.bf16.msra.mxu0 %v8202_v23  ;;  %v4816_v23 = vld [vmem:[%s12935_s11 + $0xb8] sm:$0xff] }
 0xb68   :  { %8205 = vmatprep.subr.bf16.mxu0 %v8204_v39  ;;  %v12260_v39 = vpack.c.bf16 %v4798_v2, %v4797_v59  ;;  %v12263_v42 = vpack.c.bf16 %v4816_v23, %v4815_v16  ;;  %v12414_v59 = vpack.c.bf16 %v4918_v19, %v4917_v50  ;;  %v4901_v2 = vld [vmem:[%s12936_s12 + $0x30] sm:$0xff]  ;;  %v4902_v16 = vld [vmem:[%s12936_s12 + $0x38] sm:$0xff]  ;;  %v4919_v23 = vld [vmem:[%s12936_s12 + $0xc0] sm:$0xff] }
 0xb69   :  { %v5170_v50 = vld [vmem:[%s12937_s13 + $0xd8] sm:$0xff]  ;;  %v5152_v19 = vld [vmem:[%s12937_s13 + $0x50] sm:$0xff] }
 0xb6b   :  { %8207 = vmatpush1.bf16.msra.mxu0 %v8206_v31  ;;  %v4818_v31 = vld [vmem:[%s12935_s11 + $0xc8] sm:$0xff] }
 0xb6c   :  { %8209 = vmatprep.subr.bf16.mxu0 %v8208_v46  ;;  %v12278_v46 = vpack.c.bf16 %v4800_v53, %v4799_v45  ;;  %v12281_v49 = vpack.c.bf16 %v4818_v31, %v4817_v12  ;;  %v4920_v45 = vld [vmem:[%s12936_s12 + $0xc8] sm:$0xff]  ;;  %v8278_v53 = vpack.c.bf16 %v4902_v16, %v4901_v2  ;;  %v4903_v31 = vld [vmem:[%s12936_s12 + $0x40] sm:$0xff] }
 0xb6d   :  { %v8280_v12 = vpack.c.bf16 %v4920_v45, %v4919_v23  ;;  %v5171_v16 = vld [vmem:[%s12937_s13 + $0xe0] sm:$0xff]  ;;  %v5172_v23 = vld [vmem:[%s12937_s13 + $0xe8] sm:$0xff] }
 0xb6e   :  { %v5154_v45 = vld [vmem:[%s12937_s13 + $0x60] sm:$0xff] }
 0xb6f   :  { %8211 = vmatpush1.bf16.msra.mxu0 %v8210_v17  ;;  %v4820_v17 = vld [vmem:[%s12935_s11 + $0xd8] sm:$0xff] }
 0xb70   :  { %8213 = vmatprep.subr.bf16.mxu0 %v8212_v18  ;;  %v12296_v18 = vpack.c.bf16 %v4802_v8, %v4801_v6  ;;  %v12299_v33 = vpack.c.bf16 %v4820_v17, %v4819_v21  ;;  %v4904_v6 = vld [vmem:[%s12936_s12 + $0x48] sm:$0xff]  ;;  %v4921_v8 = vld [vmem:[%s12936_s12 + $0xd0] sm:$0xff]  ;;  %v4922_v21 = vld [vmem:[%s12936_s12 + $0xd8] sm:$0xff] }
 0xb71   :  { %v8282_v17 = vpack.c.bf16 %v4904_v6, %v4903_v31  ;;  %v5173_v6 = vld [vmem:[%s12937_s13 + $0xf0] sm:$0xff] }
 0xb73   :  { %8215 = vmatpush1.bf16.msra.mxu0 %v8214_v62  ;;  %v4822_v62 = vld [vmem:[%s12935_s11 + $0xe8] sm:$0xff] }
 0xb74   :  { %8217 = vmatprep.subr.bf16.mxu0 %v8216_v63  ;;  %v12314_v63 = vpack.c.bf16 %v4804_v48, %v4803_v37  ;;  %v12317_v4 = vpack.c.bf16 %v4822_v62, %v4821_v51  ;;  %v8284_v37 = vpack.c.bf16 %v4922_v21, %v4921_v8  ;;  %v4905_v48 = vld [vmem:[%s12936_s12 + $0x50] sm:$0xff]  ;;  %v4906_v51 = vld [vmem:[%s12936_s12 + $0x58] sm:$0xff]  ;;  %v4923_v62 = vld [vmem:[%s12936_s12 + $0xe0] sm:$0xff] }
 0xb75   :  { %v5174_v8 = vld [vmem:[%s12937_s13 + $0xf8] sm:$0xff]  ;;  %v5156_v21 = vld [vmem:[%s12937_s13 + $0x70] sm:$0xff] }
 0xb77   :  { %8219 = vmatpush1.bf16.msra.mxu0 %v8218_v25  ;;  %v4806_v25 = vld [vmem:[%s12935_s11 + $0x68] sm:$0xff] }
 0xb78   :  { %8384 = vmatprep.subr.bf16.mxu0 %v8655_v26  ;;  %v12332_v38 = vpack.c.bf16 %v4806_v25, %v4805_v14  ;;  %v4924_v14 = vld [vmem:[%s12936_s12 + $0xe8] sm:$0xff]  ;;  %v8286_v25 = vpack.c.bf16 %v4906_v51, %v4905_v48 }
 0xb7a   :  { %4601 = vmatmul.mubr.f32.vlgmr.msra.gmra.mrb[36].mxu0 %v4502_v32  ;;  %v4823_v32 = vld [vmem:[%s12935_s11 + $0xf0] sm:$0xff] }
 0xb7b   :  { %4606 = vmatprep.mubr.f32.mxu0 %v8653_v7 }
 0xb7e   :  { %4607 = vmatmul.mubr.f32.gmra.mrb[38].mxu0 %v4503_v35  ;;  %v4824_v35 = vld [vmem:[%s12935_s11 + $0xf8] sm:$0xff] }
 0xb7f   :  { %6846 = vmatprep.mubr.msk.f32.mxu0 %vm8656_vm7, %v8653_v7 }
 0xc4d   :  { %v4602_v58 = vpop.f32.mrb[36].mxu0 }
 0xc4e   :  { %v4604_v43 = vpop.f32.mrb[37].mxu0  ;;  %v4629_v3 = vadd.f32 %v4622_v57, %v4602_v58  ;;  %v4807_v58 = vld [vmem:[%s12935_s11 + $0x70] sm:$0xff] }
 0xc4f   :  { %v4630_v9 = vadd.f32 %v4626_v1, %v4604_v43 }
 0xc50   :  { %v4633_v30 = vmax.f32 %v4629_v3, 0.0  ;;  %v4911_v3 = vld [vmem:[%s12936_s12 + $0x80] sm:$0xff] }
 0xc51   :  { %v4608_v10 = vpop.f32.mrb[38].mxu0  ;;  %v4634_v36 = vmax.f32 %v4630_v9, 0.0  ;;  %v4912_v9 = vld [vmem:[%s12936_s12 + $0x88] sm:$0xff] }
 0xc52   :  { %v4631_v15 = vadd.f32 %v4622_v57, %v4608_v10  ;;  %v4610_v22 = vpop.f32.mrb[39].mxu0  ;;  %v12335_v57 = vpack.c.bf16 %v4824_v35, %v4823_v32  ;;  %v12354_v10 = vpack.c.bf16 %v4912_v9, %v4911_v3  ;;  %v8288_v32 = vpack.c.bf16 %v4924_v14, %v4923_v62  ;;  %v4907_v35 = vld [vmem:[%s12936_s12 + $0x60] sm:$0xff]  ;;  %v4926_v3 = vld [vmem:[%s12936_s12 + $0xf8] sm:$0xff] }
 0xc53   :  { %v4632_v29 = vadd.f32 %v4626_v1, %v4610_v22  ;;  %v4808_v1 = vld [vmem:[%s12935_s11 + $0x78] sm:$0xff]  ;;  %v4896_v22 = vld [vmem:[%s12936_s12 + $0x8] sm:$0xff] }
 0xc54   :  { %v4635_v34 = vmax.f32 %v4631_v15, 0.0  ;;  %v12344_v43 = vpack.c.bf16 %v4808_v1, %v4807_v58  ;;  %v4895_v15 = vld [vmem:[%s12936_s12] sm:$0xff]  ;;  %v4908_v58 = vld [vmem:[%s12936_s12 + $0x68] sm:$0xff]  ;;  %v4925_v1 = vld [vmem:[%s12936_s12 + $0xf0] sm:$0xff] }
 0xc55   :  { %v4636_v0 = vmax.f32 %v4632_v29, 0.0  ;;  %v4913_v29 = vld [vmem:[%s12936_s12 + $0x90] sm:$0xff]  ;;  %v8290_v9 = vpack.c.bf16 %v4908_v58, %v4907_v35 }
 0xc56   :  { %v8223_v54 = vpack.c.bf16 %v4635_v34, %v4633_v30  ;;  %v4914_v30 = vld [vmem:[%s12936_s12 + $0x98] sm:$0xff] }
 0xc57   :  { %v8220_v24 = vpack.c.bf16 %v4636_v0, %v4634_v36  ;;  %v12371_v36 = vpack.c.bf16 %v4896_v22, %v4895_v15  ;;  %v8292_v15 = vpack.c.bf16 %v4926_v3, %v4925_v1  ;;  %v4909_v22 = vld [vmem:[%s12936_s12 + $0x70] sm:$0xff] }
 0xc59   :  { %8222 = vmatprep.subr.msk.bf16.mxu1 %vm10169_vm5, %v8220_v24 }
 0xc5a   :  { %8225 = vmatpush1.bf16.msk.msra.mxu1 %vm10169_vm5, %v8223_v54 }
 0xc5b   :  { %8228 = vmatprep.subr.msk.bf16.mxu1 %vm10169_vm5, %v8220_v24  ;;  %v4897_v24 = vld [vmem:[%s12936_s12 + $0x10] sm:$0xff] }
 0xc5c   :  { %v12389_v47 = vpack.c.bf16 %v4898_v11, %v4897_v24  ;;  %v5149_v24 = vld [vmem:[%s12937_s13 + $0x38] sm:$0xff] }
 0xc5d   :  { %5810 = vmatmul.mubr.msk.f32.vlgmr.msra.gmra.mrb[54].mxu1 %vm1878_vm6, %v4637_v40  ;;  %v4916_v40 = vld [vmem:[%s12936_s12 + $0xa8] sm:$0xff] }
 0xc5e   :  { %8231 = vmatpush1.bf16.msk.msra.mxu1 %vm10169_vm5, %v8223_v54  ;;  %4786 = vmatprep.mubr.f32.mxu1 %v8653_v7  ;;  %v12373_v54 = vpack.c.bf16 %v4914_v30, %v4913_v29  ;;  %v12394_v60 = vpack.c.bf16 %v4916_v40, %v4915_v13  ;;  %v4910_v29 = vld [vmem:[%s12936_s12 + $0x78] sm:$0xff]  ;;  %v5167_v40 = vld [vmem:[%s12937_s13 + $0xc0] sm:$0xff] }
 0xc5f   :  { %8233 = vmatprep.subr.bf16.mxu1 %v12202_v41  ;;  %v8294_v30 = vpack.c.bf16 %v4910_v29, %v4909_v22 }
 0xc61   :  { %5813 = vmatmul.mubr.msk.f32.vlgmr.msra.gmra.mrb[56].mxu1 %vm1878_vm6, %v4718_v27  ;;  %v4900_v27 = vld [vmem:[%s12936_s12 + $0x28] sm:$0xff] }
 0xc62   :  { %8235 = vmatpush3.bf16.msra.mxu1 %v12223_v28  ;;  %v12411_v20 = vpack.c.bf16 %v4900_v27, %v4899_v61  ;;  %v5151_v61 = vld [vmem:[%s12937_s13 + $0x48] sm:$0xff] }
 0xc63   :  { %8237 = vmatprep.subr.bf16.mxu1 %v12226_v56 }
 0xc66   :  { %8239 = vmatpush3.bf16.msra.mxu1 %v12242_v44 }
 0xc67   :  { %8241 = vmatprep.subr.bf16.mxu1 %v12245_v52 }
 0xc6a   :  { %8243 = vmatpush3.bf16.msra.mxu1 %v12260_v39 }
 0xc6b   :  { %8245 = vmatprep.subr.bf16.mxu1 %v12263_v42 }
 0xc6e   :  { %8247 = vmatpush3.bf16.msra.mxu1 %v12278_v46 }
 0xc6f   :  { %8249 = vmatprep.subr.bf16.mxu1 %v12281_v49 }
 0xc72   :  { %8251 = vmatpush3.bf16.msra.mxu1 %v12296_v18 }
 0xc73   :  { %8253 = vmatprep.subr.bf16.mxu1 %v12299_v33 }
 0xc76   :  { %8255 = vmatpush3.bf16.msra.mxu1 %v12314_v63 }
 0xc77   :  { %8257 = vmatprep.subr.bf16.mxu1 %v12317_v4 }
 0xc7a   :  { %8259 = vmatpush3.bf16.msra.mxu1 %v12332_v38 }
 0xc7b   :  { %8261 = vmatprep.subr.bf16.mxu1 %v12335_v57 }
 0xc7e   :  { %8263 = vmatpush3.bf16.msra.mxu1 %v12344_v43 }
 0xc7f   :  { %8265 = vmatprep.subr.bf16.mxu1 %v12354_v10 }
 0xd30   :  { %v12369_v34 = vpop.f32.mrb[54].mxu1 }
 0xd31   :  { %v4715_v0 = vpop.f32.mrb[55].mxu1 }
 0xd32   :  { %4889 = vmatprep.mubr.f32.mxu1 %v4715_v0 }
 0xd33   :  { %4890 = vmatmul.mubr.f32.vlgmr.msra.gmra.mrb[58].mxu1 %v12369_v34 }
 0xd34   :  { %8267 = vmatpush3.bf16.msra.mxu1 %v12371_v36  ;;  %4991 = vmatprep.mubr.f32.mxu1 %v4715_v0  ;;  %v12391_v5 = vpop.f32.mrb[56].mxu1  ;;  %v5166_v0 = vld [vmem:[%s12937_s13 + $0xb8] sm:$0xff] }
 0xd35   :  { %8269 = vmatprep.subr.bf16.mxu1 %v12373_v54  ;;  %v12402_v55 = vpop.f32.mrb[57].mxu1 }
 0xd38   :  { %8271 = vmatpush3.bf16.msra.mxu1 %v12389_v47 }
 0xd39   :  { %8273 = vmatprep.subr.bf16.mxu1 %v12394_v60 }
 0xd3c   :  { %8275 = vmatpush3.bf16.msra.mxu1 %v12411_v20 }
 0xd3d   :  { %8277 = vmatprep.subr.bf16.mxu1 %v12414_v59 }
 0xd40   :  { %8279 = vmatpush3.bf16.msra.mxu1 %v8278_v53 }
 0xd41   :  { %8281 = vmatprep.subr.bf16.mxu1 %v8280_v12 }
 0xd44   :  { %8283 = vmatpush3.bf16.msra.mxu1 %v8282_v17 }
 0xd45   :  { %8285 = vmatprep.subr.bf16.mxu1 %v8284_v37 }
 0xd48   :  { %8287 = vmatpush3.bf16.msra.mxu1 %v8286_v25 }
 0xd49   :  { %8289 = vmatprep.subr.bf16.mxu1 %v8288_v32 }
 0xd4c   :  { %8291 = vmatpush3.bf16.msra.mxu1 %v8290_v9 }
 0xd4d   :  { %8293 = vmatprep.subr.bf16.mxu1 %v8292_v15 }
 0xd50   :  { %8295 = vmatpush3.bf16.msra.mxu1 %v8294_v30 }
 0xd51   :  { %8297 = vmatprep.subr.bf16.mxu1 %v12202_v41  ;;  %v5159_v41 = vld [vmem:[%s12937_s13 + $0x80] sm:$0xff] }
 0xd53   :  { %4992 = vmatmul.mubr.f32.vlgmr.msra.gmra.mrb[60].mxu1 %v12369_v34 }
 0xd54   :  { %8299 = vmatpush3.bf16.msra.mxu1 %v12223_v28  ;;  %5062 = vmatprep.mubr.f32.mxu1 %v12402_v55  ;;  %v5160_v28 = vld [vmem:[%s12937_s13 + $0x88] sm:$0xff] }
 0xd55   :  { %8301 = vmatprep.subr.bf16.mxu1 %v12226_v56  ;;  %v5142_v56 = vld [vmem:[%s12937_s13] sm:$0xff] }
 0xd58   :  { %8303 = vmatpush3.bf16.msra.mxu1 %v12242_v44  ;;  %v8361_v44 = vpack.c.bf16 %v5160_v28, %v5159_v41  ;;  %v5316_v28 = vld [vmem:[%s12937_s13 + $0x100] sm:$0xff] }
 0xd59   :  { %8305 = vmatprep.subr.bf16.mxu1 %v12245_v52  ;;  %v5143_v52 = vld [vmem:[%s12937_s13 + $0x8] sm:$0xff] }
 0xd5c   :  { %8307 = vmatpush3.bf16.msra.mxu1 %v12260_v39  ;;  %v5161_v39 = vld [vmem:[%s12937_s13 + $0x90] sm:$0xff] }
 0xd5d   :  { %8309 = vmatprep.subr.bf16.mxu1 %v12263_v42  ;;  %v5162_v42 = vld [vmem:[%s12937_s13 + $0x98] sm:$0xff] }
 0xd60   :  { %8311 = vmatpush3.bf16.msra.mxu1 %v12278_v46  ;;  %v8385_v46 = vpack.c.bf16 %v5143_v52, %v5142_v56  ;;  %v5317_v56 = vld [vmem:[%s12937_s13 + $0x108] sm:$0xff] }
 0xd61   :  { %8313 = vmatprep.subr.bf16.mxu1 %v12281_v49  ;;  %v5144_v49 = vld [vmem:[%s12937_s13 + $0x10] sm:$0xff]  ;;  %v5405_v52 = vld [vmem:[%s12937_s13 + $0x188] sm:$0xff] }
 0xd62   :  { %8386 = vmatpush3.bf16.msra.mxu0 %v8385_v46  ;;  %v5318_v46 = vld [vmem:[%s12937_s13 + $0x110] sm:$0xff] }
 0xd63   :  { %8387 = vmatprep.subr.bf16.mxu0 %v8655_v26 }
 0xd64   :  { %8315 = vmatpush3.bf16.msra.mxu1 %v12296_v18  ;;  %v5145_v18 = vld [vmem:[%s12937_s13 + $0x18] sm:$0xff] }
 0xd65   :  { %8317 = vmatprep.subr.bf16.mxu1 %v12299_v33  ;;  %v8364_v33 = vpack.c.bf16 %v5162_v42, %v5161_v39  ;;  %v8409_v39 = vpack.c.bf16 %v5317_v56, %v5316_v28  ;;  %v5499_v28 = vld [vmem:[%s12937_s13 + $0x238] sm:$0xff] }
 0xd68   :  { %8319 = vmatpush3.bf16.msra.mxu1 %v12314_v63  ;;  %v8388_v63 = vpack.c.bf16 %v5145_v18, %v5144_v49  ;;  %v5319_v49 = vld [vmem:[%s12937_s13 + $0x118] sm:$0xff]  ;;  %v5406_v18 = vld [vmem:[%s12937_s13 + $0x190] sm:$0xff] }
 0xd69   :  { %8321 = vmatprep.subr.bf16.mxu1 %v12317_v4  ;;  %v5163_v4 = vld [vmem:[%s12937_s13 + $0xa0] sm:$0xff] }
 0xd6a   :  { %8389 = vmatpush3.bf16.msra.mxu0 %v8388_v63 }
 0xd6b   :  { %8390 = vmatprep.subr.bf16.mxu0 %v8655_v26 }
 0xd6c   :  { %8323 = vmatpush3.bf16.msra.mxu1 %v12332_v38  ;;  %v5164_v38 = vld [vmem:[%s12937_s13 + $0xa8] sm:$0xff] }
 0xd6d   :  { %8325 = vmatprep.subr.bf16.mxu1 %v12335_v57  ;;  %v5146_v57 = vld [vmem:[%s12937_s13 + $0x20] sm:$0xff] }
 0xd70   :  { %8327 = vmatpush3.bf16.msra.mxu1 %v12344_v43  ;;  %v5147_v43 = vld [vmem:[%s12937_s13 + $0x28] sm:$0xff] }
 0xd71   :  { %8329 = vmatprep.subr.bf16.mxu1 %v12354_v10  ;;  %v8367_v10 = vpack.c.bf16 %v5164_v38, %v5163_v4  ;;  %v8391_v34 = vpack.c.bf16 %v5147_v43, %v5146_v57  ;;  %v8412_v38 = vpack.c.bf16 %v5319_v49, %v5318_v46  ;;  %v5320_v43 = vld [vmem:[%s12937_s13 + $0x120] sm:$0xff]  ;;  %v5503_v46 = vld [vmem:[%s12937_s13 + $0x258] sm:$0xff] }
 0xd73   :  { %5063 = vmatmul.mubr.f32.vlgmr.msra.gmra.mrb[62].mxu1 %v12391_v5  ;;  %8392 = vmatpush3.bf16.msra.mxu0 %v8391_v34  ;;  %v5408_v34 = vld [vmem:[%s12937_s13 + $0x1a0] sm:$0xff] }
 0xd74   :  { %8331 = vmatpush3.bf16.msra.mxu1 %v12371_v36  ;;  %5132 = vmatprep.mubr.f32.mxu1 %v12402_v55  ;;  %v5165_v36 = vld [vmem:[%s12937_s13 + $0xb0] sm:$0xff] }
 0xd75   :  { %8333 = vmatprep.subr.bf16.mxu1 %v12373_v54  ;;  %v5148_v54 = vld [vmem:[%s12937_s13 + $0x30] sm:$0xff]  ;;  %v8370_v11 = vpack.c.bf16 %v5166_v0, %v5165_v36  ;;  %8393 = vmatprep.subr.bf16.mxu0 %v8655_v26  ;;  %v5409_v36 = vld [vmem:[%s12937_s13 + $0x1a8] sm:$0xff] }
 0xd76   :  { %v8394_v13 = vpack.c.bf16 %v5149_v24, %v5148_v54  ;;  %v5169_v55 = vld [vmem:[%s12937_s13 + $0xd0] sm:$0xff]  ;;  %v8439_v54 = vpack.c.bf16 %v5409_v36, %v5408_v34  ;;  %v5585_v34 = vld [vmem:[%s12939_s15 + $0x8] sm:$0xff] }
 0xd77   :  { %v5322_v24 = vld [vmem:[%s12937_s13 + $0x130] sm:$0xff] }
 0xd78   :  { %8335 = vmatpush3.bf16.msra.mxu1 %v12389_v47  ;;  %8395 = vmatpush3.bf16.msra.mxu0 %v8394_v13  ;;  %v5168_v47 = vld [vmem:[%s12937_s13 + $0xc8] sm:$0xff]  ;;  %v5410_v13 = vld [vmem:[%s12937_s13 + $0x1b0] sm:$0xff] }
 0xd79   :  { %8337 = vmatprep.subr.bf16.mxu1 %v12394_v60  ;;  %8396 = vmatprep.subr.bf16.mxu0 %v8655_v26  ;;  %v8373_v60 = vpack.c.bf16 %v5168_v47, %v5167_v40  ;;  %v5411_v40 = vld [vmem:[%s12937_s13 + $0x1b8] sm:$0xff]  ;;  %v5586_v36 = vld [vmem:[%s12939_s15 + $0x10] sm:$0xff] }
 0xd7c   :  { %8339 = vmatpush3.bf16.msra.mxu1 %v12411_v20  ;;  %v8376_v20 = vpack.c.bf16 %v5170_v50, %v5169_v55  ;;  %v5413_v55 = vld [vmem:[%s12937_s13 + $0x1c8] sm:$0xff] }
 0xd7d   :  { %8341 = vmatprep.subr.bf16.mxu1 %v12414_v59  ;;  %v5153_v59 = vld [vmem:[%s12937_s13 + $0x58] sm:$0xff] }
 0xd7e   :  { %v8400_v2 = vpack.c.bf16 %v5153_v59, %v5152_v19  ;;  %v5327_v59 = vld [vmem:[%s12937_s13 + $0x158] sm:$0xff] }
 0xd80   :  { %8343 = vmatpush3.bf16.msra.mxu1 %v8278_v53  ;;  %v8379_v53 = vpack.c.bf16 %v5172_v23, %v5171_v16  ;;  %v5415_v16 = vld [vmem:[%s12937_s13 + $0x1d8] sm:$0xff] }
 0xd81   :  { %8345 = vmatprep.subr.bf16.mxu1 %v8280_v12  ;;  %v5155_v12 = vld [vmem:[%s12937_s13 + $0x68] sm:$0xff] }
 0xd82   :  { %v8403_v31 = vpack.c.bf16 %v5155_v12, %v5154_v45  ;;  %v5329_v12 = vld [vmem:[%s12937_s13 + $0x168] sm:$0xff] }
 0xd84   :  { %8347 = vmatpush3.bf16.msra.mxu1 %v8282_v17  ;;  %v8382_v17 = vpack.c.bf16 %v5174_v8, %v5173_v6  ;;  %v5417_v6 = vld [vmem:[%s12937_s13 + $0x1e8] sm:$0xff] }
 0xd85   :  { %8349 = vmatprep.subr.bf16.mxu1 %v8284_v37  ;;  %v5157_v37 = vld [vmem:[%s12937_s13 + $0x78] sm:$0xff] }
 0xd86   :  { %v8406_v48 = vpack.c.bf16 %v5157_v37, %v5156_v21  ;;  %v5331_v37 = vld [vmem:[%s12937_s13 + $0x178] sm:$0xff] }
 0xd88   :  { %8351 = vmatpush3.bf16.msra.mxu1 %v8286_v25 }
 0xd89   :  { %8353 = vmatprep.subr.bf16.mxu1 %v8288_v32 }
 0xd8c   :  { %8355 = vmatpush3.bf16.msra.mxu1 %v8290_v9 }
 0xd8d   :  { %8357 = vmatprep.subr.bf16.mxu1 %v8292_v15 }
 0xd90   :  { %8359 = vmatpush3.bf16.msra.mxu1 %v8294_v30 }
 0xd91   :  { %8360 = vmatprep.subr.bf16.mxu1 %v8655_v26 }
 0xd93   :  { %5133 = vmatmul.mubr.f32.vlgmr.msra.gmra.mrb[64].mxu1 %v12391_v5  ;;  %v5150_v5 = vld [vmem:[%s12937_s13 + $0x40] sm:$0xff] }
 0xd94   :  { %6811 = vmatprep.mubr.msk.f32.mxu1 %vm8656_vm7, %v8653_v7  ;;  %8362 = vmatpush3.bf16.msra.mxu1 %v8361_v44  ;;  %v8397_v27 = vpack.c.bf16 %v5151_v61, %v5150_v5  ;;  %v5404_v44 = vld [vmem:[%s12937_s13 + $0x180] sm:$0xff]  ;;  %v8442_v5 = vpack.c.bf16 %v5411_v40, %v5410_v13  ;;  %v5325_v61 = vld [vmem:[%s12937_s13 + $0x148] sm:$0xff]  ;;  %v5590_v40 = vld [vmem:[%s12939_s15 + $0x30] sm:$0xff] }
 0xd95   :  { %8363 = vmatprep.subr.bf16.mxu1 %v8655_v26  ;;  %v8433_v42 = vpack.c.bf16 %v5405_v52, %v5404_v44  ;;  %v5500_v44 = vld [vmem:[%s12937_s13 + $0x240] sm:$0xff]  ;;  %v5501_v52 = vld [vmem:[%s12937_s13 + $0x248] sm:$0xff] }
 0xd96   :  { %8398 = vmatpush3.bf16.msra.mxu0 %v8397_v27  ;;  %v5412_v27 = vld [vmem:[%s12937_s13 + $0x1c0] sm:$0xff] }
 0xd97   :  { %8399 = vmatprep.subr.bf16.mxu0 %v8655_v26  ;;  %v8445_v19 = vpack.c.bf16 %v5413_v55, %v5412_v27  ;;  %v5594_v55 = vld [vmem:[%s12939_s15 + $0x50] sm:$0xff] }
 0xd98   :  { %8365 = vmatpush3.bf16.msra.mxu1 %v8364_v33  ;;  %v5407_v33 = vld [vmem:[%s12937_s13 + $0x198] sm:$0xff] }
 0xd99   :  { %8366 = vmatprep.subr.bf16.mxu1 %v8655_v26  ;;  %v8436_v57 = vpack.c.bf16 %v5407_v33, %v5406_v18  ;;  %v5504_v18 = vld [vmem:[%s12937_s13 + $0x260] sm:$0xff]  ;;  %v5505_v33 = vld [vmem:[%s12937_s13 + $0x268] sm:$0xff] }
 0xd9a   :  { %8401 = vmatpush3.bf16.msra.mxu0 %v8400_v2  ;;  %v5414_v2 = vld [vmem:[%s12937_s13 + $0x1d0] sm:$0xff] }
 0xd9b   :  { %8402 = vmatprep.subr.bf16.mxu0 %v8655_v26  ;;  %v8448_v45 = vpack.c.bf16 %v5415_v16, %v5414_v2  ;;  %v5598_v16 = vld [vmem:[%s12939_s15 + $0x70] sm:$0xff] }
 0xd9c   :  { %8368 = vmatpush3.bf16.msra.mxu1 %v8367_v10  ;;  %v5321_v10 = vld [vmem:[%s12937_s13 + $0x128] sm:$0xff] }
 0xd9d   :  { %8369 = vmatprep.subr.bf16.mxu1 %v8655_v26  ;;  %v8415_v0 = vpack.c.bf16 %v5321_v10, %v5320_v43  ;;  %v5584_v10 = vld [vmem:[%s12939_s15] sm:$0xff] }
 0xd9e   :  { %8404 = vmatpush3.bf16.msra.mxu0 %v8403_v31  ;;  %v5416_v31 = vld [vmem:[%s12937_s13 + $0x1e0] sm:$0xff] }
 0xd9f   :  { %8405 = vmatprep.subr.bf16.mxu0 %v8655_v26  ;;  %v8451_v21 = vpack.c.bf16 %v5417_v6, %v5416_v31  ;;  %v5680_v31 = vld [vmem:[%s12941_s17 + $0x10] sm:$0xff] }
 0xda0   :  { %8371 = vmatpush3.bf16.msra.mxu1 %v8370_v11  ;;  %v5323_v11 = vld [vmem:[%s12937_s13 + $0x138] sm:$0xff] }
 0xda1   :  { %8372 = vmatprep.subr.bf16.mxu1 %v8655_v26  ;;  %v8418_v47 = vpack.c.bf16 %v5323_v11, %v5322_v24  ;;  %v5589_v11 = vld [vmem:[%s12939_s15 + $0x28] sm:$0xff] }
 0xda2   :  { %8407 = vmatpush3.bf16.msra.mxu0 %v8406_v48  ;;  %v5418_v48 = vld [vmem:[%s12937_s13 + $0x1f0] sm:$0xff] }
 0xda3   :  { %8432 = vmatprep.subr.bf16.mxu0 %v8655_v26 }
 0xda4   :  { %8374 = vmatpush3.bf16.msra.mxu1 %v8373_v60  ;;  %v5324_v60 = vld [vmem:[%s12937_s13 + $0x140] sm:$0xff] }
 0xda5   :  { %8375 = vmatprep.subr.bf16.mxu1 %v8655_v26  ;;  %v8421_v50 = vpack.c.bf16 %v5325_v61, %v5324_v60  ;;  %v5592_v60 = vld [vmem:[%s12939_s15 + $0x40] sm:$0xff]  ;;  %v5593_v61 = vld [vmem:[%s12939_s15 + $0x48] sm:$0xff] }
 0xda6   :  { %v8493_v27 = vpack.c.bf16 %v5593_v61, %v5592_v60 }
 0xda8   :  { %8377 = vmatpush3.bf16.msra.mxu1 %v8376_v20  ;;  %v5326_v20 = vld [vmem:[%s12937_s13 + $0x150] sm:$0xff] }
 0xda9   :  { %8378 = vmatprep.subr.bf16.mxu1 %v8655_v26  ;;  %v8424_v23 = vpack.c.bf16 %v5327_v59, %v5326_v20  ;;  %v5596_v20 = vld [vmem:[%s12939_s15 + $0x60] sm:$0xff]  ;;  %v5597_v59 = vld [vmem:[%s12939_s15 + $0x68] sm:$0xff] }
 0xdaa   :  { %v8499_v2 = vpack.c.bf16 %v5597_v59, %v5596_v20 }
 0xdac   :  { %8380 = vmatpush3.bf16.msra.mxu1 %v8379_v53  ;;  %v5328_v53 = vld [vmem:[%s12937_s13 + $0x160] sm:$0xff] }
 0xdad   :  { %8381 = vmatprep.subr.bf16.mxu1 %v8655_v26  ;;  %v8427_v8 = vpack.c.bf16 %v5329_v12, %v5328_v53  ;;  %v5678_v53 = vld [vmem:[%s12941_s17] sm:$0xff]  ;;  %v5679_v12 = vld [vmem:[%s12941_s17 + $0x8] sm:$0xff] }
 0xdae   :  { %v8505_v6 = vpack.c.bf16 %v5679_v12, %v5678_v53 }
 0xdb0   :  { %8383 = vmatpush3.bf16.msra.mxu1 %v8382_v17  ;;  %v5330_v17 = vld [vmem:[%s12937_s13 + $0x170] sm:$0xff] }
 0xdb1   :  { %8408 = vmatprep.subr.bf16.mxu1 %v8655_v26 }
 0xe06   :  { %v6377_v51 = vpop.f32.mrb[58].mxu1 }
 0xe07   :  { %v6378_v62 = vpop.f32.mrb[59].mxu1 }
 0xe08   :  { %v6379_v14 = vadd.f32 %v6378_v62, %v6377_v51  ;;  %v5419_v51 = vld [vmem:[%s12937_s13 + $0x1f8] sm:$0xff]  ;;  %v8430_v62 = vpack.c.bf16 %v5331_v37, %v5330_v17  ;;  %v5682_v17 = vld [vmem:[%s12941_s17 + $0x20] sm:$0xff]  ;;  %v5683_v37 = vld [vmem:[%s12941_s17 + $0x28] sm:$0xff] }
 0xe26   :  { %v6412_v25 = vpop.f32.mrb[60].mxu1 }
 0xe27   :  { %v6413_v32 = vpop.f32.mrb[61].mxu1 }
 0xe28   :  { %v6414_v35 = vadd.f32 %v6413_v32, %v6412_v25  ;;  %v5492_v25 = vld [vmem:[%s12937_s13 + $0x200] sm:$0xff]  ;;  %v5493_v32 = vld [vmem:[%s12937_s13 + $0x208] sm:$0xff] }
 0xe2a   :  { %v4997_v58 = vmax.f32 %v6379_v14, %v6414_v35  ;;  %v8454_v14 = vpack.c.bf16 %v5419_v51, %v5418_v48  ;;  %v8457_v35 = vpack.c.bf16 %v5493_v32, %v5492_v25  ;;  %v8511_v48 = vpack.c.bf16 %v5683_v37, %v5682_v17  ;;  %v5684_v51 = vld [vmem:[%s12941_s17 + $0x30] sm:$0xff]  ;;  %v5686_v25 = vld [vmem:[%s12941_s17 + $0x40] sm:$0xff]  ;;  %v5687_v32 = vld [vmem:[%s12941_s17 + $0x48] sm:$0xff] }
 0xe46   :  { %v6447_v1 = vpop.f32.mrb[62].mxu1 }
 0xe47   :  { %v6448_v3 = vpop.f32.mrb[63].mxu1 }
 0xe48   :  { %v6449_v9 = vadd.f32 %v6448_v3, %v6447_v1  ;;  %v5495_v1 = vld [vmem:[%s12937_s13 + $0x218] sm:$0xff] }
 0xe66   :  { %v6482_v15 = vpop.f32.mrb[64].mxu1 }
 0xe67   :  { %v6483_v22 = vpop.f32.mrb[65].mxu1 }
 0xe68   :  { %v6484_v29 = vadd.f32 %v6483_v22, %v6482_v15  ;;  %v5496_v22 = vld [vmem:[%s12937_s13 + $0x220] sm:$0xff] }
 0xe6a   :  { %v5138_v30 = vmax.f32 %v6449_v9, %v6484_v29  ;;  %v5497_v29 = vld [vmem:[%s12937_s13 + $0x228] sm:$0xff] }
 0xe6c   :  { %v5139_v41 = vmax.f32 %v4997_v58, %v5138_v30  ;;  %v5494_v58 = vld [vmem:[%s12937_s13 + $0x210] sm:$0xff]  ;;  %v8463_v30 = vpack.c.bf16 %v5497_v29, %v5496_v22 }
 0xe6d   :  { %v8460_v15 = vpack.c.bf16 %v5495_v1, %v5494_v58  ;;  %v5688_v58 = vld [vmem:[%s12941_s17 + $0x50] sm:$0xff]  ;;  %v5689_v1 = vld [vmem:[%s12941_s17 + $0x58] sm:$0xff] }
 0xe6e   :  { %5140 = vst [vmem:[#allocation3] sm:$0x1f] %v5139_v41  ;;  %v5498_v41 = vld [vmem:[%s12937_s13 + $0x230] sm:$0xff] }
 0xe6f   :  { %v8466_v56 = vpack.c.bf16 %v5499_v28, %v5498_v41 }
 0xe75   :  { %v5158_v63 = vld [vmem:[#allocation3 + $0x1] sm:$0x1]  ;;  %v5141_v4 = vld [vmem:[#allocation3] sm:$0x1]  ;;  %v5315_v3 = vld [vmem:[#allocation3 + $0x2] sm:$0x1] }
 0xe76   :  { %6812 = vmatmul.mubr.f32.vlgmr.msra.gmra.mrb[66].mxu1 %v5158_v63  ;;  %6847 = vmatmul.mubr.f32.vlgmr.msra.gmra.mrb[40].mxu0 %v5141_v4  ;;  %v5403_v9 = vld [vmem:[#allocation3 + $0x3] sm:$0x1]  ;;  %v8475_v63 = vpack.c.bf16 %v5505_v33, %v5504_v18  ;;  %v5491_v43 = vld [vmem:[#allocation3 + $0x4] sm:$0x1]  ;;  %v5579_v33 = vld [vmem:[%s12938_s14] sm:$0x1] }
 0xe77   :  { %8410 = vmatpush3.bf16.msra.mxu1 %v8409_v39  ;;  %8434 = vmatpush3.bf16.msra.mxu0 %v8433_v42  ;;  %v8469_v39 = vpack.c.bf16 %v5501_v52, %v5500_v44  ;;  %v5502_v42 = vld [vmem:[%s12937_s13 + $0x250] sm:$0xff] }
 0xe78   :  { %8411 = vmatprep.subr.bf16.mxu1 %v8655_v26  ;;  %8435 = vmatprep.subr.bf16.mxu0 %v8655_v26  ;;  %v8472_v49 = vpack.c.bf16 %v5503_v46, %v5502_v42  ;;  %v5506_v4 = vld [vmem:[%s12937_s13 + $0x270] sm:$0xff] }
 0xe79   :  { %6881 = vmatprep.mubr.msk.f32.mxu1 %vm8656_vm7, %v8653_v7  ;;  %6916 = vmatprep.mubr.msk.f32.mxu0 %vm8656_vm7, %v8653_v7 }
 0xe7b   :  { %8413 = vmatpush3.bf16.msra.mxu1 %v8412_v38  ;;  %8437 = vmatpush3.bf16.msra.mxu0 %v8436_v57  ;;  %v5507_v38 = vld [vmem:[%s12937_s13 + $0x278] sm:$0xff] }
 0xe7c   :  { %8414 = vmatprep.subr.bf16.mxu1 %v8655_v26  ;;  %8438 = vmatprep.subr.bf16.mxu0 %v8655_v26  ;;  %v8478_v57 = vpack.c.bf16 %v5507_v38, %v5506_v4 }
 0xe7f   :  { %8416 = vmatpush3.bf16.msra.mxu1 %v8415_v0  ;;  %8440 = vmatpush3.bf16.msra.mxu0 %v8439_v54  ;;  %v8481_v0 = vpack.c.bf16 %v5585_v34, %v5584_v10  ;;  %v5587_v54 = vld [vmem:[%s12939_s15 + $0x18] sm:$0xff] }
 0xe80   :  { %8417 = vmatprep.subr.bf16.mxu1 %v8655_v26  ;;  %8441 = vmatprep.subr.bf16.mxu0 %v8655_v26  ;;  %v8484_v24 = vpack.c.bf16 %v5587_v54, %v5586_v36  ;;  %v5693_v10 = vld [vmem:[%s12941_s17 + $0x78] sm:$0xff]  ;;  %v5814_v36 = vld [vmem:[%s12940_s16] ss:$0 sm:$0xff] }
 0xe83   :  { %8419 = vmatpush3.bf16.msra.mxu1 %v8418_v47  ;;  %8443 = vmatpush3.bf16.msra.mxu0 %v8442_v5  ;;  %v5591_v47 = vld [vmem:[%s12939_s15 + $0x38] sm:$0xff] }
 0xe84   :  { %8420 = vmatprep.subr.bf16.mxu1 %v8655_v26  ;;  %8444 = vmatprep.subr.bf16.mxu0 %v8655_v26  ;;  %v8490_v5 = vpack.c.bf16 %v5591_v47, %v5590_v40 }
 0xe87   :  { %8422 = vmatpush3.bf16.msra.mxu1 %v8421_v50  ;;  %8446 = vmatpush3.bf16.msra.mxu0 %v8445_v19  ;;  %v5595_v50 = vld [vmem:[%s12939_s15 + $0x58] sm:$0xff] }
 0xe88   :  { %8423 = vmatprep.subr.bf16.mxu1 %v8655_v26  ;;  %8447 = vmatprep.subr.bf16.mxu0 %v8655_v26  ;;  %v8496_v19 = vpack.c.bf16 %v5595_v50, %v5594_v55 }
 0xe8b   :  { %8425 = vmatpush3.bf16.msra.mxu1 %v8424_v23  ;;  %8449 = vmatpush3.bf16.msra.mxu0 %v8448_v45  ;;  %v5599_v23 = vld [vmem:[%s12939_s15 + $0x78] sm:$0xff] }
 0xe8c   :  { %8426 = vmatprep.subr.bf16.mxu1 %v8655_v26  ;;  %8450 = vmatprep.subr.bf16.mxu0 %v8655_v26  ;;  %v8502_v45 = vpack.c.bf16 %v5599_v23, %v5598_v16 }
 0xe8f   :  { %8428 = vmatpush3.bf16.msra.mxu1 %v8427_v8  ;;  %8452 = vmatpush3.bf16.msra.mxu0 %v8451_v21  ;;  %v5681_v8 = vld [vmem:[%s12941_s17 + $0x18] sm:$0xff] }
 0xe90   :  { %8429 = vmatprep.subr.bf16.mxu1 %v8655_v26  ;;  %8453 = vmatprep.subr.bf16.mxu0 %v8655_v26  ;;  %v8508_v21 = vpack.c.bf16 %v5681_v8, %v5680_v31 }
 0xe93   :  { %8431 = vmatpush3.bf16.msra.mxu1 %v8430_v62  ;;  %8455 = vmatpush3.bf16.msra.mxu0 %v8454_v14  ;;  %v5685_v62 = vld [vmem:[%s12941_s17 + $0x38] sm:$0xff] }
 0xe94   :  { %8456 = vmatprep.subr.bf16.mxu1 %v8655_v26  ;;  %8480 = vmatprep.subr.bf16.mxu0 %v8655_v26  ;;  %v8514_v14 = vpack.c.bf16 %v5685_v62, %v5684_v51 }
 0xe96   :  { %6882 = vmatmul.mubr.f32.vlgmr.msra.gmra.mrb[68].mxu1 %v5315_v3  ;;  %6917 = vmatmul.mubr.f32.vlgmr.msra.gmra.mrb[42].mxu0 %v5403_v9  ;;  %v8520_v3 = vpack.c.bf16 %v5689_v1, %v5688_v58  ;;  %v5690_v9 = vld [vmem:[%s12941_s17 + $0x60] sm:$0xff] }
 0xe97   :  { %8458 = vmatpush3.bf16.msra.mxu1 %v8457_v35  ;;  %6951 = vmatprep.mubr.msk.f32.mxu1 %vm8656_vm7, %v8653_v7  ;;  %v8517_v35 = vpack.c.bf16 %v5687_v32, %v5686_v25 }
 0xe98   :  { %8459 = vmatprep.subr.bf16.mxu1 %v8655_v26  ;;  %6986 = vmatprep.mubr.msk.f32.mxu0 %vm8656_vm7, %v8653_v7 }
 0xe99   :  { %8482 = vmatpush3.bf16.msra.mxu0 %v8481_v0 }
 0xe9a   :  { %8483 = vmatprep.subr.bf16.mxu0 %v8655_v26 }
 0xe9b   :  { %8461 = vmatpush3.bf16.msra.mxu1 %v8460_v15  ;;  %v5691_v15 = vld [vmem:[%s12941_s17 + $0x68] sm:$0xff] }
 0xe9c   :  { %8462 = vmatprep.subr.bf16.mxu1 %v8655_v26  ;;  %v8523_v22 = vpack.c.bf16 %v5691_v15, %v5690_v9 }
 0xe9d   :  { %8485 = vmatpush3.bf16.msra.mxu0 %v8484_v24 }
 0xe9e   :  { %8486 = vmatprep.subr.bf16.mxu0 %v8655_v26 }
 0xe9f   :  { %8464 = vmatpush3.bf16.msra.mxu1 %v8463_v30 }
 0xea0   :  { %8465 = vmatprep.subr.bf16.mxu1 %v8655_v26 }
 0xea3   :  { %8467 = vmatpush3.bf16.msra.mxu1 %v8466_v56 }
 0xea4   :  { %8468 = vmatprep.subr.bf16.mxu1 %v8655_v26 }
 0xea7   :  { %8470 = vmatpush3.bf16.msra.mxu1 %v8469_v39 }
 0xea8   :  { %8471 = vmatprep.subr.bf16.mxu1 %v8655_v26 }
 0xeab   :  { %8473 = vmatpush3.bf16.msra.mxu1 %v8472_v49 }
 0xeac   :  { %8474 = vmatprep.subr.bf16.mxu1 %v8655_v26 }
 0xeaf   :  { %8476 = vmatpush3.bf16.msra.mxu1 %v8475_v63 }
 0xeb0   :  { %8477 = vmatprep.subr.bf16.mxu1 %v8655_v26 }
 0xeb3   :  { %8479 = vmatpush3.bf16.msra.mxu1 %v8478_v57 }
 0xeb4   :  { %8504 = vmatprep.subr.bf16.mxu1 %v8655_v26 }
 0xeb6   :  { %6952 = vmatmul.mubr.f32.vlgmr.msra.gmra.mrb[70].mxu1 %v5491_v43  ;;  %v5692_v43 = vld [vmem:[%s12941_s17 + $0x70] sm:$0xff]  ;;  %s8629_s17 = scalar_lea.vmem %s5779_s29, 32 }
 0xeb7   :  { %7021 = vmatprep.mubr.msk.f32.mxu1 %vm8656_vm7, %v8653_v7  ;;  %v5588_v7 = vld [vmem:[%s12939_s15 + $0x20] sm:$0xff]  ;;  %8506 = vmatpush3.bf16.msra.mxu1 %v8505_v6  ;;  %v8526_v34 = vpack.c.bf16 %v5693_v10, %v5692_v43  ;;  %p8630_p0 = scmp.ne.s32.totalorder %s5779_s29, %s8629_s17  ;;  %p8635_p2 = scmp.lt.s32.totalorder %s8629_s17, %s8629_s17 }
 0xeb8   :  { %v8487_v13 = vpack.c.bf16 %v5589_v11, %v5588_v7  ;;  %8507 = vmatprep.subr.bf16.mxu1 %v8655_v26  ;;  %v5815_v11 = vld [vmem:[%s12942_s18] ss:$0 sm:$0xff] }
 0xeb9   :  { %p8636_p3 = por %p8635_p2, %p8634_p1 }
 0xeba   :  { %8488 = vmatpush3.bf16.msra.mxu0 %v8487_v13 }
 0xebb   :  { %8489 = vmatprep.subr.bf16.mxu0 %v8655_v26  ;;  %8509 = vmatpush3.bf16.msra.mxu1 %v8508_v21  ;;  %p8637_p4 = pnand %p8636_p3, %p8630_p0 }
 0xebc   :  { %8510 = vmatprep.subr.bf16.mxu1 %v8655_v26 }
 0xebe   :  { %8491 = vmatpush3.bf16.msra.mxu0 %v8490_v5 }
 0xebf   :  { %8492 = vmatprep.subr.bf16.mxu0 %v8655_v26  ;;  %8512 = vmatpush3.bf16.msra.mxu1 %v8511_v48 }
 0xec0   :  { %8513 = vmatprep.subr.bf16.mxu1 %v8655_v26 }
 0xec2   :  { %8494 = vmatpush3.bf16.msra.mxu0 %v8493_v27 }
 0xec3   :  { %8495 = vmatprep.subr.bf16.mxu0 %v8655_v26  ;;  %8515 = vmatpush3.bf16.msra.mxu1 %v8514_v14 }
 0xec4   :  { %8516 = vmatprep.subr.bf16.mxu1 %v8655_v26 }
 0xec6   :  { %8497 = vmatpush3.bf16.msra.mxu0 %v8496_v19 }
 0xec7   :  { %8498 = vmatprep.subr.bf16.mxu0 %v8655_v26  ;;  %8518 = vmatpush3.bf16.msra.mxu1 %v8517_v35 }
 0xec8   :  { %8519 = vmatprep.subr.bf16.mxu1 %v8655_v26 }
 0xeca   :  { %8500 = vmatpush3.bf16.msra.mxu0 %v8499_v2 }
 0xecb   :  { %8501 = vmatprep.subr.bf16.mxu0 %v8655_v26  ;;  %8521 = vmatpush3.bf16.msra.mxu1 %v8520_v3 }
 0xecc   :  { %8522 = vmatprep.subr.bf16.mxu1 %v8655_v26 }
 0xece   :  { %8503 = vmatpush3.bf16.msra.mxu0 %v8502_v45 }
 0xecf   :  { %8524 = vmatpush3.bf16.msra.mxu1 %v8523_v22 }
 0xed0   :  { %8525 = vmatprep.subr.bf16.mxu1 %v8655_v26 }
 0xed3   :  { %8527 = vmatpush3.bf16.msra.mxu1 %v8526_v34 }
 0xf49   :  { %v5241_v29 = vpop.f32.mrb[66].mxu1  ;;  %v5311_v30 = vpop.f32.mrb[40].mxu0 }
 0xf4a   :  { %v5312_v41 = vadd.f32 %v5311_v30, %v5241_v29  ;;  %v6813_v28 = vpop.f32.mrb[67].mxu1  ;;  %v6848_v56 = vpop.f32.mrb[41].mxu0 }
 0xf69   :  { %v5398_v44 = vpop.f32.mrb[68].mxu1  ;;  %v5486_v52 = vpop.f32.mrb[42].mxu0 }
 0xf6a   :  { %v5402_v39 = vadd.f32 %v5398_v44, %v5312_v41  ;;  %v6883_v42 = vpop.f32.mrb[69].mxu1  ;;  %v6918_v46 = vpop.f32.mrb[43].mxu0 }
 0xf6c   :  { %v5490_v49 = vadd.f32 %v5486_v52, %v5402_v39 }
 0xf89   :  { %v5574_v18 = vpop.f32.mrb[70].mxu1 }
 0xf8a   :  { %v5578_v63 = vadd.f32 %v5574_v18, %v5490_v49  ;;  %v6953_v4 = vpop.f32.mrb[71].mxu1 }
 0xf8c   :  { %v5580_v38 = vadd.f32 %v5579_v33, %v5578_v63 }
 0xf8e   :  { %v5581_v26 = vmax.f32 %v5580_v38, 0.0 }
 0xf90   :  { %5582 = vst [vmem:[#allocation4 + $0x1] sm:$0x1] %v5581_v26 }
 0xf97   :  { %v5583_v57 = vld [vmem:[#allocation4] sm:$0x3] }
 0xf98   :  { %6987 = vmatmul.mubr.f32.vlgmr.msra.gmra.mrb[44].mxu0 %v5583_v57 }
0x106b   :  { %v5673_v0 = vpop.f32.mrb[44].mxu0 }
0x106c   :  { %v5674_v54 = vadd.f32 %v5814_v36, %v5673_v0  ;;  %v6988_v24 = vpop.f32.mrb[45].mxu0 }
0x106e   :  { %v5677_v7 = vmax.f32 %v5674_v54, 0.0 }
0x1070   :  { %7022 = vmatmul.mubr.f32.vlgmr.msra.gmra.mrb[72].mxu1 %v5677_v7 }
0x1143   :  { %v5767_v13 = vpop.f32.mrb[72].mxu1 }
0x1144   :  { %v5768_v40 = vadd.f32 %v5815_v11, %v5767_v13  ;;  %v7023_v47 = vpop.f32.mrb[73].mxu1 }
0x1146   :  { %5771 = vst [vmem:[#allocation5] sm:$0x3] %v5768_v40 }
0x1147   :  { %8640 = shalt.err (!%p8637_p4)
}
0x1148   :  { %s8641_s0 = scalar_lea.hbm %s12943_s19, 32 }
0x1149   :  { %p8642_p5 = scmp.ne.s32.totalorder %s12943_s19, %s8641_s0  ;;  %p8645_p6 = scmp.lt.u32.totalorder %s8641_s0, %s12943_s19 }
0x114b   :  { %p8647_p7 = pnand %p8645_p6, %p8642_p5 }
0x114d   :  { %8650 = shalt.err (!%p8647_p7)
}
0x114e   :  { %5781 = dma.vmem_to_hbm [thread:$0]  %s5779_s29, 32, %s12943_s19, [#allocation6]  }
0x114f   :  { %8651 = dma.done.wait [#allocation6], 32  }
0x1150   :  { %8652 = vsyncadd [#allocation6], 4294967264 }
0x1151   :  { %5785 = vsyncpa [#allocation6], 1 }

</bundles_post_ra>
